<compile_context>
chip_gen: v7x
topology: tpu7x:2x2x1
jax: 0.10.0
libtpu: 0.0.40
codegen_flags: <defaults>
</compile_context>

<pallas_src>
import functools
import math

import jax
import jax.numpy as jnp
from jax import lax
from jax.experimental import pallas as pl
from jax.experimental.pallas import tpu as pltpu


def _attention_kernel(x_ref, wqkv_ref, wout_ref, bout_ref, o_ref, *,
                      heads, dim_head):
    # Channel-major layout: (channels, positions), N on the lane axis.
    #   x_ref:    (1, C, N)      one batch element, bf16
    #   wqkv_ref: (3*H*D, C)     qkv 1x1-conv weight, Q rows pre-scaled, bf16
    #   wout_ref: (C, H*D)       output 1x1-conv weight, bf16
    #   bout_ref: (C, 1)         output 1x1-conv bias, f32
    #   o_ref:    (1, C, N)      f32
    hidden = heads * dim_head

    x = x_ref[0]                                                    # (C, N) bf16

    # Fused qkv 1x1 conv: (3*hidden, C) @ (C, N) -> (3*hidden, N), f32 MXU acc.
    qkv = jnp.dot(wqkv_ref[...], x, preferred_element_type=jnp.float32)
    qkv = qkv.astype(jnp.bfloat16)          # bf16 operands for the attention dots

    # One 3-way split, hoisted out of the head loop (sublane-aligned offsets).
    q_all = qkv[:hidden]                                            # (hidden, N)
    k_all = qkv[hidden:2 * hidden]
    v_all = qkv[2 * hidden:]

    outs = []
    for h in range(heads):
        sl = slice(h * dim_head, (h + 1) * dim_head)
        q = q_all[sl]                                               # (D, N) bf16
        k = k_all[sl]
        v = v_all[sl]

        # sim_T[j, i] = sum_d k[d, j] * q[d, i]   -> (N_keys, N_queries), f32.
        sim = lax.dot_general(k, q, (((0,), (0,)), ((), ())),
                              preferred_element_type=jnp.float32)
        # Softmax over keys (sublane axis) -> stats come out as (1, N_queries),
        # already lane-major for the post-matmul normalization.
        m = jnp.max(sim, axis=0, keepdims=True)                     # (1, N) f32
        p = jnp.exp(sim - m)                                        # f32, EUP
        l = jnp.sum(p, axis=0, keepdims=True)                       # (1, N) f32
        inv_l = pl.reciprocal(l, approx=True)                       # EUP, ~free

        # Unnormalized PV: (D, N_keys) @ (N_keys, N_queries) -> (D, N_queries).
        o_h = jnp.dot(v, p.astype(jnp.bfloat16),
                      preferred_element_type=jnp.float32)
        # Normalize AFTER the matmul: (D, N) * (1, N) -- 8 vregs, not 64.
        outs.append((o_h * inv_l).astype(jnp.bfloat16))

    # Heads stacked on the sublane axis -> (hidden=128, N) slab.
    out_heads = jnp.concatenate(outs, axis=0)

    # Single fused output projection (K = hidden = 128 fills the MXU) + bias.
    y = jnp.dot(wout_ref[...], out_heads, preferred_element_type=jnp.float32)
    o_ref[0] = (y + bout_ref[...]).astype(o_ref.dtype)              # lane-dense store


def attention_pallas(x, w_qkv, w_out, b_out, *, heads=4, dim_head=32):
    """x: (B, C, H, W); w_qkv: (3*heads*dim_head, C); w_out: (C, heads*dim_head);
    b_out: (C,). Returns (B, C, H, W), matching PyTorch Attention.forward."""
    b, c, hh, ww = x.shape
    n = hh * ww
    hidden = heads * dim_head
    scale = dim_head ** (-0.5)
    assert n % 8 == 0, "spatial size H*W must be a multiple of 8"

    # Channel-major (B, C, N): pure reshape of NCHW -- no transposes at all.
    x_cn = x.reshape(b, c, n).astype(jnp.bfloat16)

    # Fold the q scale into the Q rows of the qkv weight (constant-folded).
    wqkv = jnp.asarray(w_qkv, jnp.float32)
    wqkv = jnp.concatenate([wqkv[:hidden] * scale, wqkv[hidden:]],
                           axis=0).astype(jnp.bfloat16)             # (3*hidden, C)
    wout = jnp.asarray(w_out, jnp.bfloat16)                         # (C, hidden)
    bout = jnp.asarray(b_out, jnp.float32).reshape(c, 1)            # (C, 1)

    kernel = functools.partial(_attention_kernel, heads=heads, dim_head=dim_head)

    out_cn = pl.pallas_call(
        kernel,
        out_shape=jax.ShapeDtypeStruct((b, c, n), jnp.float32),
        grid=(b,),
        in_specs=[
            pl.BlockSpec((1, c, n), lambda i: (i, 0, 0)),           # x: one batch elem
            pl.BlockSpec((3 * hidden, c), lambda i: (0, 0)),        # qkv weight (resident)
            pl.BlockSpec((c, hidden), lambda i: (0, 0)),            # out weight (resident)
            pl.BlockSpec((c, 1), lambda i: (0, 0)),                 # out bias (resident)
        ],
        out_specs=pl.BlockSpec((1, c, n), lambda i: (i, 0, 0)),
        compiler_params=pltpu.CompilerParams(
            dimension_semantics=("parallel",)),                     # megacore on v7x
    )(x_cn, wqkv, wout, bout)

    return out_cn.reshape(b, c, hh, ww)                             # back to NCHW


def attention_ref(x, w_qkv, w_out, b_out, heads, dim_head):
    """Pure-JAX f32 reference mirroring the PyTorch module."""
    b, c, hh, ww = x.shape
    hidden = heads * dim_head
    scale = dim_head ** (-0.5)
    qkv = jnp.einsum('oc,bcyx->boyx', w_qkv, x)                     # 1x1 conv, no bias
    q, k, v = jnp.split(qkv, 3, axis=1)

    def split_heads(t):                                             # 'b (h c) x y -> b h c (x y)'
        return t.reshape(b, heads, dim_head, hh * ww)

    q, k, v = split_heads(q), split_heads(k), split_heads(v)
    q = q * scale
    sim = jnp.einsum('bhdi,bhdj->bhij', q, k)
    attn = jax.nn.softmax(sim, axis=-1)
    out = jnp.einsum('bhij,bhdj->bhid', attn, v)                    # (b, h, N, d)
    out = out.transpose(0, 1, 3, 2).reshape(b, hidden, hh, ww)      # 'b h (x y) d -> b (h d) x y'
    return jnp.einsum('oc,bcyx->boyx', w_out, out) + b_out[None, :, None, None]


def init_attention_params(key, dim, heads, dim_head):
    hidden = heads * dim_head
    k1, k2, k3 = jax.random.split(key, 3)
    w_qkv = jax.random.normal(k1, (3 * hidden, dim), jnp.float32) / math.sqrt(dim)
    w_out = jax.random.normal(k2, (dim, hidden), jnp.float32) / math.sqrt(hidden)
    b_out = 0.1 * jax.random.normal(k3, (dim,), jnp.float32)
    return w_qkv, w_out, b_out


if __name__ == "__main__":
    key = jax.random.PRNGKey(0)
    kx, kp = jax.random.split(key)

    batch, dim, spatial = 2, 32, 16          # x: (2, 32, 16, 16) -> N = 256 positions
    heads, dim_head = 4, 32                  # module defaults; hidden = 128

    x = jax.random.normal(kx, (batch, dim, spatial, spatial), jnp.float32)
    w_qkv, w_out, b_out = init_attention_params(kp, dim, heads, dim_head)

    out = attention_pallas(x, w_qkv, w_out, b_out, heads=heads, dim_head=dim_head)
    out = jax.block_until_ready(out)

    ref = attention_ref(x, w_qkv, w_out, b_out, heads, dim_head)
    assert out.shape == ref.shape == (batch, dim, spatial, spatial)
    max_err = float(jnp.max(jnp.abs(out - ref)))
    assert max_err < 3e-2, f"mismatch vs reference: max abs err {max_err}"

    print("KERNEL_OK")
</pallas_src>

<mosaic_0001>
module attributes {stable_mosaic.version = 11 : i64} {
  func.func @_attention_kernel(%arg0: i32, %arg1: memref<1x32x256xbf16, #tpu.memory_space<vmem>>, %arg2: memref<384x32xbf16, #tpu.memory_space<vmem>>, %arg3: memref<32x128xbf16, #tpu.memory_space<vmem>>, %arg4: memref<32x1xf32, #tpu.memory_space<vmem>>, %arg5: memref<1x32x256xf32, #tpu.memory_space<vmem>>) attributes {dimension_semantics = [#tpu.dimension_semantics<parallel>], iteration_bounds = array<i64: 2>, scalar_prefetch = 0 : i64, scratch_operands = 0 : i64, tpu.core_type = #tpu.core_type<tc>, window_params = [{transform_indices = @transform_0, window_bounds = array<i64: 1, 32, 256>}, {pipeline_mode = #tpu.pipeline_mode<synchronous>, transform_indices = @transform_1, window_bounds = array<i64: 384, 32>}, {pipeline_mode = #tpu.pipeline_mode<synchronous>, transform_indices = @transform_2, window_bounds = array<i64: 32, 128>}, {pipeline_mode = #tpu.pipeline_mode<synchronous>, transform_indices = @transform_3, window_bounds = array<i64: 32, 1>}, {transform_indices = @transform_4, window_bounds = array<i64: 1, 32, 256>}]} {
    %c0 = arith.constant 0 : index
    %c0_0 = arith.constant 0 : index
    %c0_1 = arith.constant 0 : index
    %0 = vector.load %arg1[%c0, %c0_0, %c0_1] : memref<1x32x256xbf16, #tpu.memory_space<vmem>>, vector<1x32x256xbf16>
    %1 = vector.shape_cast %0 : vector<1x32x256xbf16> to vector<32x256xbf16>
    %c0_2 = arith.constant 0 : index
    %c0_3 = arith.constant 0 : index
    %2 = vector.load %arg2[%c0_2, %c0_3] : memref<384x32xbf16, #tpu.memory_space<vmem>>, vector<384x32xbf16>
    %cst = arith.constant dense<0.000000e+00> : vector<384x256xf32>
    %3 = tpu.matmul %2, %1, %cst {dimension_numbers = #tpu.dot_dimension_numbers<[1], [0], [0], [1], [0, 0, 1, 1], [], []>} : vector<384x32xbf16>, vector<32x256xbf16>, vector<384x256xf32> -> vector<384x256xf32>
    %4 = arith.truncf %3 : vector<384x256xf32> to vector<384x256xbf16>
    %5 = vector.extract_strided_slice %4 {offsets = [0, 0], sizes = [128, 256], strides = [1, 1]} : vector<384x256xbf16> to vector<128x256xbf16>
    %6 = vector.extract_strided_slice %4 {offsets = [128, 0], sizes = [128, 256], strides = [1, 1]} : vector<384x256xbf16> to vector<128x256xbf16>
    %7 = vector.extract_strided_slice %4 {offsets = [256, 0], sizes = [128, 256], strides = [1, 1]} : vector<384x256xbf16> to vector<128x256xbf16>
    %8 = vector.extract_strided_slice %5 {offsets = [0, 0], sizes = [32, 256], strides = [1, 1]} : vector<128x256xbf16> to vector<32x256xbf16>
    %9 = vector.extract_strided_slice %6 {offsets = [0, 0], sizes = [32, 256], strides = [1, 1]} : vector<128x256xbf16> to vector<32x256xbf16>
    %10 = vector.extract_strided_slice %7 {offsets = [0, 0], sizes = [32, 256], strides = [1, 1]} : vector<128x256xbf16> to vector<32x256xbf16>
    %cst_4 = arith.constant dense<0.000000e+00> : vector<256x256xf32>
    %11 = tpu.matmul %9, %8, %cst_4 {dimension_numbers = #tpu.dot_dimension_numbers<[0], [0], [1], [1], [0, 1, 1, 1], [], []>} : vector<32x256xbf16>, vector<32x256xbf16>, vector<256x256xf32> -> vector<256x256xf32>
    %cst_5 = arith.constant dense<0xFF800000> : vector<256xf32>
    %12 = vector.multi_reduction <maximumf>, %11, %cst_5 [0] : vector<256x256xf32> to vector<256xf32>
    %13 = vector.shape_cast %12 : vector<256xf32> to vector<1x256xf32>
    %14 = vector.broadcast %13 : vector<1x256xf32> to vector<256x256xf32>
    %15 = arith.subf %11, %14 : vector<256x256xf32>
    %16 = math.exp %15 : vector<256x256xf32>
    %cst_6 = arith.constant dense<0.000000e+00> : vector<256xf32>
    %17 = vector.multi_reduction <add>, %16, %cst_6 [0] : vector<256x256xf32> to vector<256xf32>
    %18 = vector.shape_cast %17 : vector<256xf32> to vector<1x256xf32>
    %19 = tpu.reciprocal %18 {approx = true} : vector<1x256xf32> -> vector<1x256xf32>
    %20 = arith.truncf %16 : vector<256x256xf32> to vector<256x256xbf16>
    %cst_7 = arith.constant dense<0.000000e+00> : vector<32x256xf32>
    %21 = tpu.matmul %10, %20, %cst_7 {dimension_numbers = #tpu.dot_dimension_numbers<[1], [0], [0], [1], [0, 0, 1, 1], [], []>} : vector<32x256xbf16>, vector<256x256xbf16>, vector<32x256xf32> -> vector<32x256xf32>
    %22 = vector.broadcast %19 : vector<1x256xf32> to vector<32x256xf32>
    %23 = arith.mulf %21, %22 : vector<32x256xf32>
    %24 = arith.truncf %23 : vector<32x256xf32> to vector<32x256xbf16>
    %25 = vector.extract_strided_slice %5 {offsets = [32, 0], sizes = [32, 256], strides = [1, 1]} : vector<128x256xbf16> to vector<32x256xbf16>
    %26 = vector.extract_strided_slice %6 {offsets = [32, 0], sizes = [32, 256], strides = [1, 1]} : vector<128x256xbf16> to vector<32x256xbf16>
    %27 = vector.extract_strided_slice %7 {offsets = [32, 0], sizes = [32, 256], strides = [1, 1]} : vector<128x256xbf16> to vector<32x256xbf16>
    %cst_8 = arith.constant dense<0.000000e+00> : vector<256x256xf32>
    %28 = tpu.matmul %26, %25, %cst_8 {dimension_numbers = #tpu.dot_dimension_numbers<[0], [0], [1], [1], [0, 1, 1, 1], [], []>} : vector<32x256xbf16>, vector<32x256xbf16>, vector<256x256xf32> -> vector<256x256xf32>
    %cst_9 = arith.constant dense<0xFF800000> : vector<256xf32>
    %29 = vector.multi_reduction <maximumf>, %28, %cst_9 [0] : vector<256x256xf32> to vector<256xf32>
    %30 = vector.shape_cast %29 : vector<256xf32> to vector<1x256xf32>
    %31 = vector.broadcast %30 : vector<1x256xf32> to vector<256x256xf32>
    %32 = arith.subf %28, %31 : vector<256x256xf32>
    %33 = math.exp %32 : vector<256x256xf32>
    %cst_10 = arith.constant dense<0.000000e+00> : vector<256xf32>
    %34 = vector.multi_reduction <add>, %33, %cst_10 [0] : vector<256x256xf32> to vector<256xf32>
    %35 = vector.shape_cast %34 : vector<256xf32> to vector<1x256xf32>
    %36 = tpu.reciprocal %35 {approx = true} : vector<1x256xf32> -> vector<1x256xf32>
    %37 = arith.truncf %33 : vector<256x256xf32> to vector<256x256xbf16>
    %cst_11 = arith.constant dense<0.000000e+00> : vector<32x256xf32>
    %38 = tpu.matmul %27, %37, %cst_11 {dimension_numbers = #tpu.dot_dimension_numbers<[1], [0], [0], [1], [0, 0, 1, 1], [], []>} : vector<32x256xbf16>, vector<256x256xbf16>, vector<32x256xf32> -> vector<32x256xf32>
    %39 = vector.broadcast %36 : vector<1x256xf32> to vector<32x256xf32>
    %40 = arith.mulf %38, %39 : vector<32x256xf32>
    %41 = arith.truncf %40 : vector<32x256xf32> to vector<32x256xbf16>
    %42 = vector.extract_strided_slice %5 {offsets = [64, 0], sizes = [32, 256], strides = [1, 1]} : vector<128x256xbf16> to vector<32x256xbf16>
    %43 = vector.extract_strided_slice %6 {offsets = [64, 0], sizes = [32, 256], strides = [1, 1]} : vector<128x256xbf16> to vector<32x256xbf16>
    %44 = vector.extract_strided_slice %7 {offsets = [64, 0], sizes = [32, 256], strides = [1, 1]} : vector<128x256xbf16> to vector<32x256xbf16>
    %cst_12 = arith.constant dense<0.000000e+00> : vector<256x256xf32>
    %45 = tpu.matmul %43, %42, %cst_12 {dimension_numbers = #tpu.dot_dimension_numbers<[0], [0], [1], [1], [0, 1, 1, 1], [], []>} : vector<32x256xbf16>, vector<32x256xbf16>, vector<256x256xf32> -> vector<256x256xf32>
    %cst_13 = arith.constant dense<0xFF800000> : vector<256xf32>
    %46 = vector.multi_reduction <maximumf>, %45, %cst_13 [0] : vector<256x256xf32> to vector<256xf32>
    %47 = vector.shape_cast %46 : vector<256xf32> to vector<1x256xf32>
    %48 = vector.broadcast %47 : vector<1x256xf32> to vector<256x256xf32>
    %49 = arith.subf %45, %48 : vector<256x256xf32>
    %50 = math.exp %49 : vector<256x256xf32>
    %cst_14 = arith.constant dense<0.000000e+00> : vector<256xf32>
    %51 = vector.multi_reduction <add>, %50, %cst_14 [0] : vector<256x256xf32> to vector<256xf32>
    %52 = vector.shape_cast %51 : vector<256xf32> to vector<1x256xf32>
    %53 = tpu.reciprocal %52 {approx = true} : vector<1x256xf32> -> vector<1x256xf32>
    %54 = arith.truncf %50 : vector<256x256xf32> to vector<256x256xbf16>
    %cst_15 = arith.constant dense<0.000000e+00> : vector<32x256xf32>
    %55 = tpu.matmul %44, %54, %cst_15 {dimension_numbers = #tpu.dot_dimension_numbers<[1], [0], [0], [1], [0, 0, 1, 1], [], []>} : vector<32x256xbf16>, vector<256x256xbf16>, vector<32x256xf32> -> vector<32x256xf32>
    %56 = vector.broadcast %53 : vector<1x256xf32> to vector<32x256xf32>
    %57 = arith.mulf %55, %56 : vector<32x256xf32>
    %58 = arith.truncf %57 : vector<32x256xf32> to vector<32x256xbf16>
    %59 = vector.extract_strided_slice %5 {offsets = [96, 0], sizes = [32, 256], strides = [1, 1]} : vector<128x256xbf16> to vector<32x256xbf16>
    %60 = vector.extract_strided_slice %6 {offsets = [96, 0], sizes = [32, 256], strides = [1, 1]} : vector<128x256xbf16> to vector<32x256xbf16>
    %61 = vector.extract_strided_slice %7 {offsets = [96, 0], sizes = [32, 256], strides = [1, 1]} : vector<128x256xbf16> to vector<32x256xbf16>
    %cst_16 = arith.constant dense<0.000000e+00> : vector<256x256xf32>
    %62 = tpu.matmul %60, %59, %cst_16 {dimension_numbers = #tpu.dot_dimension_numbers<[0], [0], [1], [1], [0, 1, 1, 1], [], []>} : vector<32x256xbf16>, vector<32x256xbf16>, vector<256x256xf32> -> vector<256x256xf32>
    %cst_17 = arith.constant dense<0xFF800000> : vector<256xf32>
    %63 = vector.multi_reduction <maximumf>, %62, %cst_17 [0] : vector<256x256xf32> to vector<256xf32>
    %64 = vector.shape_cast %63 : vector<256xf32> to vector<1x256xf32>
    %65 = vector.broadcast %64 : vector<1x256xf32> to vector<256x256xf32>
    %66 = arith.subf %62, %65 : vector<256x256xf32>
    %67 = math.exp %66 : vector<256x256xf32>
    %cst_18 = arith.constant dense<0.000000e+00> : vector<256xf32>
    %68 = vector.multi_reduction <add>, %67, %cst_18 [0] : vector<256x256xf32> to vector<256xf32>
    %69 = vector.shape_cast %68 : vector<256xf32> to vector<1x256xf32>
    %70 = tpu.reciprocal %69 {approx = true} : vector<1x256xf32> -> vector<1x256xf32>
    %71 = arith.truncf %67 : vector<256x256xf32> to vector<256x256xbf16>
    %cst_19 = arith.constant dense<0.000000e+00> : vector<32x256xf32>
    %72 = tpu.matmul %61, %71, %cst_19 {dimension_numbers = #tpu.dot_dimension_numbers<[1], [0], [0], [1], [0, 0, 1, 1], [], []>} : vector<32x256xbf16>, vector<256x256xbf16>, vector<32x256xf32> -> vector<32x256xf32>
    %73 = vector.broadcast %70 : vector<1x256xf32> to vector<32x256xf32>
    %74 = arith.mulf %72, %73 : vector<32x256xf32>
    %75 = arith.truncf %74 : vector<32x256xf32> to vector<32x256xbf16>
    %76 = tpu.concatenate %24, %41, %58, %75 in 0 : vector<32x256xbf16>, vector<32x256xbf16>, vector<32x256xbf16>, vector<32x256xbf16> -> vector<128x256xbf16>
    %c0_20 = arith.constant 0 : index
    %c0_21 = arith.constant 0 : index
    %77 = vector.load %arg3[%c0_20, %c0_21] : memref<32x128xbf16, #tpu.memory_space<vmem>>, vector<32x128xbf16>
    %cst_22 = arith.constant dense<0.000000e+00> : vector<32x256xf32>
    %78 = tpu.matmul %77, %76, %cst_22 {dimension_numbers = #tpu.dot_dimension_numbers<[1], [0], [0], [1], [0, 0, 1, 1], [], []>} : vector<32x128xbf16>, vector<128x256xbf16>, vector<32x256xf32> -> vector<32x256xf32>
    %c0_23 = arith.constant 0 : index
    %c0_24 = arith.constant 0 : index
    %79 = vector.load %arg4[%c0_23, %c0_24] : memref<32x1xf32, #tpu.memory_space<vmem>>, vector<32x1xf32>
    %80 = vector.broadcast %79 : vector<32x1xf32> to vector<32x256xf32>
    %81 = arith.addf %78, %80 : vector<32x256xf32>
    %c0_25 = arith.constant 0 : index
    %c0_26 = arith.constant 0 : index
    %c0_27 = arith.constant 0 : index
    %82 = vector.load %arg5[%c0_25, %c0_26, %c0_27] : memref<1x32x256xf32, #tpu.memory_space<vmem>>, vector<1x32x256xf32>
    %83 = vector.shape_cast %82 : vector<1x32x256xf32> to vector<32x256xf32>
    %84 = vector.shape_cast %81 : vector<32x256xf32> to vector<1x32x256xf32>
    tpu.vector_store %arg5[%c0_25, %c0_26, %c0_27], %84 {strides = array<i32>} : memref<1x32x256xf32, #tpu.memory_space<vmem>>, vector<1x32x256xf32>,
    return
  }
  func.func @transform_0(%arg0: i32) -> (i32, i32, i32) {
    %c0_i32 = arith.constant 0 : i32
    %c0_i32_0 = arith.constant 0 : i32
    %c0_i32_1 = arith.constant 0 : i32
    return %arg0, %c0_i32, %c0_i32_0 : i32, i32, i32
  }
  func.func @transform_1(%arg0: i32) -> (i32, i32) {
    %c0_i32 = arith.constant 0 : i32
    %c0_i32_0 = arith.constant 0 : i32
    %c0_i32_1 = arith.constant 0 : i32
    return %c0_i32, %c0_i32_0 : i32, i32
  }
  func.func @transform_2(%arg0: i32) -> (i32, i32) {
    %c0_i32 = arith.constant 0 : i32
    %c0_i32_0 = arith.constant 0 : i32
    %c0_i32_1 = arith.constant 0 : i32
    return %c0_i32, %c0_i32_0 : i32, i32
  }
  func.func @transform_3(%arg0: i32) -> (i32, i32) {
    %c0_i32 = arith.constant 0 : i32
    %c0_i32_0 = arith.constant 0 : i32
    %c0_i32_1 = arith.constant 0 : i32
    return %c0_i32, %c0_i32_0 : i32, i32
  }
  func.func @transform_4(%arg0: i32) -> (i32, i32, i32) {
    %c0_i32 = arith.constant 0 : i32
    %c0_i32_0 = arith.constant 0 : i32
    %c0_i32_1 = arith.constant 0 : i32
    return %arg0, %c0_i32, %c0_i32_0 : i32, i32, i32
  }
}

</mosaic_0001>

<bundles_post_ra>
// kernel: tpu_custom_call.1
= control target key start
LH: loop header
LB: loop body
LE: loop exit
PB: predicated region body
PF: predicated region fallthrough
CT: control target
= control target key end

     0   :  { %9 = vsyncpa [#allocation3], 0  ;;  %s7926_s0 = inlined_call_operand.vmem [shape: bf16[2,32,256], index: 0, kind: input, shape index: {}]   ;;  %s7927_s1 = inlined_call_operand.vmem [shape: bf16[384,32], index: 1, kind: input, shape index: {}]   ;;  %s7928_s2 = inlined_call_operand.vmem [shape: bf16[32,128], index: 2, kind: input, shape index: {}]   ;;  %s7929_s3 = inlined_call_operand.vmem [shape: f32[32,1], index: 3, kind: input, shape index: {}]   ;;  %s7930_s4 = inlined_call_operand.hbm [shape: f32[2,32,256], index: 4, kind: output, shape index: {}]  }
   0x1   :  { %11 = vsyncpa [#allocation3 + $0x1], 0  ;;  %s4637_s15 = smov 0   ;;  %s4639_s16 = smov 0  }
   0x2   :  { %s4641_s17 = smov 0   ;;  %s4643_s18 = smov 0  }
   0x3 LB: > { %s4658_s19 = sadd.s32 4294967295, %s4606_s18   ;;  %s3808_s20 = sadd.s32 4294967294, %s4606_s18   ;;  %s4606_s18 = sphi %s4643_s18, %s8783_s18   ;;  %s4602_s17 = sphi %s4641_s17, %s8782_s17   ;;  %s4598_s16 = sphi %s4639_s16, %s8781_s16   ;;  %s4594_s15 = sphi %s4637_s15, %s8780_s15  }
   0x4   : > { %s4662_s21 = sadd.s32 1, %s4606_s18   ;;  %s113_s22 = sadd.s32 1, %s4602_s17 }
   0x5   : > { %s110_s23 = ssub.s32 %s4606_s18, %s4662_s21  ;;  %p123_p0 = scmp.ne.s32.totalorder %s4602_s17, %s4598_s16 }
   0x6   : > { %p111_p1 = scmp.eq.s32.totalorder %s110_s23, 0  ;;  %p124_p2 = scmp.eq.s32.totalorder %s4658_s19, 1 }
   0x7   : > { %p129_p3 = scmp.ne.s32.totalorder %s4598_s16, %s4594_s15  ;;  %p130_p4 = scmp.eq.s32.totalorder %s3808_s20, 1 }
   0x8   : > { %s4673_s24 = scalar_select %p111_p1, %s4602_s17, %s113_s22  }
   0x9   : > { %p4675_p5 = por %p124_p2, %p123_p0  ;;  %p4679_p6 = por %p130_p4, %p129_p3 }
   0xa   : > { %p3811_p7 = scmp.ge.s32.totalorder %s4606_s18, 1  ;;  %p165_p8 = scmp.lt.s32.totalorder %s4606_s18, 3 }
   0xc   : > { %p166_p9 = pnand %p3811_p7, %p165_p8 }
   0xe   : > { %169 = sbr.rel (%p166_p9) target bundleno = 2829 (0xb0d), region = 36 }
  0x15   : > { %p191_p10 = scmp.lt.s32.totalorder %s4658_s19, 1  ;;  %v7931_v0 = vmov 0   ;;  %v3990_v5 = vld [vmem:[%s7927_s1] sm:$0xff]   ;;  %vm389_vm0 = vcmask 261120   ;;  %v3991_v6 = vld [vmem:[%s7927_s1 + $0x8] sm:$0xff]   ;;  %v3992_v7 = vld [vmem:[%s7927_s1 + $0x10] sm:$0xff]  }
  0x16   : > { %494 = vmatprep.mubr.bf16.mxu0 %v7931_v0  ;;  %895 = vmatprep.mubr.bf16.mxu1 %v7931_v0  ;;  %v3993_v8 = vld [vmem:[%s7927_s1 + $0x18] sm:$0xff]   ;;  %v3994_v9 = vld [vmem:[%s7927_s1 + $0x20] sm:$0xff]   ;;  %v3995_v10 = vld [vmem:[%s7927_s1 + $0x28] sm:$0xff]   ;;  %s188_s20 = sand.u32 1, %s4598_s16   ;;  %s4609_s7 = smov [#allocation2]  }
  0x17   : > { %s192_s27 = scalar_select %p191_p10, %s4658_s19, 1  ;;  %v3996_v11 = vld [vmem:[%s7927_s1 + $0x30] sm:$0xff]   ;;  %v3997_v12 = vld [vmem:[%s7927_s1 + $0x38] sm:$0xff]   ;;  %v3998_v13 = vld [vmem:[%s7927_s1 + $0x40] sm:$0xff]  }
  0x18   : > { %v3999_v14 = vld [vmem:[%s7927_s1 + $0x48] sm:$0xff]   ;;  %s3812_s22 = sshll.u32 %s188_s20, 6  ;;  %s4548_s8 = sshll.u32 %s4609_s7, 4  ;;  %s4549_s8 = int_to_ptr.vmem [resolvable:$false] %s4548_s8 }
  0x19   : > { %s3938_s28 = sshll.u32 %s192_s27, 5  ;;  %s190_s23 = scalar_lea.vmem [#allocation2], %s3812_s22 }
  0x1a   : > { %s195_s5 = scalar_lea.vmem %s7926_s0, %s3938_s28  ;;  %s3939_s27 = sshll.u32 %s4658_s19, 10 }
  0x1b   : > { %v3984_v1 = vld [vmem:[%s195_s5 + $0x4] ss:$8 sps:$4 sm:$0xff]   ;;  %v3986_v2 = vld [vmem:[%s195_s5] ss:$8 sps:$4 sm:$0xff]   ;;  %v3987_v3 = vld [vmem:[%s195_s5 + $0x14] ss:$8 sps:$4 sm:$0xff]  }
  0x1c   : > { %462 = vmatprep.subr.bf16.mxu0 %v3984_v1  ;;  %v3989_v4 = vld [vmem:[%s195_s5 + $0x10] ss:$8 sps:$4 sm:$0xff]   ;;  %s3746_s28 = sshll.u32 %s190_s23, 4  ;;  %s7879_s5 = scalar_lea.hbm %s7930_s4, %s3939_s27  ;;  %s7881_s28 = int_to_ptr.vmem [resolvable:$true] %s3746_s28 }
  0x1d   : > { %463 = vmatpush1.bf16.msra.mxu0 %v3986_v2  ;;  %s7885_s19 = scalar_lea.sflag [#allocation3], %s188_s20  ;;  %s4544_s6 = scalar_lea.vmem %s7881_s28, 1024 }
  0x1e   : > { %464 = vmatprep.subr.bf16.mxu0 %v3987_v3  ;;  %p4545_p11 = scmp.ne.s32.totalorder %s7881_s28, %s4544_s6  ;;  %s4550_s9 = scalar_lea.vmem %s4549_s8, 2048 }
  0x1f   : > { %p4551_p0 = scmp.lt.s32.totalorder %s7881_s28, %s4549_s8  ;;  %p4552_p1 = scmp.lt.s32.totalorder %s4550_s9, %s4544_s6 }
  0x20   : > { %p4546_p12 = pnand %p4545_p11, %p4675_p5 }
  0x21   : > { %465 = vmatpush1.bf16.msra.mxu0 %v3989_v4  ;;  %p4553_p2 = por %p4552_p1, %p4551_p0 }
  0x22   : > { %p4547_p13 = pneg %p4546_p12 }
  0x24   : > { %3843 = vmatmul.mubr.msk.bf16.vlgmr.msra.gmra.mrb[0].mxu0 %vm389_vm0, %v3990_v5  ;;  %p4554_p3 = pnand %p4553_p2, %p4547_p13 }
  0x25   : > { %504 = vmatprep.mubr.bf16.mxu0 %v7931_v0 }
  0x2c   : > { %3844 = vmatmul.mubr.msk.bf16.gmra.mrb[4].mxu0 %vm389_vm0, %v3991_v6 }
  0x2d   : > { %514 = vmatprep.mubr.bf16.mxu0 %v7931_v0 }
  0x34   : > { %3845 = vmatmul.mubr.msk.bf16.gmra.mrb[8].mxu0 %vm389_vm0, %v3992_v7 }
  0x35   : > { %524 = vmatprep.mubr.bf16.mxu0 %v7931_v0 }
  0x3c   : > { %3846 = vmatmul.mubr.msk.bf16.gmra.mrb[12].mxu0 %vm389_vm0, %v3993_v8 }
  0x3d   : > { %534 = vmatprep.mubr.bf16.mxu0 %v7931_v0 }
  0x44   : > { %3847 = vmatmul.mubr.msk.bf16.gmra.mrb[16].mxu0 %vm389_vm0, %v3994_v9 }
  0x45   : > { %544 = vmatprep.mubr.bf16.mxu0 %v7931_v0 }
  0x4c   : > { %3848 = vmatmul.mubr.msk.bf16.gmra.mrb[20].mxu0 %vm389_vm0, %v3995_v10 }
  0x4d   : > { %554 = vmatprep.mubr.bf16.mxu0 %v7931_v0 }
  0x54   : > { %3849 = vmatmul.mubr.msk.bf16.gmra.mrb[24].mxu0 %vm389_vm0, %v3996_v11 }
  0x55   : > { %564 = vmatprep.mubr.bf16.mxu0 %v7931_v0 }
  0x5c   : > { %3850 = vmatmul.mubr.msk.bf16.gmra.mrb[28].mxu0 %vm389_vm0, %v3997_v12  ;;  %v4000_v12 = vld [vmem:[%s7927_s1 + $0x50] sm:$0xff]  }
  0x5d   : > { %574 = vmatprep.mubr.bf16.mxu0 %v7931_v0 }
  0x64   : > { %3851 = vmatmul.mubr.msk.bf16.gmra.mrb[32].mxu0 %vm389_vm0, %v3998_v13  ;;  %v4001_v13 = vld [vmem:[%s7927_s1 + $0x58] sm:$0xff]  }
  0x65   : > { %584 = vmatprep.mubr.bf16.mxu0 %v7931_v0 }
  0x6c   : > { %3852 = vmatmul.mubr.msk.bf16.gmra.mrb[36].mxu0 %vm389_vm0, %v3999_v14 }
  0x6d   : > { %594 = vmatprep.mubr.bf16.mxu0 %v7931_v0 }
  0x74   : > { %3853 = vmatmul.mubr.msk.bf16.gmra.mrb[40].mxu0 %vm389_vm0, %v4000_v12 }
  0x75   : > { %604 = vmatprep.mubr.bf16.mxu0 %v7931_v0 }
  0x7c   : > { %3854 = vmatmul.mubr.msk.bf16.gmra.mrb[44].mxu0 %vm389_vm0, %v4001_v13 }
  0x7d   : > { %614 = vmatprep.mubr.bf16.mxu0 %v7931_v0 }
  0xf7   : > { %v496_v15 = vpop.f32.mrb[0].mxu0 }
  0xf8   : > { %v498_v16 = vpop.f32.mrb[1].mxu0 }
  0xf9   : > { %v500_v17 = vpop.f32.mrb[2].mxu0 }
  0xfa   : > { %v735_v18 = vpack.c.bf16 %v500_v17, %v496_v15  ;;  %v502_v19 = vpop.f32.mrb[3].mxu0 }
  0xfb   : > { %v736_v20 = vpack.c.bf16 %v502_v19, %v498_v16  ;;  %v4002_v16 = vld [vmem:[%s7927_s1 + $0x60] sm:$0xff]  }
  0xfc   : > { %3855 = vmatmul.mubr.msk.bf16.gmra.mrb[48].mxu0 %vm389_vm0, %v4002_v16 }
  0xfd   : > { %863 = vmatprep.subr.bf16.mxu1 %v736_v20  ;;  %624 = vmatprep.mubr.bf16.mxu0 %v7931_v0  ;;  %v4004_v20 = vld [vmem:[%s7927_s1 + $0x70] sm:$0xff]  }
  0xfe   : > { %864 = vmatpush1.bf16.msra.mxu1 %v735_v18  ;;  %v4003_v18 = vld [vmem:[%s7927_s1 + $0x68] sm:$0xff]  }
  0xff   : > { %v506_v21 = vpop.f32.mrb[4].mxu0 }
 0x100   : > { %v508_v22 = vpop.f32.mrb[5].mxu0 }
 0x101   : > { %v510_v23 = vpop.f32.mrb[6].mxu0 }
 0x102   : > { %v737_v24 = vpack.c.bf16 %v510_v23, %v506_v21  ;;  %v512_v25 = vpop.f32.mrb[7].mxu0 }
 0x103   : > { %v738_v26 = vpack.c.bf16 %v512_v25, %v508_v22  ;;  %v4005_v22 = vld [vmem:[%s7927_s1 + $0x78] sm:$0xff]  }
 0x104   : > { %3856 = vmatmul.mubr.msk.bf16.gmra.mrb[52].mxu0 %vm389_vm0, %v4003_v18 }
 0x105   : > { %865 = vmatprep.subr.bf16.mxu1 %v738_v26  ;;  %634 = vmatprep.mubr.bf16.mxu0 %v7931_v0 }
 0x106   : > { %866 = vmatpush1.bf16.msra.mxu1 %v737_v24  ;;  %v4006_v24 = vld [vmem:[%s7927_s1 + $0x80] sm:$0xff]  }
 0x107   : > { %v4742_v27 = vpop.f32.mrb[8].mxu0 }
 0x108   : > { %8171 = vst [vmem:[#allocation5_spill] sm:$0xff] %v4742_v27  ;;  %v4744_v28 = vpop.f32.mrb[9].mxu0 }
 0x109   : > { %8172 = vst [vmem:[#allocation6_spill] sm:$0xff] %v4744_v28  ;;  %v4746_v29 = vpop.f32.mrb[10].mxu0 }
 0x10a   : > { %8173 = vst [vmem:[#allocation7_spill] sm:$0xff] %v4746_v29  ;;  %v4750_v31 = vpop.f32.mrb[11].mxu0 }
 0x10b   : > { %8174 = vst [vmem:[#allocation8_spill] sm:$0xff] %v4750_v31 }
 0x10c   : > { %3857 = vmatmul.mubr.msk.bf16.gmra.mrb[56].mxu0 %vm389_vm0, %v4004_v20 }
 0x10d   : > { %644 = vmatprep.mubr.bf16.mxu0 %v7931_v0 }
 0x10f   : > { %v4754_v33 = vpop.f32.mrb[12].mxu0 }
 0x110   : > { %8175 = vst [vmem:[#allocation9_spill] sm:$0xff] %v4754_v33  ;;  %v4756_v34 = vpop.f32.mrb[13].mxu0 }
 0x111   : > { %8176 = vst [vmem:[#allocation10_spill] sm:$0xff] %v4756_v34  ;;  %v4758_v35 = vpop.f32.mrb[14].mxu0 }
 0x112   : > { %8177 = vst [vmem:[#allocation11_spill] sm:$0xff] %v4758_v35  ;;  %v4762_v37 = vpop.f32.mrb[15].mxu0 }
 0x113   : > { %8178 = vst [vmem:[#allocation12_spill] sm:$0xff] %v4762_v37 }
 0x114   : > { %3858 = vmatmul.mubr.msk.bf16.gmra.mrb[60].mxu0 %vm389_vm0, %v4005_v22 }
 0x115   : > { %654 = vmatprep.mubr.bf16.mxu0 %v7931_v0 }
 0x117   : > { %v4766_v39 = vpop.f32.mrb[16].mxu0 }
 0x118   : > { %8179 = vst [vmem:[#allocation13_spill] sm:$0xff] %v4766_v39  ;;  %v4768_v40 = vpop.f32.mrb[17].mxu0 }
 0x119   : > { %8180 = vst [vmem:[#allocation14_spill] sm:$0xff] %v4768_v40  ;;  %v4770_v41 = vpop.f32.mrb[18].mxu0 }
 0x11a   : > { %8181 = vst [vmem:[#allocation15_spill] sm:$0xff] %v4770_v41  ;;  %v4774_v43 = vpop.f32.mrb[19].mxu0 }
 0x11b   : > { %8182 = vst [vmem:[#allocation16_spill] sm:$0xff] %v4774_v43 }
 0x11c   : > { %3859 = vmatmul.mubr.msk.bf16.gmra.mrb[64].mxu0 %vm389_vm0, %v4006_v24 }
 0x11d   : > { %664 = vmatprep.mubr.bf16.mxu0 %v7931_v0 }
 0x11f   : > { %v4778_v45 = vpop.f32.mrb[20].mxu0 }
 0x120   : > { %8183 = vst [vmem:[#allocation17_spill] sm:$0xff] %v4778_v45  ;;  %v4780_v46 = vpop.f32.mrb[21].mxu0 }
 0x121   : > { %8184 = vst [vmem:[#allocation18_spill] sm:$0xff] %v4780_v46  ;;  %v4782_v47 = vpop.f32.mrb[22].mxu0 }
 0x122   : > { %8185 = vst [vmem:[#allocation19_spill] sm:$0xff] %v4782_v47  ;;  %v4786_v49 = vpop.f32.mrb[23].mxu0 }
 0x123   : > { %8186 = vst [vmem:[#allocation20_spill] sm:$0xff] %v4786_v49 }
 0x127   : > { %v4790_v51 = vpop.f32.mrb[24].mxu0 }
 0x128   : > { %8187 = vst [vmem:[#allocation21_spill] sm:$0xff] %v4790_v51  ;;  %v4792_v52 = vpop.f32.mrb[25].mxu0 }
 0x129   : > { %8188 = vst [vmem:[#allocation22_spill] sm:$0xff] %v4792_v52  ;;  %v4794_v53 = vpop.f32.mrb[26].mxu0 }
 0x12a   : > { %8189 = vst [vmem:[#allocation23_spill] sm:$0xff] %v4794_v53  ;;  %v4798_v55 = vpop.f32.mrb[27].mxu0 }
 0x12b   : > { %8190 = vst [vmem:[#allocation24_spill] sm:$0xff] %v4798_v55 }
 0x12f   : > { %v4802_v57 = vpop.f32.mrb[28].mxu0 }
 0x130   : > { %8191 = vst [vmem:[#allocation25_spill] sm:$0xff] %v4802_v57  ;;  %v4804_v58 = vpop.f32.mrb[29].mxu0 }
 0x131   : > { %8192 = vst [vmem:[#allocation26_spill] sm:$0xff] %v4804_v58  ;;  %v4806_v59 = vpop.f32.mrb[30].mxu0 }
 0x132   : > { %8193 = vst [vmem:[#allocation27_spill] sm:$0xff] %v4806_v59  ;;  %v4810_v61 = vpop.f32.mrb[31].mxu0 }
 0x133   : > { %8194 = vst [vmem:[#allocation28_spill] sm:$0xff] %v4810_v61 }
 0x137   : > { %v576_v63 = vpop.f32.mrb[32].mxu0 }
 0x138   : > { %v578_v1 = vpop.f32.mrb[33].mxu0 }
 0x139   : > { %v580_v2 = vpop.f32.mrb[34].mxu0 }
 0x13a   : > { %v582_v3 = vpop.f32.mrb[35].mxu0  ;;  %v751_v4 = vpack.c.bf16 %v580_v2, %v576_v63 }
 0x13b   : > { %v752_v5 = vpack.c.bf16 %v582_v3, %v578_v1 }
 0x13c   : > { %783 = vxpose.xlu0.c.b16.start [1/2] (short) %v751_v4, 128  ;;  %v4007_v4 = vld [vmem:[%s7927_s1 + $0x88] sm:$0xff]  }
 0x13d   : > { %799 = vxpose.xlu1.c.b16.start [1/2] (short) %v752_v5, 128  ;;  %3860 = vmatmul.mubr.msk.bf16.gmra.mrb[68].mxu0 %vm389_vm0, %v4007_v4 }
 0x13e   : > { %674 = vmatprep.mubr.bf16.mxu0 %v7931_v0 }
 0x13f   : > { %v586_v6 = vpop.f32.mrb[36].mxu0 }
 0x140   : > { %v588_v7 = vpop.f32.mrb[37].mxu0 }
 0x141   : > { %v590_v8 = vpop.f32.mrb[38].mxu0 }
 0x142   : > { %v753_v9 = vpack.c.bf16 %v590_v8, %v586_v6  ;;  %v592_v10 = vpop.f32.mrb[39].mxu0 }
 0x143   : > { %v754_v11 = vpack.c.bf16 %v592_v10, %v588_v7 }
 0x144   : > { %784 = vxpose.xlu0.c.b16.end [2/2] (short) %v753_v9, 128 }
 0x145   : > { %800 = vxpose.xlu1.c.b16.end [2/2] (short) %v754_v11, 128 }
 0x147   : > { %v4885_v9 = vpop.f32.mrb[40].mxu0 }
 0x148   : > { %v598_v60 = vpop.f32.mrb[41].mxu0 }
 0x149   : > { %v600_v51 = vpop.f32.mrb[42].mxu0 }
 0x1a6   : > { %v791_v14 = vpop.trf.xlu0 }
 0x1a7   : > { %3867 = vmatmul.mubr.msk.bf16.vlgmr.msra.gmra.mrb[0].mxu1 %vm389_vm0, %v791_v14  ;;  %v807_v63 = vpop.trf.xlu1 }
 0x1a8   : > { %905 = vmatprep.mubr.bf16.mxu1 %v7931_v0 }
 0x1aa   : > { %v792_v15 = vpop.trf.xlu0 }
 0x1ab   : > { %v808_v1 = vpop.trf.xlu1 }
 0x1ae   : > { %v793_v17 = vpop.trf.xlu0 }
 0x1af   : > { %3868 = vmatmul.mubr.msk.bf16.gmra.mrb[4].mxu1 %vm389_vm0, %v792_v15  ;;  %v809_v2 = vpop.trf.xlu1 }
 0x1b0   : > { %915 = vmatprep.mubr.bf16.mxu1 %v7931_v0 }
 0x1b2   : > { %v794_v19 = vpop.trf.xlu0 }
 0x1b3   : > { %v810_v3 = vpop.trf.xlu1 }
 0x1b6   : > { %v795_v21 = vpop.trf.xlu0 }
 0x1b7   : > { %3869 = vmatmul.mubr.msk.bf16.gmra.mrb[8].mxu1 %vm389_vm0, %v793_v17  ;;  %v811_v5 = vpop.trf.xlu1 }
 0x1b8   : > { %925 = vmatprep.mubr.bf16.mxu1 %v7931_v0 }
 0x1ba   : > { %v796_v23 = vpop.trf.xlu0 }
 0x1bb   : > { %v812_v6 = vpop.trf.xlu1 }
 0x1be   : > { %v797_v25 = vpop.trf.xlu0 }
 0x1bf   : > { %3870 = vmatmul.mubr.msk.bf16.gmra.mrb[12].mxu1 %vm389_vm0, %v794_v19  ;;  %v813_v7 = vpop.trf.xlu1 }
 0x1c0   : > { %935 = vmatprep.mubr.bf16.mxu1 %v7931_v0 }
 0x1c2   : > { %v798_v26 = vpop.trf.xlu0 }
 0x1c3   : > { %v814_v8 = vpop.trf.xlu1 }
 0x1c7   : > { %3871 = vmatmul.mubr.msk.bf16.gmra.mrb[16].mxu1 %vm389_vm0, %v795_v21 }
 0x1c8   : > { %945 = vmatprep.mubr.bf16.mxu1 %v7931_v0 }
 0x1cf   : > { %3872 = vmatmul.mubr.msk.bf16.gmra.mrb[20].mxu1 %vm389_vm0, %v796_v23 }
 0x1d0   : > { %955 = vmatprep.mubr.bf16.mxu1 %v7931_v0 }
 0x1d7   : > { %3873 = vmatmul.mubr.msk.bf16.gmra.mrb[24].mxu1 %vm389_vm0, %v797_v25 }
 0x1d8   : > { %965 = vmatprep.mubr.bf16.mxu1 %v7931_v0 }
 0x1df   : > { %3874 = vmatmul.mubr.msk.bf16.gmra.mrb[28].mxu1 %vm389_vm0, %v798_v26 }
 0x1e0   : > { %975 = vmatprep.mubr.bf16.mxu1 %v7931_v0 }
 0x1e7   : > { %3875 = vmatmul.mubr.msk.bf16.gmra.mrb[32].mxu1 %vm389_vm0, %v807_v63 }
 0x1e8   : > { %985 = vmatprep.mubr.bf16.mxu1 %v7931_v0 }
 0x1ef   : > { %3876 = vmatmul.mubr.msk.bf16.gmra.mrb[36].mxu1 %vm389_vm0, %v808_v1 }
 0x1f0   : > { %995 = vmatprep.mubr.bf16.mxu1 %v7931_v0 }
 0x1f7   : > { %3877 = vmatmul.mubr.msk.bf16.gmra.mrb[40].mxu1 %vm389_vm0, %v809_v2 }
 0x1f8   : > { %1005 = vmatprep.mubr.bf16.mxu1 %v7931_v0 }
 0x1ff   : > { %3878 = vmatmul.mubr.msk.bf16.gmra.mrb[44].mxu1 %vm389_vm0, %v810_v3 }
 0x200   : > { %1015 = vmatprep.mubr.bf16.mxu1 %v7931_v0 }
 0x207   : > { %3879 = vmatmul.mubr.msk.bf16.gmra.mrb[48].mxu1 %vm389_vm0, %v811_v5 }
 0x208   : > { %1025 = vmatprep.mubr.bf16.mxu1 %v7931_v0 }
 0x20f   : > { %3880 = vmatmul.mubr.msk.bf16.gmra.mrb[52].mxu1 %vm389_vm0, %v812_v6 }
 0x210   : > { %1035 = vmatprep.mubr.bf16.mxu1 %v7931_v0 }
 0x217   : > { %3881 = vmatmul.mubr.msk.bf16.gmra.mrb[56].mxu1 %vm389_vm0, %v813_v7 }
 0x218   : > { %1045 = vmatprep.mubr.bf16.mxu1 %v7931_v0 }
 0x21f   : > { %3882 = vmatmul.mubr.msk.bf16.gmra.mrb[60].mxu1 %vm389_vm0, %v814_v8 }
 0x27a   : > { %v4887_v10 = vpop.f32.mrb[0].mxu1 }
 0x27b   : > { %v4889_v11 = vpop.f32.mrb[1].mxu1 }
 0x27c   : > { %v4891_v12 = vpop.f32.mrb[2].mxu1 }
 0x27d   : > { %v4893_v13 = vpop.f32.mrb[3].mxu1 }
 0x282   : > { %v4895_v14 = vpop.f32.mrb[4].mxu1 }
 0x283   : > { %v1056_v15 = vmax.f32 %v4887_v10, %v4895_v14  ;;  %v4899_v16 = vpop.f32.mrb[5].mxu1 }
 0x284   : > { %v1093_v17 = vmax.f32 %v4889_v11, %v4899_v16  ;;  %v4903_v18 = vpop.f32.mrb[6].mxu1 }
 0x285   : > { %v1057_v19 = vmax.f32 %v4891_v12, %v4903_v18  ;;  %v4907_v20 = vpop.f32.mrb[7].mxu1 }
 0x286   : > { %v1094_v21 = vmax.f32 %v4893_v13, %v4907_v20 }
 0x28a   : > { %v4911_v22 = vpop.f32.mrb[8].mxu1 }
 0x28b   : > { %v1058_v23 = vmax.f32 %v1056_v15, %v4911_v22  ;;  %v4914_v24 = vpop.f32.mrb[9].mxu1 }
 0x28c   : > { %v1095_v25 = vmax.f32 %v1093_v17, %v4914_v24  ;;  %v4917_v26 = vpop.f32.mrb[10].mxu1 }
 0x28d   : > { %v1059_v63 = vmax.f32 %v1057_v19, %v4917_v26  ;;  %v4920_v1 = vpop.f32.mrb[11].mxu1 }
 0x28e   : > { %v1096_v2 = vmax.f32 %v1094_v21, %v4920_v1 }
 0x292   : > { %v4923_v3 = vpop.f32.mrb[12].mxu1 }
 0x293   : > { %v1060_v4 = vmax.f32 %v1058_v23, %v4923_v3  ;;  %v4926_v5 = vpop.f32.mrb[13].mxu1 }
 0x294   : > { %v1097_v6 = vmax.f32 %v1095_v25, %v4926_v5  ;;  %v4929_v7 = vpop.f32.mrb[14].mxu1 }
 0x295   : > { %v1061_v8 = vmax.f32 %v1059_v63, %v4929_v7  ;;  %v4932_v15 = vpop.f32.mrb[15].mxu1 }
 0x296   : > { %v1098_v17 = vmax.f32 %v1096_v2, %v4932_v15 }
 0x29a   : > { %v4935_v19 = vpop.f32.mrb[16].mxu1 }
 0x29b   : > { %v1062_v21 = vmax.f32 %v1060_v4, %v4935_v19  ;;  %v4938_v62 = vpop.f32.mrb[17].mxu1 }
 0x29c   : > { %v1099_v23 = vmax.f32 %v1097_v6, %v4938_v62  ;;  %v4941_v54 = vpop.f32.mrb[18].mxu1 }
 0x29d   : > { %v1063_v25 = vmax.f32 %v1061_v8, %v4941_v54  ;;  %v4944_v56 = vpop.f32.mrb[19].mxu1 }
 0x29e   : > { %v1100_v63 = vmax.f32 %v1098_v17, %v4944_v56 }
 0x2a2   : > { %v4947_v48 = vpop.f32.mrb[20].mxu1 }
 0x2a3   : > { %v1064_v2 = vmax.f32 %v1062_v21, %v4947_v48  ;;  %v4950_v50 = vpop.f32.mrb[21].mxu1 }
 0x2a4   : > { %8195 = vst [vmem:[#allocation29_spill] sm:$0xff] %v4950_v50  ;;  %v1101_v4 = vmax.f32 %v1099_v23, %v4950_v50  ;;  %v4953_v42 = vpop.f32.mrb[22].mxu1 }
 0x2a5   : > { %v1065_v6 = vmax.f32 %v1063_v25, %v4953_v42  ;;  %v4956_v44 = vpop.f32.mrb[23].mxu1 }
 0x2a6   : > { %8196 = vst [vmem:[#allocation30_spill] sm:$0xff] %v4956_v44  ;;  %v1102_v8 = vmax.f32 %v1100_v63, %v4956_v44 }
 0x2aa   : > { %v4959_v36 = vpop.f32.mrb[24].mxu1 }
 0x2ab   : > { %v1066_v17 = vmax.f32 %v1064_v2, %v4959_v36  ;;  %v4962_v38 = vpop.f32.mrb[25].mxu1 }
 0x2ac   : > { %8197 = vst [vmem:[#allocation31_spill] sm:$0xff] %v4962_v38  ;;  %v1103_v21 = vmax.f32 %v1101_v4, %v4962_v38  ;;  %v4965_v30 = vpop.f32.mrb[26].mxu1 }
 0x2ad   : > { %v1067_v23 = vmax.f32 %v1065_v6, %v4965_v30  ;;  %v4968_v32 = vpop.f32.mrb[27].mxu1 }
 0x2ae   : > { %8198 = vst [vmem:[#allocation32_spill] sm:$0xff] %v4968_v32  ;;  %v1104_v25 = vmax.f32 %v1102_v8, %v4968_v32 }
 0x2b2   : > { %v4971_v0 = vpop.f32.mrb[28].mxu1 }
 0x2b3   : > { %v1068_v63 = vmax.f32 %v1066_v17, %v4971_v0  ;;  %v4974_v57 = vpop.f32.mrb[29].mxu1  ;;  %v602_v17 = vpop.f32.mrb[43].mxu0 }
 0x2b4   : > { %8199 = vst [vmem:[#allocation33_spill] sm:$0xff] %v4974_v57  ;;  %v1105_v2 = vmax.f32 %v1103_v21, %v4974_v57  ;;  %v4977_v59 = vpop.f32.mrb[30].mxu1  ;;  %v755_v21 = vpack.c.bf16 %v600_v51, %v4885_v9  ;;  %v756_v45 = vpack.c.bf16 %v602_v17, %v598_v60  ;;  %v606_v46 = vpop.f32.mrb[44].mxu0 }
 0x2b5   : > { %v1069_v4 = vmax.f32 %v1067_v23, %v4977_v59  ;;  %v4980_v58 = vpop.f32.mrb[31].mxu1 }
 0x2b6   : > { %8200 = vst [vmem:[#allocation34_spill] sm:$0xff] %v4980_v58  ;;  %v1106_v6 = vmax.f32 %v1104_v25, %v4980_v58  ;;  %1495 = vxpose.xlu0.c.b16.start [1/2] (short) %v755_v21, 128  ;;  %1511 = vxpose.xlu1.c.b16.start [1/2] (short) %v756_v45, 128 }
 0x2ba   : > { %v4983_v61 = vpop.f32.mrb[32].mxu1 }
 0x2bb   : > { %v1070_v8 = vmax.f32 %v1068_v63, %v4983_v61  ;;  %v4986_v53 = vpop.f32.mrb[33].mxu1  ;;  %v608_v63 = vpop.f32.mrb[45].mxu0 }
 0x2bc   : > { %8201 = vst [vmem:[#allocation35_spill] sm:$0xff] %v4986_v53  ;;  %v1107_v52 = vmax.f32 %v1105_v2, %v4986_v53  ;;  %v4989_v55 = vpop.f32.mrb[34].mxu1  ;;  %v610_v39 = vpop.f32.mrb[46].mxu0 }
 0x2bd   : > { %v1071_v23 = vmax.f32 %v1069_v4, %v4989_v55  ;;  %v4993_v47 = vpop.f32.mrb[35].mxu1  ;;  %v612_v40 = vpop.f32.mrb[47].mxu0  ;;  %v757_v9 = vpack.c.bf16 %v610_v39, %v606_v46 }
 0x2be   : > { %8202 = vst [vmem:[#allocation36_spill] sm:$0xff] %v4993_v47  ;;  %v1108_v25 = vmax.f32 %v1106_v6, %v4993_v47  ;;  %v758_v4 = vpack.c.bf16 %v612_v40, %v608_v63 }
 0x2bf   : > { %1496 = vxpose.xlu0.c.b16.end [2/2] (short) %v757_v9, 128 }
 0x2c0   : > { %1512 = vxpose.xlu1.c.b16.end [2/2] (short) %v758_v4, 128 }
 0x2c2   : > { %v4996_v49 = vpop.f32.mrb[36].mxu1 }
 0x2c3   : > { %v1072_v2 = vmax.f32 %v1070_v8, %v4996_v49  ;;  %v4999_v41 = vpop.f32.mrb[37].mxu1 }
 0x2c4   : > { %8203 = vst [vmem:[#allocation37_spill] sm:$0xff] %v4999_v41  ;;  %v1109_v51 = vmax.f32 %v1107_v52, %v4999_v41  ;;  %v5002_v60 = vpop.f32.mrb[38].mxu1 }
 0x2c5   : > { %v1073_v6 = vmax.f32 %v1071_v23, %v5002_v60  ;;  %v5005_v17 = vpop.f32.mrb[39].mxu1 }
 0x2c6   : > { %8204 = vst [vmem:[#allocation38_spill] sm:$0xff] %v5005_v17  ;;  %v1110_v45 = vmax.f32 %v1108_v25, %v5005_v17 }
 0x2ca   : > { %v5008_v21 = vpop.f32.mrb[40].mxu1 }
 0x2cb   : > { %v1074_v8 = vmax.f32 %v1072_v2, %v5008_v21  ;;  %v5011_v43 = vpop.f32.mrb[41].mxu1 }
 0x2cc   : > { %8205 = vst [vmem:[#allocation39_spill] sm:$0xff] %v5011_v43  ;;  %v1111_v52 = vmax.f32 %v1109_v51, %v5011_v43  ;;  %v5014_v33 = vpop.f32.mrb[42].mxu1 }
 0x2cd   : > { %v1075_v39 = vmax.f32 %v1073_v6, %v5014_v33  ;;  %v5017_v40 = vpop.f32.mrb[43].mxu1 }
 0x2ce   : > { %8206 = vst [vmem:[#allocation40_spill] sm:$0xff] %v5017_v40  ;;  %v1112_v46 = vmax.f32 %v1110_v45, %v5017_v40 }
 0x2d2   : > { %v5020_v23 = vpop.f32.mrb[44].mxu1 }
 0x2d3   : > { %v1076_v25 = vmax.f32 %v1074_v8, %v5020_v23  ;;  %v5023_v63 = vpop.f32.mrb[45].mxu1 }
 0x2d4   : > { %8207 = vst [vmem:[#allocation41_spill] sm:$0xff] %v5023_v63  ;;  %v1113_v2 = vmax.f32 %v1111_v52, %v5023_v63  ;;  %v5026_v9 = vpop.f32.mrb[46].mxu1 }
 0x2d5   : > { %v1077_v51 = vmax.f32 %v1075_v39, %v5026_v9  ;;  %v5029_v4 = vpop.f32.mrb[47].mxu1 }
 0x2d6   : > { %8208 = vst [vmem:[#allocation42_spill] sm:$0xff] %v5029_v4  ;;  %v1114_v6 = vmax.f32 %v1112_v46, %v5029_v4  ;;  %v616_v4 = vpop.f32.mrb[48].mxu0 }
 0x2da   : > { %v5032_v35 = vpop.f32.mrb[48].mxu1 }
 0x2db   : > { %v1078_v45 = vmax.f32 %v1076_v25, %v5032_v35  ;;  %v5035_v34 = vpop.f32.mrb[49].mxu1 }
 0x2dc   : > { %8209 = vst [vmem:[#allocation43_spill] sm:$0xff] %v5035_v34  ;;  %v1115_v8 = vmax.f32 %v1113_v2, %v5035_v34  ;;  %v5038_v37 = vpop.f32.mrb[50].mxu1 }
 0x2dd   : > { %v1079_v52 = vmax.f32 %v1077_v51, %v5038_v37  ;;  %v5041_v27 = vpop.f32.mrb[51].mxu1  ;;  %v618_v51 = vpop.f32.mrb[49].mxu0 }
 0x2de   : > { %8210 = vst [vmem:[#allocation44_spill] sm:$0xff] %v5041_v27  ;;  %v1116_v39 = vmax.f32 %v1114_v6, %v5041_v27  ;;  %v620_v40 = vpop.f32.mrb[50].mxu0 }
 0x2df   : > { %v622_v6 = vpop.f32.mrb[51].mxu0  ;;  %v759_v27 = vpack.c.bf16 %v620_v40, %v616_v4 }
 0x2e0   : > { %v760_v43 = vpack.c.bf16 %v622_v6, %v618_v51  ;;  %v626_v17 = vpop.f32.mrb[52].mxu0 }
 0x2e1   : > { %2207 = vxpose.xlu0.c.b16.start [1/2] (short) %v759_v27, 128 }
 0x2e2   : > { %v5044_v29 = vpop.f32.mrb[52].mxu1  ;;  %2223 = vxpose.xlu1.c.b16.start [1/2] (short) %v760_v43, 128 }
 0x2e3   : > { %v1080_v46 = vmax.f32 %v1078_v45, %v5044_v29  ;;  %v5047_v28 = vpop.f32.mrb[53].mxu1  ;;  %v628_v45 = vpop.f32.mrb[53].mxu0 }
 0x2e4   : > { %8211 = vst [vmem:[#allocation45_spill] sm:$0xff] %v5047_v28  ;;  %v1117_v25 = vmax.f32 %v1115_v8, %v5047_v28  ;;  %v5050_v31 = vpop.f32.mrb[54].mxu1  ;;  %v630_v8 = vpop.f32.mrb[54].mxu0 }
 0x2e5   : > { %v1081_v2 = vmax.f32 %v1079_v52, %v5050_v31  ;;  %v5053_v34 = vpop.f32.mrb[55].mxu1  ;;  %v632_v52 = vpop.f32.mrb[55].mxu0 }
 0x2e6   : > { %8212 = vst [vmem:[#allocation46_spill] sm:$0xff] %v5053_v34  ;;  %v1118_v63 = vmax.f32 %v1116_v39, %v5053_v34  ;;  %v761_v39 = vpack.c.bf16 %v630_v8, %v626_v17  ;;  %v762_v34 = vpack.c.bf16 %v632_v52, %v628_v45 }
 0x2e8   : > { %2208 = vxpose.xlu0.c.b16.end [2/2] (short) %v761_v39, 128  ;;  %2224 = vxpose.xlu1.c.b16.end [2/2] (short) %v762_v34, 128 }
 0x2ea   : > { %v5056_v41 = vpop.f32.mrb[56].mxu1 }
 0x2eb   : > { %v1082_v28 = vmax.f32 %v1080_v46, %v5056_v41  ;;  %v5059_v47 = vpop.f32.mrb[57].mxu1 }
 0x2ec   : > { %8213 = vst [vmem:[#allocation47_spill] sm:$0xff] %v5059_v47  ;;  %v1119_v53 = vmax.f32 %v1117_v25, %v5059_v47  ;;  %v5062_v58 = vpop.f32.mrb[58].mxu1 }
 0x2ed   : > { %v1083_v40 = vmax.f32 %v1081_v2, %v5062_v58  ;;  %v5065_v4 = vpop.f32.mrb[59].mxu1 }
 0x2ee   : > { %8214 = vst [vmem:[#allocation48_spill] sm:$0xff] %v5065_v4  ;;  %v1120_v51 = vmax.f32 %v1118_v63, %v5065_v4 }
 0x2f2   : > { %v5068_v27 = vpop.f32.mrb[60].mxu1 }
 0x2f3   : > { %v1084_v43 = vmax.f32 %v1082_v28, %v5068_v27  ;;  %v5071_v46 = vpop.f32.mrb[61].mxu1 }
 0x2f4   : > { %8215 = vst [vmem:[#allocation49_spill] sm:$0xff] %v5071_v46  ;;  %v1121_v25 = vmax.f32 %v1119_v53, %v5071_v46  ;;  %v5074_v6 = vpop.f32.mrb[62].mxu1  ;;  %v5080_v53 = vpop.f32.mrb[56].mxu0 }
 0x2f5   : > { %v1085_v17 = vmax.f32 %v1083_v40, %v5074_v6  ;;  %v5077_v45 = vpop.f32.mrb[63].mxu1  ;;  %v5082_v44 = vpop.f32.mrb[57].mxu0 }
 0x2f6   : > { %8216 = vst [vmem:[#allocation50_spill] sm:$0xff] %v5077_v45  ;;  %v1122_v2 = vmax.f32 %v1120_v51, %v5077_v45  ;;  %v5086_v50 = vpop.f32.mrb[58].mxu0 }
 0x2f7   : > { %v1086_v8 = vmax.f32 %v1084_v43, %v1085_v17  ;;  %v5090_v43 = vpop.f32.mrb[59].mxu0 }
 0x2f8   : > { %v1123_v63 = vmax.f32 %v1121_v25, %v1122_v2 }
 0x2f9   : > { %v1087_v52 = vrot.slane %v1086_v8, 4 }
 0x2fa   : > { %v1124_v34 = vrot.slane %v1123_v63, 4 }
 0x2fb   : > { %v1088_v39 = vmax.f32 %v1086_v8, %v1087_v52 }
 0x2fc   : > { %v1125_v4 = vmax.f32 %v1123_v63, %v1124_v34 }
 0x2fd   : > { %v1089_v47 = vrot.slane %v1088_v39, 2 }
 0x2fe   : > { %v1126_v28 = vrot.slane %v1125_v4, 2 }
 0x2ff   : > { %v1090_v57 = vmax.f32 %v1088_v39, %v1089_v47 }
 0x300   : > { %v1127_v32 = vmax.f32 %v1125_v4, %v1126_v28 }
 0x301   : > { %v1091_v38 = vrot.slane %v1090_v57, 1 }
 0x302   : > { %v1128_v46 = vrot.slane %v1127_v32, 1 }
 0x303   : > { %v5084_v40 = vmax.f32 %v1090_v57, %v1091_v38  ;;  %v5100_v38 = vpop.f32.mrb[60].mxu0 }
 0x304   : > { %v5088_v51 = vmax.f32 %v1127_v32, %v1128_v46  ;;  %v5110_v46 = vpop.f32.mrb[61].mxu0 }
 0x305   : > { %v1130_v25 = vsub.f32 %v4887_v10, %v5084_v40  ;;  %v1132_v47 = vsub.f32 %v4891_v12, %v5084_v40  ;;  %v1134_v4 = vsub.f32 %v4895_v14, %v5084_v40  ;;  %v1136_v17 = vsub.f32 %v4903_v18, %v5084_v40  ;;  %8217 = vst [vmem:[#allocation51_spill] sm:$0xff] %v5110_v46  ;;  %v5120_v2 = vpop.f32.mrb[62].mxu0 }
 0x306   : > { %v1138_v32 = vsub.f32 %v4911_v22, %v5084_v40  ;;  %v1140_v57 = vsub.f32 %v4917_v26, %v5084_v40  ;;  %v1142_v10 = vsub.f32 %v4923_v3, %v5084_v40  ;;  %v1144_v12 = vsub.f32 %v4929_v7, %v5084_v40  ;;  %v5130_v8 = vpop.f32.mrb[63].mxu0 }
 0x307   : > { %v1146_v14 = vsub.f32 %v4935_v19, %v5084_v40  ;;  %v1148_v18 = vsub.f32 %v4941_v54, %v5084_v40  ;;  %v1150_v22 = vsub.f32 %v4947_v48, %v5084_v40  ;;  %v1152_v26 = vsub.f32 %v4953_v42, %v5084_v40  ;;  %8218 = vst [vmem:[#allocation52_spill] sm:$0xff] %v5130_v8  ;;  %v5140_v63 = vpop.f32.mrb[64].mxu0 }
 0x308   : > { %v1154_v3 = vsub.f32 %v4959_v36, %v5084_v40  ;;  %v1156_v7 = vsub.f32 %v4965_v30, %v5084_v40  ;;  %v1158_v19 = vsub.f32 %v4971_v0, %v5084_v40  ;;  %v1160_v54 = vsub.f32 %v4977_v59, %v5084_v40  ;;  %8219 = vst [vmem:[#allocation53_spill] sm:$0xff] %v5140_v63  ;;  %v5150_v52 = vpop.f32.mrb[65].mxu0 }
 0x309   : > { %v1162_v48 = vsub.f32 %v4983_v61, %v5084_v40  ;;  %v1164_v42 = vsub.f32 %v4989_v55, %v5084_v40  ;;  %v1166_v36 = vsub.f32 %v4996_v49, %v5084_v40  ;;  %v1168_v30 = vsub.f32 %v5002_v60, %v5084_v40  ;;  %8220 = vst [vmem:[#allocation54_spill] sm:$0xff] %v5150_v52  ;;  %v5160_v34 = vpop.f32.mrb[66].mxu0 }
 0x30a   : > { %v1170_v0 = vsub.f32 %v5008_v21, %v5084_v40  ;;  %v1172_v59 = vsub.f32 %v5014_v33, %v5084_v40  ;;  %v1174_v61 = vsub.f32 %v5020_v23, %v5084_v40  ;;  %v1176_v55 = vsub.f32 %v5026_v9, %v5084_v40  ;;  %8221 = vst [vmem:[#allocation55_spill] sm:$0xff] %v5160_v34  ;;  %v5170_v60 = vpop.f32.mrb[67].mxu0 }
 0x30b   : > { %8222 = vst [vmem:[#allocation56_spill] sm:$0xff] %v5170_v60  ;;  %v1194_v21 = vmul.f32 1.442695, %v1130_v25  ;;  %v1198_v49 = vmul.f32 1.442695, %v1132_v47 }
 0x30c   : > { %v1202_v52 = vmul.f32 1.442695, %v1134_v4  ;;  %v1206_v34 = vmul.f32 1.442695, %v1136_v17  ;;  %v1210_v9 = vmul.f32 1.442695, %v1138_v32 }
 0x30d   : > { %4016 = vpow2.f32 %v1194_v21  ;;  %v1214_v63 = vmul.f32 1.442695, %v1140_v57  ;;  %v1218_v39 = vmul.f32 1.442695, %v1142_v10  ;;  %v1222_v28 = vmul.f32 1.442695, %v1144_v12 }
 0x30e   : > { %4018 = vpow2.f32 %v1198_v49  ;;  %v1226_v8 = vmul.f32 1.442695, %v1146_v14  ;;  %v1230_v60 = vmul.f32 1.442695, %v1148_v18  ;;  %v1234_v25 = vmul.f32 1.442695, %v1150_v22 }
 0x30f   : > { %4020 = vpow2.f32 %v1202_v52  ;;  %v1238_v47 = vmul.f32 1.442695, %v1152_v26  ;;  %v1242_v4 = vmul.f32 1.442695, %v1154_v3  ;;  %v1246_v33 = vmul.f32 1.442695, %v1156_v7 }
 0x310   : > { %4022 = vpow2.f32 %v1206_v34  ;;  %v1250_v17 = vmul.f32 1.442695, %v1158_v19  ;;  %v1254_v46 = vmul.f32 1.442695, %v1160_v54  ;;  %v1258_v23 = vmul.f32 1.442695, %v1162_v48 }
 0x311   : > { %4024 = vpow2.f32 %v1210_v9  ;;  %v1262_v21 = vmul.f32 1.442695, %v1164_v42  ;;  %v1266_v32 = vmul.f32 1.442695, %v1166_v36  ;;  %v1270_v57 = vmul.f32 1.442695, %v1168_v30 }
 0x312   : > { %4026 = vpow2.f32 %v1214_v63  ;;  %v5176_v52 = vmul.f32 1.442695, %v1170_v0  ;;  %v5178_v10 = vmul.f32 1.442695, %v1172_v59  ;;  %v5180_v12 = vmul.f32 1.442695, %v1174_v61 }
 0x313   : > { %4028 = vpow2.f32 %v1218_v39  ;;  %v5182_v14 = vmul.f32 1.442695, %v1176_v55  ;;  %v5186_v22 = vpop.f32.mrb[68].mxu0  ;;  %v8225_v0 = vld [vmem:[#allocation29_spill] sm:$0xff]  ;;  %v8226_v61 = vld [vmem:[#allocation30_spill] sm:$0xff]  ;;  %v8227_v9 = vld [vmem:[#allocation31_spill] sm:$0xff] }
 0x314   : > { %4030 = vpow2.f32 %v1222_v28  ;;  %8223 = vst [vmem:[#allocation57_spill] sm:$0xff] %v5186_v22  ;;  %v5194_v19 = vpop.f32.mrb[69].mxu0  ;;  %v8228_v28 = vld [vmem:[#allocation32_spill] sm:$0xff]  ;;  %v8229_v59 = vld [vmem:[#allocation33_spill] sm:$0xff]  ;;  %v8239_v42 = vld [vmem:[#allocation43_spill] sm:$0xff] }
 0x315   : > { %4032 = vpow2.f32 %v1226_v8  ;;  %v5204_v36 = vpop.f32.mrb[70].mxu0  ;;  %v8243_v3 = vld [vmem:[#allocation47_spill] sm:$0xff] }
 0x316   : > { %4034 = vpow2.f32 %v1230_v60  ;;  %8224 = vst [vmem:[#allocation58_spill] sm:$0xff] %v5204_v36  ;;  %v5214_v49 = vpop.f32.mrb[71].mxu0  ;;  %v8285_v22 = vld [vmem:[#allocation39_spill] sm:$0xff] }
 0x317   : > { %v5196_v54 = vpop.eup %4016  ;;  %4036 = vpow2.f32 %v1234_v25 }
 0x318   : > { %v5206_v30 = vpop.eup %4018  ;;  %4038 = vpow2.f32 %v1238_v47 }
 0x319   : > { %v5216_v60 = vpop.eup %4020  ;;  %4040 = vpow2.f32 %v1242_v4  ;;  %v1322_v34 = vadd.f32 %v5206_v30, %v5196_v54 }
 0x31a   : > { %v5224_v47 = vpop.eup %4022  ;;  %4042 = vpow2.f32 %v1246_v33  ;;  %v8242_v33 = vld [vmem:[#allocation46_spill] sm:$0xff] }
 0x31b   : > { %v5232_v8 = vpop.eup %4024  ;;  %4044 = vpow2.f32 %v1250_v17  ;;  %v1323_v39 = vadd.f32 %v5216_v60, %v1322_v34 }
 0x31c   : > { %v5239_v26 = vpop.eup %4026  ;;  %4046 = vpow2.f32 %v1254_v46 }
 0x31d   : > { %v5247_v63 = vpop.eup %4028  ;;  %4048 = vpow2.f32 %v1258_v23  ;;  %v1324_v34 = vadd.f32 %v5224_v47, %v1323_v39  ;;  %v8247_v23 = vsub.f32 %v5038_v37, %v5084_v40 }
 0x31e   : > { %v5254_v7 = vpop.eup %4030  ;;  %4050 = vpow2.f32 %v1262_v21 }
 0x31f   : > { %v5262_v55 = vpop.eup %4032  ;;  %4052 = vpow2.f32 %v1266_v32  ;;  %v1325_v39 = vadd.f32 %v5232_v8, %v1324_v34  ;;  %v8246_v34 = vsub.f32 %v5032_v35, %v5084_v40  ;;  %v1294_v17 = vmul.f32 1.442695, %v8247_v23 }
 0x320   : > { %v5269_v25 = vpop.eup %4034  ;;  %4054 = vpow2.f32 %v1270_v57 }
 0x321   : > { %v5277_v4 = vpop.eup %4036  ;;  %4056 = vpow2.f32 %v5176_v52  ;;  %v1290_v21 = vmul.f32 1.442695, %v8246_v34  ;;  %v1326_v46 = vadd.f32 %v5239_v26, %v1325_v39  ;;  %v8248_v52 = vsub.f32 %v5044_v29, %v5084_v40 }
 0x322   : > { %v5284_v57 = vpop.eup %4038  ;;  %4058 = vpow2.f32 %v5178_v10  ;;  %v8249_v10 = vsub.f32 %v5050_v31, %v5084_v40  ;;  %v8252_v31 = vsub.f32 %v5068_v27, %v5084_v40 }
 0x323   : > { %v5290_v18 = vpop.eup %4040  ;;  %4060 = vpow2.f32 %v5180_v12  ;;  %v1298_v32 = vmul.f32 1.442695, %v8248_v52  ;;  %v1327_v35 = vadd.f32 %v5247_v63, %v1326_v46  ;;  %v8250_v12 = vsub.f32 %v5056_v41, %v5084_v40 }
 0x324   : > { %v5297_v34 = vpop.eup %4042  ;;  %4062 = vpow2.f32 %v5182_v14  ;;  %v1302_v39 = vmul.f32 1.442695, %v8249_v10  ;;  %v8251_v46 = vsub.f32 %v5062_v58, %v5084_v40  ;;  %v8254_v58 = vsub.f32 %v4889_v11, %v5088_v51 }
 0x325   : > { %v5303_v37 = vpop.eup %4044  ;;  %4064 = vpow2.f32 %v1290_v21  ;;  %v1306_v23 = vmul.f32 1.442695, %v8250_v12  ;;  %v1328_v29 = vadd.f32 %v5254_v7, %v1327_v35  ;;  %v1314_v21 = vmul.f32 1.442695, %v8252_v31 }
 0x326   : > { %v5309_v52 = vpop.eup %4046  ;;  %4066 = vpow2.f32 %v1294_v17  ;;  %v1310_v14 = vmul.f32 1.442695, %v8251_v46  ;;  %v8253_v35 = vsub.f32 %v5074_v6, %v5084_v40  ;;  %v1196_v12 = vmul.f32 1.442695, %v8254_v58 }
 0x327   : > { %v5314_v45 = vpop.eup %4048  ;;  %4068 = vpow2.f32 %v1298_v32  ;;  %v1329_v10 = vadd.f32 %v5262_v55, %v1328_v29  ;;  %v8255_v32 = vsub.f32 %v4893_v13, %v5088_v51  ;;  %v8257_v6 = vsub.f32 %v4907_v20, %v5088_v51 }
 0x328   : > { %v5320_v41 = vpop.eup %4050  ;;  %4070 = vpow2.f32 %v1302_v39  ;;  %v1318_v17 = vmul.f32 1.442695, %v8253_v35  ;;  %v8256_v39 = vsub.f32 %v4899_v16, %v5088_v51  ;;  %v8258_v11 = vsub.f32 %v4914_v24, %v5088_v51 }
 0x329   : > { %v1200_v46 = vmul.f32 1.442695, %v8255_v32  ;;  %v5331_v48 = vpop.eup %4052  ;;  %4072 = vpow2.f32 %v1306_v23  ;;  %v1330_v27 = vadd.f32 %v5269_v25, %v1329_v10  ;;  %v1208_v40 = vmul.f32 1.442695, %v8257_v6 }
 0x32a   : > { %v1204_v29 = vmul.f32 1.442695, %v8256_v39  ;;  %v5340_v31 = vpop.eup %4054  ;;  %4074 = vpow2.f32 %v1310_v14  ;;  %v1212_v13 = vmul.f32 1.442695, %v8258_v11  ;;  %v8259_v23 = vsub.f32 %v4920_v1, %v5088_v51 }
 0x32b   : > { %v8260_v10 = vsub.f32 %v4926_v5, %v5088_v51  ;;  %v5351_v58 = vpop.eup %4056  ;;  %4076 = vpow2.f32 %v1314_v21  ;;  %v1331_v20 = vadd.f32 %v5277_v4, %v1330_v27  ;;  %v8261_v14 = vsub.f32 %v4932_v15, %v5088_v51 }
 0x32c   : > { %v1216_v35 = vmul.f32 1.442695, %v8259_v23  ;;  %v8262_v24 = vsub.f32 %v4938_v62, %v5088_v51  ;;  %v5360_v6 = vpop.eup %4058  ;;  %4078 = vpow2.f32 %v1318_v17  ;;  %v8263_v1 = vsub.f32 %v4944_v56, %v5088_v51 }
 0x32d   : > { %v1220_v16 = vmul.f32 1.442695, %v8260_v10  ;;  %v1224_v32 = vmul.f32 1.442695, %v8261_v14  ;;  %v8264_v21 = vsub.f32 %v8225_v0, %v5088_v51  ;;  %v8265_v27 = vsub.f32 %v8226_v61, %v5088_v51  ;;  %v5371_v23 = vpop.eup %4060 }
 0x32e   : > { %v1228_v39 = vmul.f32 1.442695, %v8262_v24  ;;  %v1232_v5 = vmul.f32 1.442695, %v8263_v1  ;;  %v1332_v62 = vadd.f32 %v5284_v57, %v1331_v20  ;;  %4080 = vpow2.f32 %v1196_v12  ;;  %v5384_v0 = vpop.eup %4062  ;;  %v8277_v12 = vld [vmem:[#allocation35_spill] sm:$0xff] }
 0x32f   : > { %v1236_v11 = vmul.f32 1.442695, %v8264_v21  ;;  %v1240_v15 = vmul.f32 1.442695, %v8265_v27  ;;  %v8266_v17 = vsub.f32 %v8227_v9, %v5088_v51  ;;  %v8267_v56 = vsub.f32 %v8228_v28, %v5088_v51  ;;  %v5392_v9 = vpop.eup %4064 }
 0x330   : > { %4082 = vpow2.f32 %v1200_v46  ;;  %v1333_v24 = vadd.f32 %v5290_v18, %v1332_v62  ;;  %v5399_v1 = vpop.eup %4066  ;;  %v763_v27 = vpack.c.bf16 %v5086_v50, %v5080_v53  ;;  %v8269_v50 = vld [vmem:[#allocation52_spill] sm:$0xff]  ;;  %v8274_v21 = vsub.f32 %v8229_v59, %v5088_v51 }
 0x331   : > { %v5377_v10 = vmul.f32 1.442695, %v8266_v17  ;;  %v5382_v14 = vmul.f32 1.442695, %v8267_v56  ;;  %4084 = vpow2.f32 %v1204_v29  ;;  %v5407_v62 = vpop.eup %4068  ;;  %v764_v17 = vpack.c.bf16 %v5090_v43, %v5082_v44  ;;  %v8268_v44 = vld [vmem:[#allocation51_spill] sm:$0xff] }
 0x332   : > { %4086 = vpow2.f32 %v1208_v40  ;;  %v1334_v29 = vadd.f32 %v5297_v34, %v1333_v24  ;;  %v5414_v46 = vpop.eup %4070  ;;  %2919 = vxpose.xlu0.c.b16.start [1/2] (short) %v763_v27, 128  ;;  %v766_v53 = vpack.c.bf16 %v8269_v50, %v8268_v44  ;;  %v8273_v27 = vld [vmem:[#allocation56_spill] sm:$0xff]  ;;  %v8275_v44 = vld [vmem:[#allocation34_spill] sm:$0xff] }
 0x333   : > { %4088 = vpow2.f32 %v1212_v13  ;;  %v5422_v24 = vpop.eup %4072  ;;  %2935 = vxpose.xlu1.c.b16.start [1/2] (short) %v764_v17, 128  ;;  %v8276_v50 = vsub.f32 %v8275_v44, %v5088_v51 }
 0x334   : > { %4090 = vpow2.f32 %v1216_v35  ;;  %v1335_v13 = vadd.f32 %v5303_v37, %v1334_v29  ;;  %v765_v35 = vpack.c.bf16 %v5120_v2, %v5100_v38  ;;  %v5429_v56 = vpop.eup %4074  ;;  %v8270_v38 = vld [vmem:[#allocation53_spill] sm:$0xff]  ;;  %v8271_v2 = vld [vmem:[#allocation55_spill] sm:$0xff] }
 0x335   : > { %4092 = vpow2.f32 %v1220_v16  ;;  %v5437_v29 = vpop.eup %4076  ;;  %v1256_v43 = vmul.f32 1.442695, %v8276_v50  ;;  %v8278_v16 = vsub.f32 %v8277_v12, %v5088_v51 }
 0x336   : > { %4094 = vpow2.f32 %v1224_v32  ;;  %v1336_v40 = vadd.f32 %v5309_v52, %v1335_v13  ;;  %v8272_v32 = vld [vmem:[#allocation54_spill] sm:$0xff]  ;;  %v5444_v28 = vpop.eup %4078  ;;  %2920 = vxpose.xlu0.c.b16.end [2/2] (short) %v765_v35, 128 }
 0x337   : > { %4096 = vpow2.f32 %v1228_v39  ;;  %v768_v17 = vpack.c.bf16 %v8273_v27, %v8272_v32  ;;  %v1252_v32 = vmul.f32 1.442695, %v8274_v21  ;;  %v1260_v20 = vmul.f32 1.442695, %v8278_v16  ;;  %2936 = vxpose.xlu1.c.b16.end [2/2] (short) %v766_v53, 128 }
 0x338   : > { %4098 = vpow2.f32 %v1232_v5  ;;  %v4081_v13 = vpop.eup %4080  ;;  %v1337_v39 = vadd.f32 %v5314_v45, %v1336_v40  ;;  %v8281_v5 = vld [vmem:[#allocation37_spill] sm:$0xff] }
 0x339   : > { %4100 = vpow2.f32 %v1236_v11  ;;  %1462 = vmatprep.mubr.bf16.mxu1 %v768_v17  ;;  %v8282_v12 = vsub.f32 %v8281_v5, %v5088_v51  ;;  %v8287_v5 = vpack.c.bf16 %v5206_v30, %v5196_v54 }
 0x33a   : > { %v4083_v27 = vpop.eup %4082  ;;  %4102 = vpow2.f32 %v1240_v15  ;;  %v1338_v59 = vadd.f32 %v5320_v41, %v1337_v39  ;;  %v8279_v15 = vld [vmem:[#allocation36_spill] sm:$0xff] }
 0x33b   : > { %v4085_v11 = vpop.eup %4084  ;;  %4104 = vpow2.f32 %v5377_v10  ;;  %v1359_v21 = vadd.f32 %v4083_v27, %v4081_v13  ;;  %v1399_v40 = vpack.c.bf16 %v4083_v27, %v4081_v13  ;;  %v8280_v44 = vsub.f32 %v8279_v15, %v5088_v51  ;;  %v8283_v13 = vld [vmem:[#allocation38_spill] sm:$0xff] }
 0x33c   : > { %v4087_v17 = vpop.eup %4086  ;;  %4106 = vpow2.f32 %v5382_v14  ;;  %v1268_v16 = vmul.f32 1.442695, %v8282_v12  ;;  %v1339_v53 = vadd.f32 %v5331_v48, %v1338_v59  ;;  %v8284_v14 = vsub.f32 %v8283_v13, %v5088_v51 }
 0x33d   : > { %v1264_v50 = vmul.f32 1.442695, %v8280_v44  ;;  %v4089_v35 = vpop.eup %4088  ;;  %4108 = vpow2.f32 %v1252_v32  ;;  %v1360_v39 = vadd.f32 %v4085_v11, %v1359_v21  ;;  %1430 = vmatprep.subr.bf16.mxu1 %v1399_v40  ;;  %v1401_v10 = vpack.c.bf16 %v4087_v17, %v4085_v11  ;;  %v8289_v40 = vld [vmem:[#allocation40_spill] sm:$0xff] }
 0x33e   : > { %v4091_v61 = vpop.eup %4090  ;;  %4110 = vpow2.f32 %v1256_v43  ;;  %v1272_v27 = vmul.f32 1.442695, %v8284_v14  ;;  %v8286_v15 = vsub.f32 %v8285_v22, %v5088_v51  ;;  %1431 = vmatpush1.bf16.msra.mxu1 %v8287_v5  ;;  %v8288_v12 = vmov 0   ;;  %v8291_v14 = vld [vmem:[#allocation41_spill] sm:$0xff] }
 0x33f   : > { %3983 = vset.pattern.permute.xlu1 %v8288_v12  ;;  %v4093_v32 = vpop.eup %4092  ;;  %v1340_v59 = vadd.f32 %v5340_v31, %v1339_v53  ;;  %4112 = vpow2.f32 %v1260_v20  ;;  %v1361_v11 = vadd.f32 %v4087_v17, %v1360_v39  ;;  %1432 = vmatprep.subr.bf16.mxu1 %v1401_v10  ;;  %v1403_v43 = vpack.c.bf16 %v4091_v61, %v4089_v35  ;;  %v8293_v17 = vld [vmem:[#allocation42_spill] sm:$0xff] }
 0x340   : > { %v1276_v44 = vmul.f32 1.442695, %v8286_v15  ;;  %v4095_v21 = vpop.eup %4094  ;;  %4114 = vpow2.f32 %v1264_v50  ;;  %v8290_v13 = vsub.f32 %v8289_v40, %v5088_v51  ;;  %v8292_v15 = vsub.f32 %v8291_v14, %v5088_v51  ;;  %3982 = vset.pattern.permute.xlu0 %v8288_v12 }
 0x341   : > { %v4097_v30 = vpop.eup %4096  ;;  %v1341_v5 = vadd.f32 %v5351_v58, %v1340_v59  ;;  %4116 = vpow2.f32 %v1268_v16  ;;  %v1362_v36 = vadd.f32 %v4089_v35, %v1361_v11  ;;  %v1405_v53 = vpack.c.bf16 %v4095_v21, %v4093_v32  ;;  %v8297_v11 = vld [vmem:[#allocation44_spill] sm:$0xff] }
 0x342   : > { %v1280_v22 = vmul.f32 1.442695, %v8290_v13  ;;  %v1284_v54 = vmul.f32 1.442695, %v8292_v15  ;;  %v4099_v20 = vpop.eup %4098  ;;  %4118 = vpow2.f32 %v1272_v27  ;;  %v8294_v39 = vsub.f32 %v8293_v17, %v5088_v51  ;;  %v8299_v17 = vld [vmem:[#allocation45_spill] sm:$0xff] }
 0x343   : > { %v8295_v10 = vsub.f32 %v8239_v42, %v5088_v51  ;;  %v8296_v13 = vpack.c.bf16 %v5224_v47, %v5216_v60  ;;  %v4101_v14 = vpop.eup %4100  ;;  %v1342_v59 = vadd.f32 %v5360_v6, %v1341_v5  ;;  %4120 = vpow2.f32 %v1276_v44 }
 0x344   : > { %v1288_v50 = vmul.f32 1.442695, %v8294_v39  ;;  %v1363_v16 = vadd.f32 %v4091_v61, %v1362_v36  ;;  %v1407_v35 = vpack.c.bf16 %v4099_v20, %v4097_v30  ;;  %v4103_v27 = vpop.eup %4102  ;;  %4122 = vpow2.f32 %v1280_v22 }
 0x345   : > { %v1292_v40 = vmul.f32 1.442695, %v8295_v10  ;;  %1433 = vmatpush1.bf16.msra.mxu1 %v8296_v13  ;;  %v8298_v15 = vsub.f32 %v8297_v11, %v5088_v51  ;;  %v8300_v39 = vsub.f32 %v8299_v17, %v5088_v51  ;;  %v4105_v47 = vpop.eup %4104  ;;  %v1343_v10 = vadd.f32 %v5371_v23, %v1342_v59 }
 0x346   : > { %1434 = vmatprep.subr.bf16.mxu1 %v1403_v43  ;;  %4124 = vpow2.f32 %v1284_v54  ;;  %v1364_v44 = vadd.f32 %v4093_v32, %v1363_v16  ;;  %v1409_v36 = vpack.c.bf16 %v4103_v27, %v4101_v14  ;;  %v4107_v61 = vpop.eup %4106  ;;  %v8301_v43 = vsub.f32 %v8242_v33, %v5088_v51  ;;  %v8304_v16 = vld [vmem:[#allocation48_spill] sm:$0xff] }
 0x347   : > { %v1296_v42 = vmul.f32 1.442695, %v8298_v15  ;;  %v1300_v60 = vmul.f32 1.442695, %v8300_v39  ;;  %4126 = vpow2.f32 %v1288_v50  ;;  %v8302_v5 = vsub.f32 %v8243_v3, %v5088_v51  ;;  %v4109_v15 = vpop.eup %4108  ;;  %v8306_v39 = vld [vmem:[#allocation49_spill] sm:$0xff] }
 0x348   : > { %v1304_v22 = vmul.f32 1.442695, %v8301_v43  ;;  %v8303_v11 = vpack.c.bf16 %v5239_v26, %v5232_v8  ;;  %v1344_v59 = vadd.f32 %v5384_v0, %v1343_v10  ;;  %4128 = vpow2.f32 %v1292_v40  ;;  %v4111_v50 = vpop.eup %4110 }
 0x349   : > { %v1308_v13 = vmul.f32 1.442695, %v8302_v5  ;;  %v1365_v32 = vadd.f32 %v4095_v21, %v1364_v44  ;;  %v1411_v54 = vpack.c.bf16 %v4107_v61, %v4105_v47  ;;  %4130 = vpow2.f32 %v1296_v42  ;;  %v4113_v5 = vpop.eup %4112  ;;  %v8308_v21 = vld [vmem:[#allocation50_spill] sm:$0xff] }
 0x34a   : > { %1435 = vmatpush1.bf16.msra.mxu1 %v8303_v11  ;;  %v8305_v33 = vsub.f32 %v8304_v16, %v5088_v51  ;;  %v8307_v3 = vsub.f32 %v8306_v39, %v5088_v51  ;;  %v1345_v26 = vadd.f32 %v5392_v9, %v1344_v59  ;;  %4132 = vpow2.f32 %v1300_v60  ;;  %v4115_v40 = vpop.eup %4114 }
 0x34b   : > { %1436 = vmatprep.subr.bf16.mxu1 %v1405_v53  ;;  %v1366_v8 = vadd.f32 %v4097_v30, %v1365_v32  ;;  %v1413_v10 = vpack.c.bf16 %v4111_v50, %v4109_v15  ;;  %4134 = vpow2.f32 %v1304_v22  ;;  %v8309_v53 = vsub.f32 %v8308_v21, %v5088_v51  ;;  %v4117_v11 = vpop.eup %4116 }
 0x34c   : > { %v1312_v17 = vmul.f32 1.442695, %v8305_v33  ;;  %v1316_v43 = vmul.f32 1.442695, %v8307_v3  ;;  %v8310_v44 = vpack.c.bf16 %v5254_v7, %v5247_v63  ;;  %v1346_v16 = vadd.f32 %v5399_v1, %v1345_v26  ;;  %v4119_v60 = vpop.eup %4118 }
 0x34d   : > { %v1320_v42 = vmul.f32 1.442695, %v8309_v53  ;;  %4136 = vpow2.f32 %v1308_v13  ;;  %v1367_v33 = vadd.f32 %v4099_v20, %v1366_v8  ;;  %v1415_v59 = vpack.c.bf16 %v4115_v40, %v4113_v5  ;;  %v4121_v30 = vpop.eup %4120 }
 0x34e   : > { %1437 = vmatpush1.bf16.msra.mxu1 %v8310_v44  ;;  %4138 = vpow2.f32 %v1312_v17  ;;  %v1347_v22 = vadd.f32 %v5407_v62, %v1346_v16  ;;  %v1417_v51 = vpack.c.bf16 %v4119_v60, %v4117_v11  ;;  %v4123_v39 = vpop.eup %4122  ;;  %v8311_v7 = vpack.c.bf16 %v5269_v25, %v5262_v55 }
 0x34f   : > { %1438 = vmatprep.subr.bf16.mxu1 %v1407_v35  ;;  %4140 = vpow2.f32 %v1316_v43  ;;  %v1368_v32 = vadd.f32 %v4101_v14, %v1367_v33  ;;  %v1419_v35 = vpack.c.bf16 %v4123_v39, %v4121_v30  ;;  %v8312_v21 = vpack.c.bf16 %v5284_v57, %v5277_v4 }
 0x350   : > { %4142 = vpow2.f32 %v1320_v42  ;;  %v4125_v63 = vpop.eup %4124  ;;  %v1348_v13 = vadd.f32 %v5414_v46, %v1347_v22 }
 0x351   : > { %v1369_v20 = vadd.f32 %v4103_v27, %v1368_v32  ;;  %v4127_v3 = vpop.eup %4126 }
 0x352   : > { %1439 = vmatpush1.bf16.msra.mxu1 %v8311_v7  ;;  %v4129_v17 = vpop.eup %4128  ;;  %v1349_v26 = vadd.f32 %v5422_v24, %v1348_v13  ;;  %v1421_v43 = vpack.c.bf16 %v4127_v3, %v4125_v63 }
 0x353   : > { %1440 = vmatprep.subr.bf16.mxu1 %v1409_v36  ;;  %v1370_v8 = vadd.f32 %v4105_v47, %v1369_v20  ;;  %v4131_v14 = vpop.eup %4130  ;;  %v8313_v47 = vpack.c.bf16 %v5297_v34, %v5290_v18  ;;  %v8314_v20 = vpack.c.bf16 %v5309_v52, %v5303_v37  ;;  %v8315_v18 = vpack.c.bf16 %v5320_v41, %v5314_v45 }
 0x354   : > { %v4133_v53 = vpop.eup %4132  ;;  %v1350_v55 = vadd.f32 %v5429_v56, %v1349_v26  ;;  %v1423_v42 = vpack.c.bf16 %v4131_v14, %v4129_v17  ;;  %v8317_v37 = vpack.c.bf16 %v5360_v6, %v5351_v58  ;;  %v8318_v45 = vpack.c.bf16 %v5384_v0, %v5371_v23 }
 0x355   : > { %v1371_v25 = vadd.f32 %v4107_v61, %v1370_v8  ;;  %v4135_v27 = vpop.eup %4134  ;;  %v8320_v58 = vpack.c.bf16 %v5414_v46, %v5407_v62  ;;  %v8321_v23 = vpack.c.bf16 %v5429_v56, %v5422_v24  ;;  %v8326_v46 = vpack.c.bf16 %v8271_v2, %v8270_v38  ;;  %v8327_v62 = vld [vmem:[#allocation7_spill] sm:$0xff]  ;;  %v8331_v24 = vld [vmem:[#allocation12_spill] sm:$0xff]  ;;  %v1503_v2 = vpop.trf.xlu0 }
 0x356   : > { %1441 = vmatpush1.bf16.msra.mxu1 %v8312_v21  ;;  %v1351_v44 = vadd.f32 %v5437_v29, %v1350_v55  ;;  %v1425_v33 = vpack.c.bf16 %v4135_v27, %v4133_v53  ;;  %v8330_v56 = vpack.c.bf16 %v5214_v49, %v5194_v19 }
 0x357   : > { %1442 = vmatprep.subr.bf16.mxu1 %v1411_v54  ;;  %v4137_v36 = vpop.eup %4136  ;;  %v1372_v16 = vadd.f32 %v4109_v15, %v1371_v25 }
 0x358   : > { %v4139_v22 = vpop.eup %4138  ;;  %v5549_v4 = vadd.f32 %v5444_v28, %v1351_v44 }
 0x359   : > { %v4141_v32 = vpop.eup %4140  ;;  %v1373_v57 = vadd.f32 %v4111_v50, %v1372_v16  ;;  %v1427_v61 = vpack.c.bf16 %v4139_v22, %v4137_v36  ;;  %v8316_v50 = vpack.c.bf16 %v5340_v31, %v5331_v48  ;;  %v8319_v48 = vpack.c.bf16 %v5399_v1, %v5392_v9  ;;  %v8323_v1 = vld [vmem:[#allocation8_spill] sm:$0xff]  ;;  %v1504_v19 = vpop.trf.xlu0 }
 0x35a   : > { %1443 = vmatpush1.bf16.msra.mxu1 %v8313_v47  ;;  %v4143_v54 = vpop.eup %4142  ;;  %v8322_v9 = vpack.c.bf16 %v5444_v28, %v5437_v29  ;;  %v8334_v29 = vld [vmem:[#allocation11_spill] sm:$0xff]  ;;  %v4009_v47 = vld [vmem:[%s7927_s1 + $0x98] sm:$0xff]  }
 0x35b   : > { %1444 = vmatprep.subr.bf16.mxu1 %v1413_v10  ;;  %v1374_v7 = vadd.f32 %v4113_v5, %v1373_v57  ;;  %v1429_v13 = vpack.c.bf16 %v4143_v54, %v4141_v32 }
 0x35d   : > { %v1375_v15 = vadd.f32 %v4115_v40, %v1374_v7  ;;  %v1505_v49 = vpop.trf.xlu0 }
 0x35e   : > { %1445 = vmatpush1.bf16.msra.mxu1 %v8314_v20 }
 0x35f   : > { %1446 = vmatprep.subr.bf16.mxu1 %v1415_v59  ;;  %v1376_v26 = vadd.f32 %v4117_v11, %v1375_v15 }
 0x361   : > { %v1377_v34 = vadd.f32 %v4119_v60, %v1376_v26  ;;  %v1506_v21 = vpop.trf.xlu0 }
 0x362   : > { %1447 = vmatpush1.bf16.msra.mxu1 %v8315_v18 }
 0x363   : > { %1448 = vmatprep.subr.bf16.mxu1 %v1417_v51  ;;  %v1378_v8 = vadd.f32 %v4121_v30, %v1377_v34  ;;  %v8324_v30 = vld [vmem:[#allocation6_spill] sm:$0xff] }
 0x364   : > { %v8325_v51 = vpack.c.bf16 %v8323_v1, %v8324_v30 }
 0x365   : > { %v1379_v5 = vadd.f32 %v4123_v39, %v1378_v8  ;;  %v8328_v39 = vld [vmem:[#allocation5_spill] sm:$0xff] }
 0x366   : > { %1449 = vmatpush1.bf16.msra.mxu1 %v8316_v50 }
 0x367   : > { %1450 = vmatprep.subr.bf16.mxu1 %v1419_v35  ;;  %v1380_v10 = vadd.f32 %v4125_v63, %v1379_v5  ;;  %v8329_v63 = vpack.c.bf16 %v8327_v62, %v8328_v39  ;;  %v8332_v35 = vld [vmem:[#allocation10_spill] sm:$0xff] }
 0x368   : > { %v8333_v28 = vpack.c.bf16 %v8331_v24, %v8332_v35 }
 0x369   : > { %v1381_v52 = vadd.f32 %v4127_v3, %v1380_v10  ;;  %v8335_v3 = vld [vmem:[#allocation9_spill] sm:$0xff] }
 0x36a   : > { %1451 = vmatpush1.bf16.msra.mxu1 %v8317_v37 }
 0x36b   : > { %1452 = vmatprep.subr.bf16.mxu1 %v1421_v43  ;;  %v1382_v40 = vadd.f32 %v4129_v17, %v1381_v52  ;;  %v8336_v17 = vpack.c.bf16 %v8334_v29, %v8335_v3  ;;  %v8337_v43 = vld [vmem:[#allocation58_spill] sm:$0xff] }
 0x36d   : > { %v1383_v41 = vadd.f32 %v4131_v14, %v1382_v40  ;;  %v8338_v14 = vld [vmem:[#allocation57_spill] sm:$0xff] }
 0x36e   : > { %1453 = vmatpush1.bf16.msra.mxu1 %v8318_v45  ;;  %v8339_v38 = vpack.c.bf16 %v8337_v43, %v8338_v14 }
 0x36f   : > { %1454 = vmatprep.subr.bf16.mxu1 %v1423_v42  ;;  %v1384_v11 = vadd.f32 %v4133_v53, %v1383_v41  ;;  %v1507_v53 = vpop.trf.xlu0 }
 0x371   : > { %v1385_v31 = vadd.f32 %v4135_v27, %v1384_v11  ;;  %v1519_v27 = vpop.trf.xlu1 }
 0x372   : > { %1455 = vmatpush1.bf16.msra.mxu1 %v8319_v48 }
 0x373   : > { %1456 = vmatprep.subr.bf16.mxu1 %v1425_v33  ;;  %v1386_v59 = vadd.f32 %v4137_v36, %v1385_v31  ;;  %v1508_v55 = vpop.trf.xlu0  ;;  %v4008_v33 = vld [vmem:[%s7927_s1 + $0x90] sm:$0xff]  }
 0x374   : > { %3861 = vmatmul.mubr.msk.bf16.gmra.mrb[72].mxu0 %vm389_vm0, %v4008_v33 }
 0x375   : > { %v1387_v6 = vadd.f32 %v4139_v22, %v1386_v59  ;;  %v1520_v36 = vpop.trf.xlu1  ;;  %684 = vmatprep.mubr.bf16.mxu0 %v8288_v12 }
 0x376   : > { %1457 = vmatpush1.bf16.msra.mxu1 %v8320_v58 }
 0x377   : > { %1458 = vmatprep.subr.bf16.mxu1 %v1427_v61  ;;  %v1388_v60 = vadd.f32 %v4141_v32, %v1387_v6  ;;  %v1509_v25 = vpop.trf.xlu0 }
 0x379   : > { %v5575_v0 = vadd.f32 %v4143_v54, %v1388_v60  ;;  %v1521_v44 = vpop.trf.xlu1  ;;  %v1353_v54 = vrot.slane %v5549_v4, 4 }
 0x37a   : > { %1459 = vmatpush1.bf16.msra.mxu1 %v8321_v23 }
 0x37b   : > { %1460 = vmatprep.subr.bf16.mxu1 %v1429_v13  ;;  %v1510_v42 = vpop.trf.xlu0  ;;  %v1390_v7 = vrot.slane %v5575_v0, 4  ;;  %v1354_v13 = vadd.f32 %v1353_v54, %v5549_v4 }
 0x37c   : > { %3862 = vmatmul.mubr.msk.bf16.gmra.mrb[76].mxu0 %vm389_vm0, %v4009_v47 }
 0x37d   : > { %v1522_v16 = vpop.trf.xlu1  ;;  %694 = vmatprep.mubr.bf16.mxu0 %v8288_v12  ;;  %v1391_v20 = vadd.f32 %v1390_v7, %v5575_v0  ;;  %v1355_v15 = vrot.slane %v1354_v13, 2 }
 0x37e   : > { %1461 = vmatpush1.bf16.msra.mxu1 %v8322_v9 }
 0x37f   : > { %1575 = vmatprep.subr.bf16.mxu1 %v8325_v51  ;;  %v1392_v26 = vrot.slane %v1391_v20, 2  ;;  %v1356_v18 = vadd.f32 %v1355_v15, %v1354_v13 }
 0x381   : > { %1463 = vmatmul.mubr.bf16.vlgmr.msra.gmra.mrb[64].mxu1 %v8326_v46  ;;  %v1523_v22 = vpop.trf.xlu1  ;;  %v1393_v34 = vadd.f32 %v1392_v26, %v1391_v20  ;;  %v1357_v8 = vrot.slane %v1356_v18, 1 }
 0x382   : > { %1576 = vmatpush1.bf16.msra.mxu1 %v8329_v63  ;;  %1472 = vmatprep.mubr.bf16.mxu1 %v8330_v56 }
 0x383   : > { %1577 = vmatprep.subr.bf16.mxu1 %v8333_v28  ;;  %v1394_v50 = vrot.slane %v1393_v34, 1  ;;  %v1358_v5 = vadd.f32 %v1357_v8, %v1356_v18 }
 0x385   : > { %v1524_v32 = vpop.trf.xlu1  ;;  %v1395_v10 = vadd.f32 %v1394_v50, %v1393_v34  ;;  %4144 = vrcp.f32 %v1358_v5 }
 0x386   : > { %1578 = vmatpush1.bf16.msra.mxu1 %v8336_v17 }
 0x387   : > { %4146 = vrcp.f32 %v1395_v10 }
 0x389   : > { %1473 = vmatmul.mubr.bf16.gmra.mrb[68].mxu1 %v8339_v38  ;;  %v1525_v57 = vpop.trf.xlu1 }
 0x38a   : > { %1607 = vmatprep.mubr.bf16.mxu1 %v8288_v12 }
 0x38d   : > { %v1526_v61 = vpop.trf.xlu1 }
 0x38f   : > { %v4145_v37 = vpop.eup %4144 }
 0x391   : > { %3883 = vmatmul.mubr.msk.bf16.vlgmr.msra.gmra.mrb[72].mxu1 %vm389_vm0, %v1503_v2  ;;  %v4147_v40 = vpop.eup %4146 }
 0x392   : > { %1617 = vmatprep.mubr.bf16.mxu1 %v8288_v12 }
 0x399   : > { %3884 = vmatmul.mubr.msk.bf16.gmra.mrb[76].mxu1 %vm389_vm0, %v1504_v19 }
 0x39a   : > { %1627 = vmatprep.mubr.bf16.mxu1 %v8288_v12 }
 0x3a1   : > { %3885 = vmatmul.mubr.msk.bf16.gmra.mrb[80].mxu1 %vm389_vm0, %v1505_v49 }
 0x3a2   : > { %1637 = vmatprep.mubr.bf16.mxu1 %v8288_v12 }
 0x3a9   : > { %3886 = vmatmul.mubr.msk.bf16.gmra.mrb[84].mxu1 %vm389_vm0, %v1506_v21 }
 0x3aa   : > { %1647 = vmatprep.mubr.bf16.mxu1 %v8288_v12 }
 0x3b1   : > { %3887 = vmatmul.mubr.msk.bf16.gmra.mrb[88].mxu1 %vm389_vm0, %v1507_v53 }
 0x3b2   : > { %1657 = vmatprep.mubr.bf16.mxu1 %v8288_v12 }
 0x3b9   : > { %3888 = vmatmul.mubr.msk.bf16.gmra.mrb[92].mxu1 %vm389_vm0, %v1508_v55 }
 0x3ba   : > { %1667 = vmatprep.mubr.bf16.mxu1 %v8288_v12 }
 0x3c1   : > { %3889 = vmatmul.mubr.msk.bf16.gmra.mrb[96].mxu1 %vm389_vm0, %v1509_v25 }
 0x3c2   : > { %1677 = vmatprep.mubr.bf16.mxu1 %v8288_v12 }
 0x3c9   : > { %3890 = vmatmul.mubr.msk.bf16.gmra.mrb[100].mxu1 %vm389_vm0, %v1510_v42 }
 0x3ca   : > { %1687 = vmatprep.mubr.bf16.mxu1 %v8288_v12 }
 0x3d1   : > { %3891 = vmatmul.mubr.msk.bf16.gmra.mrb[104].mxu1 %vm389_vm0, %v1519_v27 }
 0x3d2   : > { %1697 = vmatprep.mubr.bf16.mxu1 %v8288_v12 }
 0x3d9   : > { %3892 = vmatmul.mubr.msk.bf16.gmra.mrb[108].mxu1 %vm389_vm0, %v1520_v36 }
 0x3da   : > { %1707 = vmatprep.mubr.bf16.mxu1 %v8288_v12 }
 0x3e1   : > { %3893 = vmatmul.mubr.msk.bf16.gmra.mrb[112].mxu1 %vm389_vm0, %v1521_v44 }
 0x3e2   : > { %1717 = vmatprep.mubr.bf16.mxu1 %v8288_v12 }
 0x3e9   : > { %3894 = vmatmul.mubr.msk.bf16.gmra.mrb[116].mxu1 %vm389_vm0, %v1522_v16 }
 0x3ea   : > { %1727 = vmatprep.mubr.bf16.mxu1 %v8288_v12 }
 0x3f1   : > { %3895 = vmatmul.mubr.msk.bf16.gmra.mrb[120].mxu1 %vm389_vm0, %v1523_v22 }
 0x3f2   : > { %1737 = vmatprep.mubr.bf16.mxu1 %v8288_v12 }
 0x3f9   : > { %3896 = vmatmul.mubr.msk.bf16.gmra.mrb[124].mxu1 %vm389_vm0, %v1524_v32 }
 0x3fa   : > { %1747 = vmatprep.mubr.bf16.mxu1 %v8288_v12 }
 0x401   : > { %3897 = vmatmul.mubr.msk.bf16.gmra.mrb[128].mxu1 %vm389_vm0, %v1525_v57 }
 0x402   : > { %1757 = vmatprep.mubr.bf16.mxu1 %v8288_v12 }
 0x409   : > { %3898 = vmatmul.mubr.msk.bf16.gmra.mrb[132].mxu1 %vm389_vm0, %v1526_v61 }
 0x454   : > { %v1464_v52 = vpop.f32.mrb[64].mxu1 }
 0x455   : > { %v5647_v45 = vmul.f32 %v4145_v37, %v1464_v52  ;;  %v1466_v41 = vpop.f32.mrb[65].mxu1 }
 0x456   : > { %v5649_v11 = vmul.f32 %v4147_v40, %v1466_v41  ;;  %v1468_v4 = vpop.f32.mrb[66].mxu1 }
 0x457   : > { %8340 = vst [vmem:[#allocation29_spill] sm:$0xff] %v5647_v45  ;;  %v5651_v48 = vmul.f32 %v4145_v37, %v1468_v4  ;;  %v1470_v31 = vpop.f32.mrb[67].mxu1 }
 0x458   : > { %8341 = vst [vmem:[#allocation30_spill] sm:$0xff] %v5649_v11  ;;  %v5653_v59 = vmul.f32 %v4147_v40, %v1470_v31 }
 0x459   : > { %8342 = vst [vmem:[#allocation31_spill] sm:$0xff] %v5651_v48 }
 0x45a   : > { %8343 = vst [vmem:[#allocation32_spill] sm:$0xff] %v5653_v59 }
 0x45c   : > { %v1474_v60 = vpop.f32.mrb[68].mxu1 }
 0x45d   : > { %v5659_v23 = vmul.f32 %v4145_v37, %v1474_v60  ;;  %v1476_v0 = vpop.f32.mrb[69].mxu1 }
 0x45e   : > { %v5661_v9 = vmul.f32 %v4147_v40, %v1476_v0  ;;  %v1478_v1 = vpop.f32.mrb[70].mxu1 }
 0x45f   : > { %8344 = vst [vmem:[#allocation33_spill] sm:$0xff] %v5659_v23  ;;  %v5663_v30 = vmul.f32 %v4145_v37, %v1478_v1  ;;  %v1480_v51 = vpop.f32.mrb[71].mxu1 }
 0x460   : > { %8345 = vst [vmem:[#allocation43_spill] sm:$0xff] %v5661_v9  ;;  %v5665_v46 = vmul.f32 %v4147_v40, %v1480_v51 }
 0x461   : > { %8346 = vst [vmem:[#allocation46_spill] sm:$0xff] %v5663_v30 }
 0x462   : > { %8347 = vst [vmem:[#allocation47_spill] sm:$0xff] %v5665_v46 }
 0x464   : > { %v5671_v63 = vpop.f32.mrb[72].mxu1 }
 0x465   : > { %v5673_v56 = vpop.f32.mrb[73].mxu1 }
 0x466   : > { %v5675_v24 = vpop.f32.mrb[74].mxu1 }
 0x467   : > { %v5677_v35 = vpop.f32.mrb[75].mxu1 }
 0x46c   : > { %v5679_v28 = vpop.f32.mrb[76].mxu1 }
 0x46d   : > { %v1768_v29 = vmax.f32 %v5671_v63, %v5679_v28  ;;  %v5683_v3 = vpop.f32.mrb[77].mxu1 }
 0x46e   : > { %v1805_v17 = vmax.f32 %v5673_v56, %v5683_v3  ;;  %v5687_v43 = vpop.f32.mrb[78].mxu1 }
 0x46f   : > { %v1769_v14 = vmax.f32 %v5675_v24, %v5687_v43  ;;  %v5691_v38 = vpop.f32.mrb[79].mxu1 }
 0x470   : > { %v1806_v2 = vmax.f32 %v5677_v35, %v5691_v38 }
 0x474   : > { %v5695_v19 = vpop.f32.mrb[80].mxu1 }
 0x475   : > { %v1770_v49 = vmax.f32 %v1768_v29, %v5695_v19  ;;  %v5698_v21 = vpop.f32.mrb[81].mxu1 }
 0x476   : > { %v1807_v53 = vmax.f32 %v1805_v17, %v5698_v21  ;;  %v5701_v55 = vpop.f32.mrb[82].mxu1 }
 0x477   : > { %v1771_v25 = vmax.f32 %v1769_v14, %v5701_v55  ;;  %v5704_v42 = vpop.f32.mrb[83].mxu1 }
 0x478   : > { %v1808_v27 = vmax.f32 %v1806_v2, %v5704_v42 }
 0x47c   : > { %v5707_v36 = vpop.f32.mrb[84].mxu1 }
 0x47d   : > { %v1772_v44 = vmax.f32 %v1770_v49, %v5707_v36  ;;  %v5710_v16 = vpop.f32.mrb[85].mxu1 }
 0x47e   : > { %v1809_v33 = vmax.f32 %v1807_v53, %v5710_v16  ;;  %v5713_v22 = vpop.f32.mrb[86].mxu1 }
 0x47f   : > { %v1773_v47 = vmax.f32 %v1771_v25, %v5713_v22  ;;  %v5716_v32 = vpop.f32.mrb[87].mxu1 }
 0x480   : > { %v1810_v57 = vmax.f32 %v1808_v27, %v5716_v32 }
 0x484   : > { %v5719_v61 = vpop.f32.mrb[88].mxu1 }
 0x485   : > { %v1774_v54 = vmax.f32 %v1772_v44, %v5719_v61  ;;  %v5722_v7 = vpop.f32.mrb[89].mxu1 }
 0x486   : > { %v1811_v13 = vmax.f32 %v1809_v33, %v5722_v7  ;;  %v5725_v20 = vpop.f32.mrb[90].mxu1 }
 0x487   : > { %v1775_v15 = vmax.f32 %v1773_v47, %v5725_v20  ;;  %v5728_v26 = vpop.f32.mrb[91].mxu1 }
 0x488   : > { %v1812_v18 = vmax.f32 %v1810_v57, %v5728_v26 }
 0x48c   : > { %v5731_v34 = vpop.f32.mrb[92].mxu1 }
 0x48d   : > { %v1776_v8 = vmax.f32 %v1774_v54, %v5731_v34  ;;  %v5734_v50 = vpop.f32.mrb[93].mxu1 }
 0x48e   : > { %v1813_v5 = vmax.f32 %v1811_v13, %v5734_v50  ;;  %v5737_v10 = vpop.f32.mrb[94].mxu1 }
 0x48f   : > { %v1777_v37 = vmax.f32 %v1775_v15, %v5737_v10  ;;  %v5740_v52 = vpop.f32.mrb[95].mxu1 }
 0x490   : > { %v1814_v40 = vmax.f32 %v1812_v18, %v5740_v52 }
 0x494   : > { %v5743_v41 = vpop.f32.mrb[96].mxu1 }
 0x495   : > { %v1778_v4 = vmax.f32 %v1776_v8, %v5743_v41  ;;  %v5746_v31 = vpop.f32.mrb[97].mxu1 }
 0x496   : > { %v1815_v60 = vmax.f32 %v1813_v5, %v5746_v31  ;;  %v5749_v0 = vpop.f32.mrb[98].mxu1 }
 0x497   : > { %v1779_v1 = vmax.f32 %v1777_v37, %v5749_v0  ;;  %v5752_v51 = vpop.f32.mrb[99].mxu1 }
 0x498   : > { %v1816_v29 = vmax.f32 %v1814_v40, %v5752_v51 }
 0x49c   : > { %v5755_v17 = vpop.f32.mrb[100].mxu1 }
 0x49d   : > { %v1780_v14 = vmax.f32 %v1778_v4, %v5755_v17  ;;  %v5758_v2 = vpop.f32.mrb[101].mxu1 }
 0x49e   : > { %v1817_v49 = vmax.f32 %v1815_v60, %v5758_v2  ;;  %v5761_v53 = vpop.f32.mrb[102].mxu1 }
 0x49f   : > { %v1781_v25 = vmax.f32 %v1779_v1, %v5761_v53  ;;  %v5764_v27 = vpop.f32.mrb[103].mxu1 }
 0x4a0   : > { %8348 = vst [vmem:[#allocation51_spill] sm:$0xff] %v5764_v27  ;;  %v1818_v44 = vmax.f32 %v1816_v29, %v5764_v27 }
 0x4a4   : > { %v5767_v33 = vpop.f32.mrb[104].mxu1 }
 0x4a5   : > { %v1782_v47 = vmax.f32 %v1780_v14, %v5767_v33  ;;  %v5770_v57 = vpop.f32.mrb[105].mxu1 }
 0x4a6   : > { %8349 = vst [vmem:[#allocation52_spill] sm:$0xff] %v5770_v57  ;;  %v1819_v54 = vmax.f32 %v1817_v49, %v5770_v57  ;;  %v5773_v13 = vpop.f32.mrb[106].mxu1 }
 0x4a7   : > { %v1783_v15 = vmax.f32 %v1781_v25, %v5773_v13  ;;  %v5776_v18 = vpop.f32.mrb[107].mxu1 }
 0x4a8   : > { %8350 = vst [vmem:[#allocation53_spill] sm:$0xff] %v5776_v18  ;;  %v1820_v8 = vmax.f32 %v1818_v44, %v5776_v18 }
 0x4ac   : > { %v5779_v5 = vpop.f32.mrb[108].mxu1 }
 0x4ad   : > { %v1784_v37 = vmax.f32 %v1782_v47, %v5779_v5  ;;  %v5782_v40 = vpop.f32.mrb[109].mxu1 }
 0x4ae   : > { %8351 = vst [vmem:[#allocation55_spill] sm:$0xff] %v5782_v40  ;;  %v1821_v4 = vmax.f32 %v1819_v54, %v5782_v40  ;;  %v5785_v60 = vpop.f32.mrb[110].mxu1 }
 0x4af   : > { %v1785_v1 = vmax.f32 %v1783_v15, %v5785_v60  ;;  %v5788_v29 = vpop.f32.mrb[111].mxu1 }
 0x4b0   : > { %8352 = vst [vmem:[#allocation54_spill] sm:$0xff] %v5788_v29  ;;  %v1822_v14 = vmax.f32 %v1820_v8, %v5788_v29 }
 0x4b4   : > { %v5791_v49 = vpop.f32.mrb[112].mxu1 }
 0x4b5   : > { %v1786_v25 = vmax.f32 %v1784_v37, %v5791_v49  ;;  %v5794_v44 = vpop.f32.mrb[113].mxu1 }
 0x4b6   : > { %8353 = vst [vmem:[#allocation56_spill] sm:$0xff] %v5794_v44  ;;  %v1823_v47 = vmax.f32 %v1821_v4, %v5794_v44  ;;  %v5797_v62 = vpop.f32.mrb[114].mxu1 }
 0x4b7   : > { %v1787_v54 = vmax.f32 %v1785_v1, %v5797_v62  ;;  %v5800_v39 = vpop.f32.mrb[115].mxu1 }
 0x4b8   : > { %8354 = vst [vmem:[#allocation34_spill] sm:$0xff] %v5800_v39  ;;  %v1824_v15 = vmax.f32 %v1822_v14, %v5800_v39 }
 0x4bc   : > { %v5803_v58 = vpop.f32.mrb[116].mxu1 }
 0x4bd   : > { %v1788_v8 = vmax.f32 %v1786_v25, %v5803_v58  ;;  %v5806_v6 = vpop.f32.mrb[117].mxu1 }
 0x4be   : > { %8355 = vst [vmem:[#allocation35_spill] sm:$0xff] %v5806_v6  ;;  %v1825_v37 = vmax.f32 %v1823_v47, %v5806_v6  ;;  %v5809_v23 = vpop.f32.mrb[118].mxu1 }
 0x4bf   : > { %v1789_v4 = vmax.f32 %v1787_v54, %v5809_v23  ;;  %v5812_v30 = vpop.f32.mrb[119].mxu1 }
 0x4c0   : > { %8356 = vst [vmem:[#allocation36_spill] sm:$0xff] %v5812_v30  ;;  %v1826_v1 = vmax.f32 %v1824_v15, %v5812_v30 }
 0x4c4   : > { %v5815_v9 = vpop.f32.mrb[120].mxu1 }
 0x4c5   : > { %v1790_v14 = vmax.f32 %v1788_v8, %v5815_v9  ;;  %v5818_v46 = vpop.f32.mrb[121].mxu1 }
 0x4c6   : > { %8357 = vst [vmem:[#allocation37_spill] sm:$0xff] %v5818_v46  ;;  %v1827_v25 = vmax.f32 %v1825_v37, %v5818_v46  ;;  %v5821_v45 = vpop.f32.mrb[122].mxu1 }
 0x4c7   : > { %v1791_v47 = vmax.f32 %v1789_v4, %v5821_v45  ;;  %v5824_v48 = vpop.f32.mrb[123].mxu1 }
 0x4c8   : > { %8358 = vst [vmem:[#allocation38_spill] sm:$0xff] %v5824_v48  ;;  %v1828_v54 = vmax.f32 %v1826_v1, %v5824_v48 }
 0x4cc   : > { %v5827_v11 = vpop.f32.mrb[124].mxu1 }
 0x4cd   : > { %v1792_v15 = vmax.f32 %v1790_v14, %v5827_v11  ;;  %v5830_v59 = vpop.f32.mrb[125].mxu1 }
 0x4ce   : > { %8359 = vst [vmem:[#allocation39_spill] sm:$0xff] %v5830_v59  ;;  %v1829_v8 = vmax.f32 %v1827_v25, %v5830_v59  ;;  %v5833_v30 = vpop.f32.mrb[126].mxu1 }
 0x4cf   : > { %v1793_v37 = vmax.f32 %v1791_v47, %v5833_v30  ;;  %v5836_v46 = vpop.f32.mrb[127].mxu1 }
 0x4d0   : > { %8360 = vst [vmem:[#allocation40_spill] sm:$0xff] %v5836_v46  ;;  %v1830_v4 = vmax.f32 %v1828_v54, %v5836_v46 }
 0x4d4   : > { %v5839_v6 = vpop.f32.mrb[128].mxu1 }
 0x4d5   : > { %v1794_v1 = vmax.f32 %v1792_v15, %v5839_v6  ;;  %v5842_v48 = vpop.f32.mrb[129].mxu1 }
 0x4d6   : > { %8361 = vst [vmem:[#allocation41_spill] sm:$0xff] %v5842_v48  ;;  %v1831_v14 = vmax.f32 %v1829_v8, %v5842_v48  ;;  %v5845_v39 = vpop.f32.mrb[130].mxu1 }
 0x4d7   : > { %v1795_v25 = vmax.f32 %v1793_v37, %v5845_v39  ;;  %v5848_v59 = vpop.f32.mrb[131].mxu1 }
 0x4d8   : > { %8362 = vst [vmem:[#allocation42_spill] sm:$0xff] %v5848_v59  ;;  %v1832_v47 = vmax.f32 %v1830_v4, %v5848_v59  ;;  %v4010_v4 = vld [vmem:[%s7927_s1 + $0xa0] sm:$0xff]  }
 0x4d9   : > { %3863 = vmatmul.mubr.msk.bf16.gmra.mrb[80].mxu0 %vm389_vm0, %v4010_v4 }
 0x4da   : > { %704 = vmatprep.mubr.bf16.mxu0 %v8288_v12 }
 0x4dc   : > { %v5851_v44 = vpop.f32.mrb[132].mxu1 }
 0x4dd   : > { %v1796_v54 = vmax.f32 %v1794_v1, %v5851_v44  ;;  %v5854_v46 = vpop.f32.mrb[133].mxu1 }
 0x4de   : > { %8363 = vst [vmem:[#allocation44_spill] sm:$0xff] %v5854_v46  ;;  %v1833_v15 = vmax.f32 %v1831_v14, %v5854_v46  ;;  %v5857_v29 = vpop.f32.mrb[134].mxu1 }
 0x4df   : > { %v1797_v8 = vmax.f32 %v1795_v25, %v5857_v29  ;;  %v5860_v48 = vpop.f32.mrb[135].mxu1 }
 0x4e0   : > { %8364 = vst [vmem:[#allocation45_spill] sm:$0xff] %v5860_v48  ;;  %v1834_v37 = vmax.f32 %v1832_v47, %v5860_v48  ;;  %v4011_v47 = vld [vmem:[%s7927_s1 + $0xa8] sm:$0xff]  }
 0x4e1   : > { %v1798_v59 = vmax.f32 %v1796_v54, %v1797_v8  ;;  %3864 = vmatmul.mubr.msk.bf16.gmra.mrb[84].mxu0 %vm389_vm0, %v4011_v47 }
 0x4e2   : > { %v1835_v40 = vmax.f32 %v1833_v15, %v1834_v37  ;;  %714 = vmatprep.mubr.bf16.mxu0 %v8288_v12 }
 0x4e3   : > { %v1799_v1 = vrot.slane %v1798_v59, 4 }
 0x4e4   : > { %v1836_v14 = vrot.slane %v1835_v40, 4 }
 0x4e5   : > { %v1800_v46 = vmax.f32 %v1798_v59, %v1799_v1 }
 0x4e6   : > { %v1837_v18 = vmax.f32 %v1835_v40, %v1836_v14 }
 0x4e7   : > { %v1801_v57 = vrot.slane %v1800_v46, 2 }
 0x4e8   : > { %v1838_v25 = vrot.slane %v1837_v18, 2 }
 0x4e9   : > { %v1802_v48 = vmax.f32 %v1800_v46, %v1801_v57 }
 0x4ea   : > { %v1839_v27 = vmax.f32 %v1837_v18, %v1838_v25  ;;  %v4012_v18 = vld [vmem:[%s7927_s1 + $0xb0] sm:$0xff]  }
 0x4eb   : > { %v1803_v54 = vrot.slane %v1802_v48, 1  ;;  %3865 = vmatmul.mubr.msk.bf16.gmra.mrb[88].mxu0 %vm389_vm0, %v4012_v18 }
 0x4ec   : > { %v1840_v15 = vrot.slane %v1839_v27, 1  ;;  %724 = vmatprep.mubr.bf16.mxu0 %v8288_v12 }
 0x4ed   : > { %v5873_v8 = vmax.f32 %v1802_v48, %v1803_v54  ;;  %v5888_v48 = vpop.f32.mrb[72].mxu0 }
 0x4ee   : > { %v5875_v37 = vmax.f32 %v1839_v27, %v1840_v15  ;;  %8365 = vst [vmem:[#allocation48_spill] sm:$0xff] %v5888_v48  ;;  %v5898_v4 = vpop.f32.mrb[73].mxu0 }
 0x4ef   : > { %v1842_v59 = vsub.f32 %v5671_v63, %v5873_v8  ;;  %v1844_v40 = vsub.f32 %v5675_v24, %v5873_v8  ;;  %v1846_v46 = vsub.f32 %v5679_v28, %v5873_v8  ;;  %v1848_v57 = vsub.f32 %v5687_v43, %v5873_v8  ;;  %8366 = vst [vmem:[#allocation49_spill] sm:$0xff] %v5898_v4  ;;  %v5908_v14 = vpop.f32.mrb[74].mxu0 }
 0x4f0   : > { %v1850_v27 = vsub.f32 %v5695_v19, %v5873_v8  ;;  %v1852_v63 = vsub.f32 %v5701_v55, %v5873_v8  ;;  %v1854_v24 = vsub.f32 %v5707_v36, %v5873_v8  ;;  %v1856_v28 = vsub.f32 %v5713_v22, %v5873_v8 }
 0x4f1   : > { %v1858_v43 = vsub.f32 %v5719_v61, %v5873_v8  ;;  %v1860_v1 = vsub.f32 %v5725_v20, %v5873_v8  ;;  %v1862_v19 = vsub.f32 %v5731_v34, %v5873_v8  ;;  %v1864_v55 = vsub.f32 %v5737_v10, %v5873_v8  ;;  %v5919_v34 = vpop.f32.mrb[75].mxu0 }
 0x4f2   : > { %v1866_v36 = vsub.f32 %v5743_v41, %v5873_v8  ;;  %v1868_v22 = vsub.f32 %v5749_v0, %v5873_v8  ;;  %v1870_v61 = vsub.f32 %v5755_v17, %v5873_v8  ;;  %v1872_v20 = vsub.f32 %v5761_v53, %v5873_v8  ;;  %8367 = vst [vmem:[#allocation50_spill] sm:$0xff] %v5919_v34  ;;  %v5930_v17 = vpop.f32.mrb[76].mxu0 }
 0x4f3   : > { %v1874_v10 = vsub.f32 %v5767_v33, %v5873_v8  ;;  %v1876_v25 = vsub.f32 %v5773_v13, %v5873_v8  ;;  %v1878_v41 = vsub.f32 %v5779_v5, %v5873_v8  ;;  %v1880_v0 = vsub.f32 %v5785_v60, %v5873_v8  ;;  %8368 = vst [vmem:[#allocation8_spill] sm:$0xff] %v5930_v17  ;;  %v5940_v5 = vpop.f32.mrb[77].mxu0 }
 0x4f4   : > { %v1882_v53 = vsub.f32 %v5791_v49, %v5873_v8  ;;  %v1884_v47 = vsub.f32 %v5797_v62, %v5873_v8  ;;  %v1886_v33 = vsub.f32 %v5803_v58, %v5873_v8  ;;  %v1888_v13 = vsub.f32 %v5809_v23, %v5873_v8  ;;  %8369 = vst [vmem:[#allocation6_spill] sm:$0xff] %v5940_v5  ;;  %v5950_v15 = vpop.f32.mrb[78].mxu0  ;;  %v4013_v49 = vld [vmem:[%s7927_s1 + $0xb8] sm:$0xff]  }
 0x4f5   : > { %8370 = vst [vmem:[#allocation7_spill] sm:$0xff] %v5950_v15  ;;  %v5963_v60 = vpop.f32.mrb[79].mxu0  ;;  %v1906_v62 = vmul.f32 1.442695, %v1842_v59  ;;  %v1910_v12 = vmul.f32 1.442695, %v1844_v40  ;;  %3866 = vmatmul.mubr.msk.bf16.gmra.mrb[92].mxu0 %vm389_vm0, %v4013_v49 }
 0x4f6   : > { %8371 = vst [vmem:[#allocation5_spill] sm:$0xff] %v5963_v60  ;;  %v1914_v5 = vmul.f32 1.442695, %v1846_v46  ;;  %v1918_v15 = vmul.f32 1.442695, %v1848_v57 }
 0x4f7   : > { %4148 = vpow2.f32 %v1906_v62  ;;  %v1922_v18 = vmul.f32 1.442695, %v1850_v27  ;;  %v1926_v54 = vmul.f32 1.442695, %v1852_v63  ;;  %v1930_v17 = vmul.f32 1.442695, %v1854_v24 }
 0x4f8   : > { %4150 = vpow2.f32 %v1910_v12  ;;  %v1934_v60 = vmul.f32 1.442695, %v1856_v28  ;;  %v1938_v59 = vmul.f32 1.442695, %v1858_v43  ;;  %v1942_v40 = vmul.f32 1.442695, %v1860_v1 }
 0x4f9   : > { %4152 = vpow2.f32 %v1914_v5  ;;  %v1946_v46 = vmul.f32 1.442695, %v1862_v19  ;;  %v1950_v34 = vmul.f32 1.442695, %v1864_v55  ;;  %v1954_v58 = vmul.f32 1.442695, %v1866_v36 }
 0x4fa   : > { %4154 = vpow2.f32 %v1918_v15  ;;  %v1958_v57 = vmul.f32 1.442695, %v1868_v22  ;;  %v1962_v4 = vmul.f32 1.442695, %v1870_v61  ;;  %v1966_v23 = vmul.f32 1.442695, %v1872_v20 }
 0x4fb   : > { %4156 = vpow2.f32 %v1922_v18  ;;  %v1970_v27 = vmul.f32 1.442695, %v1874_v10  ;;  %v1974_v12 = vmul.f32 1.442695, %v1876_v25  ;;  %v1978_v63 = vmul.f32 1.442695, %v1878_v41 }
 0x4fc   : > { %4158 = vpow2.f32 %v1926_v54  ;;  %v1982_v49 = vmul.f32 1.442695, %v1880_v0  ;;  %v1986_v5 = vmul.f32 1.442695, %v1882_v53  ;;  %v5970_v24 = vmul.f32 1.442695, %v1884_v47 }
 0x4fd   : > { %4160 = vpow2.f32 %v1930_v17  ;;  %v5972_v28 = vmul.f32 1.442695, %v1886_v33  ;;  %v5974_v43 = vmul.f32 1.442695, %v1888_v13  ;;  %v8372_v54 = vld [vmem:[#allocation51_spill] sm:$0xff]  ;;  %v8373_v15 = vld [vmem:[#allocation52_spill] sm:$0xff] }
 0x4fe   : > { %4162 = vpow2.f32 %v1934_v60  ;;  %v8376_v60 = vld [vmem:[#allocation54_spill] sm:$0xff]  ;;  %v8377_v17 = vld [vmem:[#allocation56_spill] sm:$0xff] }
 0x4ff   : > { %4164 = vpow2.f32 %v1938_v59  ;;  %v8378_v0 = vld [vmem:[#allocation34_spill] sm:$0xff]  ;;  %v8380_v10 = vld [vmem:[#allocation36_spill] sm:$0xff] }
 0x500   : > { %4166 = vpow2.f32 %v1942_v40  ;;  %v8374_v40 = vld [vmem:[#allocation53_spill] sm:$0xff]  ;;  %v8387_v61 = vld [vmem:[#allocation44_spill] sm:$0xff] }
 0x501   : > { %v5984_v22 = vpop.eup %4148  ;;  %4168 = vpow2.f32 %v1946_v46  ;;  %v8379_v46 = vld [vmem:[#allocation35_spill] sm:$0xff] }
 0x502   : > { %v5992_v25 = vpop.eup %4150  ;;  %4170 = vpow2.f32 %v1950_v34  ;;  %v8375_v34 = vld [vmem:[#allocation55_spill] sm:$0xff] }
 0x503   : > { %v6000_v53 = vpop.eup %4152  ;;  %4172 = vpow2.f32 %v1954_v58  ;;  %v2034_v47 = vadd.f32 %v5992_v25, %v5984_v22  ;;  %v8386_v58 = vld [vmem:[#allocation42_spill] sm:$0xff] }
 0x504   : > { %v6008_v13 = vpop.eup %4154  ;;  %4174 = vpow2.f32 %v1958_v57  ;;  %v8384_v57 = vld [vmem:[#allocation40_spill] sm:$0xff] }
 0x505   : > { %v6016_v18 = vpop.eup %4156  ;;  %4176 = vpow2.f32 %v1962_v4  ;;  %v2035_v59 = vadd.f32 %v6000_v53, %v2034_v47 }
 0x506   : > { %v6023_v33 = vpop.eup %4158  ;;  %4178 = vpow2.f32 %v1966_v23 }
 0x507   : > { %v6031_v41 = vpop.eup %4160  ;;  %4180 = vpow2.f32 %v1970_v27  ;;  %v2036_v47 = vadd.f32 %v6008_v13, %v2035_v59 }
 0x508   : > { %v6038_v20 = vpop.eup %4162  ;;  %4182 = vpow2.f32 %v1974_v12 }
 0x509   : > { %v6046_v55 = vpop.eup %4164  ;;  %4184 = vpow2.f32 %v1978_v63  ;;  %v2037_v59 = vadd.f32 %v6016_v18, %v2036_v47  ;;  %v8390_v47 = vsub.f32 %v5815_v9, %v5873_v8 }
 0x50a   : > { %v6053_v1 = vpop.eup %4166  ;;  %4186 = vpow2.f32 %v1982_v49  ;;  %v8391_v49 = vsub.f32 %v5821_v45, %v5873_v8 }
 0x50b   : > { %v6061_v62 = vpop.eup %4168  ;;  %4188 = vpow2.f32 %v1986_v5  ;;  %v2002_v23 = vmul.f32 1.442695, %v8390_v47  ;;  %v2038_v12 = vadd.f32 %v6023_v33, %v2037_v59  ;;  %v8393_v5 = vsub.f32 %v5827_v11, %v5873_v8 }
 0x50c   : > { %8389 = vst [vmem:[#allocation12_spill] sm:$0xff] %v6061_v62  ;;  %v6067_v19 = vpop.eup %4170  ;;  %4190 = vpow2.f32 %v5970_v24  ;;  %v2006_v27 = vmul.f32 1.442695, %v8391_v49  ;;  %v8395_v24 = vsub.f32 %v5833_v30, %v5873_v8  ;;  %v8398_v30 = vsub.f32 %v5851_v44, %v5873_v8 }
 0x50d   : > { %v6073_v4 = vpop.eup %4172  ;;  %4192 = vpow2.f32 %v5972_v28  ;;  %v2010_v63 = vmul.f32 1.442695, %v8393_v5  ;;  %v2039_v9 = vadd.f32 %v6031_v41, %v2038_v12  ;;  %v8396_v28 = vsub.f32 %v5839_v6, %v5873_v8 }
 0x50e   : > { %8392 = vst [vmem:[#allocation10_spill] sm:$0xff] %v6073_v4  ;;  %v6080_v47 = vpop.eup %4174  ;;  %4194 = vpow2.f32 %v5974_v43  ;;  %v2014_v59 = vmul.f32 1.442695, %v8395_v24  ;;  %v8397_v12 = vsub.f32 %v5845_v39, %v5873_v8  ;;  %v8401_v44 = vsub.f32 %v5677_v35, %v5875_v37 }
 0x50f   : > { %8394 = vst [vmem:[#allocation11_spill] sm:$0xff] %v6080_v47  ;;  %v6086_v45 = vpop.eup %4176  ;;  %4196 = vpow2.f32 %v2002_v23  ;;  %v2018_v49 = vmul.f32 1.442695, %v8396_v28  ;;  %v2040_v11 = vadd.f32 %v6038_v20, %v2039_v9  ;;  %v2026_v23 = vmul.f32 1.442695, %v8398_v30 }
 0x510   : > { %v6092_v5 = vpop.eup %4178  ;;  %4198 = vpow2.f32 %v2006_v27  ;;  %v2022_v43 = vmul.f32 1.442695, %v8397_v12  ;;  %v8399_v9 = vsub.f32 %v5857_v29, %v5873_v8  ;;  %v8402_v29 = vsub.f32 %v5683_v3, %v5875_v37 }
 0x511   : > { %v6097_v36 = vpop.eup %4180  ;;  %4200 = vpow2.f32 %v2010_v63  ;;  %v2041_v24 = vadd.f32 %v6046_v55, %v2040_v11  ;;  %v8400_v63 = vsub.f32 %v5673_v56, %v5875_v37  ;;  %v1912_v11 = vmul.f32 1.442695, %v8401_v44 }
 0x512   : > { %v6103_v6 = vpop.eup %4182  ;;  %4202 = vpow2.f32 %v2014_v59  ;;  %v2030_v27 = vmul.f32 1.442695, %v8399_v9  ;;  %v1916_v8 = vmul.f32 1.442695, %v8402_v29  ;;  %v8403_v59 = vsub.f32 %v5691_v38, %v5875_v37 }
 0x513   : > { %v6108_v28 = vpop.eup %4184  ;;  %4204 = vpow2.f32 %v2018_v49  ;;  %v2042_v39 = vadd.f32 %v6053_v1, %v2041_v24  ;;  %v1908_v12 = vmul.f32 1.442695, %v8400_v63  ;;  %v8404_v24 = vsub.f32 %v5698_v21, %v5875_v37 }
 0x514   : > { %v6117_v30 = vpop.eup %4186  ;;  %4206 = vpow2.f32 %v2022_v43  ;;  %v1920_v49 = vmul.f32 1.442695, %v8403_v59  ;;  %v8405_v43 = vsub.f32 %v5704_v42, %v5875_v37  ;;  %v8406_v3 = vsub.f32 %v5710_v16, %v5875_v37 }
 0x515   : > { %v1924_v56 = vmul.f32 1.442695, %v8404_v24  ;;  %v6128_v9 = vpop.eup %4188  ;;  %4208 = vpow2.f32 %v2026_v23  ;;  %v2043_v35 = vadd.f32 %v6061_v62, %v2042_v39  ;;  %v8407_v38 = vsub.f32 %v5716_v32, %v5875_v37 }
 0x516   : > { %v1928_v63 = vmul.f32 1.442695, %v8405_v43  ;;  %v1932_v44 = vmul.f32 1.442695, %v8406_v3  ;;  %v6137_v29 = vpop.eup %4190  ;;  %4210 = vpow2.f32 %v2030_v27  ;;  %v8408_v23 = vsub.f32 %v5722_v7, %v5875_v37  ;;  %v8415_v7 = vld [vmem:[#allocation7_spill] sm:$0xff] }
 0x517   : > { %v1936_v21 = vmul.f32 1.442695, %v8407_v38  ;;  %v8409_v39 = vsub.f32 %v5728_v26, %v5875_v37  ;;  %v6148_v24 = vpop.eup %4192  ;;  %v2044_v16 = vadd.f32 %v6067_v19, %v2043_v35  ;;  %4212 = vpow2.f32 %v1908_v12  ;;  %v8413_v12 = vld [vmem:[#allocation50_spill] sm:$0xff] }
 0x518   : > { %v1940_v59 = vmul.f32 1.442695, %v8408_v23  ;;  %v8410_v27 = vsub.f32 %v5734_v50, %v5875_v37  ;;  %v8411_v32 = vsub.f32 %v5740_v52, %v5875_v37  ;;  %v6157_v38 = vpop.eup %4194  ;;  %4214 = vpow2.f32 %v1912_v11 }
 0x519   : > { %v1944_v42 = vmul.f32 1.442695, %v8409_v39  ;;  %v6165_v35 = vpop.eup %4196  ;;  %v2045_v50 = vadd.f32 %v6073_v4, %v2044_v16  ;;  %4216 = vpow2.f32 %v1916_v8  ;;  %v8416_v4 = vld [vmem:[#allocation6_spill] sm:$0xff] }
 0x51a   : > { %v1948_v43 = vmul.f32 1.442695, %v8410_v27  ;;  %v1952_v3 = vmul.f32 1.442695, %v8411_v32  ;;  %v6172_v23 = vpop.eup %4198  ;;  %4218 = vpow2.f32 %v1920_v49  ;;  %v8412_v27 = vld [vmem:[#allocation49_spill] sm:$0xff] }
 0x51b   : > { %v6180_v16 = vpop.eup %4200  ;;  %v2046_v8 = vadd.f32 %v6080_v47, %v2045_v50  ;;  %4220 = vpow2.f32 %v1924_v56  ;;  %v772_v32 = vpack.c.bf16 %v8413_v12, %v8412_v27  ;;  %v8417_v47 = vld [vmem:[#allocation5_spill] sm:$0xff]  ;;  %v8419_v12 = vsub.f32 %v5752_v51, %v5875_v37 }
 0x51c   : > { %v6187_v52 = vpop.eup %4202  ;;  %4222 = vpow2.f32 %v1928_v63  ;;  %v8418_v63 = vsub.f32 %v5746_v31, %v5875_v37  ;;  %v8422_v51 = vsub.f32 %v8373_v15, %v5875_v37 }
 0x51d   : > { %v6195_v50 = vpop.eup %4204  ;;  %v2047_v56 = vadd.f32 %v6086_v45, %v2046_v8  ;;  %4224 = vpow2.f32 %v1932_v44  ;;  %v1960_v27 = vmul.f32 1.442695, %v8419_v12  ;;  %2174 = vmatprep.mubr.bf16.mxu0 %v772_v32 }
 0x51e   : > { %v6202_v11 = vpop.eup %4206  ;;  %4226 = vpow2.f32 %v1936_v21  ;;  %v1956_v49 = vmul.f32 1.442695, %v8418_v63  ;;  %v1972_v32 = vmul.f32 1.442695, %v8422_v51 }
 0x51f   : > { %v6210_v8 = vpop.eup %4208  ;;  %v2048_v44 = vadd.f32 %v6092_v5, %v2047_v56  ;;  %4228 = vpow2.f32 %v1940_v59  ;;  %v8420_v59 = vsub.f32 %v5758_v2, %v5875_v37  ;;  %v8423_v56 = vsub.f32 %v8374_v40, %v5875_v37 }
 0x520   : > { %v6218_v48 = vpop.eup %4210  ;;  %4230 = vpow2.f32 %v1944_v42  ;;  %v8421_v42 = vsub.f32 %v8372_v54, %v5875_v37  ;;  %v8424_v54 = vsub.f32 %v8375_v34, %v5875_v37  ;;  %v8426_v40 = vsub.f32 %v8377_v17, %v5875_v37 }
 0x521   : > { %v4213_v39 = vpop.eup %4212  ;;  %v2049_v62 = vadd.f32 %v6097_v36, %v2048_v44  ;;  %4232 = vpow2.f32 %v1948_v43  ;;  %v1964_v31 = vmul.f32 1.442695, %v8420_v59  ;;  %v8427_v34 = vpack.c.bf16 %v5992_v25, %v5984_v22 }
 0x522   : > { %v4215_v63 = vpop.eup %4214  ;;  %4234 = vpow2.f32 %v1952_v3  ;;  %v1968_v21 = vmul.f32 1.442695, %v8421_v42  ;;  %v1976_v3 = vmul.f32 1.442695, %v8423_v56  ;;  %v1980_v42 = vmul.f32 1.442695, %v8424_v54 }
 0x523   : > { %v4217_v12 = vpop.eup %4216  ;;  %v2050_v43 = vadd.f32 %v6103_v6, %v2049_v62  ;;  %4236 = vpow2.f32 %v1956_v49  ;;  %v2071_v44 = vadd.f32 %v4215_v63, %v4213_v39  ;;  %v2111_v2 = vpack.c.bf16 %v4215_v63, %v4213_v39 }
 0x524   : > { %v4219_v59 = vpop.eup %4218  ;;  %4238 = vpow2.f32 %v1960_v27  ;;  %v8425_v39 = vsub.f32 %v8376_v60, %v5875_v37  ;;  %v1988_v56 = vmul.f32 1.442695, %v8426_v40  ;;  %v8428_v60 = vsub.f32 %v8378_v0, %v5875_v37 }
 0x525   : > { %v4221_v26 = vpop.eup %4220  ;;  %v2051_v15 = vadd.f32 %v6108_v28, %v2050_v43  ;;  %4240 = vpow2.f32 %v1964_v31  ;;  %v2072_v51 = vadd.f32 %v4217_v12, %v2071_v44  ;;  %2142 = vmatprep.subr.bf16.mxu0 %v2111_v2  ;;  %v2113_v62 = vpack.c.bf16 %v4219_v59, %v4217_v12 }
 0x526   : > { %v4223_v49 = vpop.eup %4222  ;;  %4242 = vpow2.f32 %v1968_v21  ;;  %v1984_v27 = vmul.f32 1.442695, %v8425_v39  ;;  %2143 = vmatpush1.bf16.msra.mxu0 %v8427_v34  ;;  %v1992_v44 = vmul.f32 1.442695, %v8428_v60  ;;  %v8429_v17 = vsub.f32 %v8379_v46, %v5875_v37  ;;  %v8434_v34 = vld [vmem:[#allocation38_spill] sm:$0xff] }
 0x527   : > { %v4225_v63 = vpop.eup %4224  ;;  %v2052_v31 = vadd.f32 %v6117_v30, %v2051_v15  ;;  %4244 = vpow2.f32 %v1972_v32  ;;  %v2073_v43 = vadd.f32 %v4219_v59, %v2072_v51  ;;  %2144 = vmatprep.subr.bf16.mxu0 %v2113_v62  ;;  %v2115_v12 = vpack.c.bf16 %v4223_v49, %v4221_v26  ;;  %v8431_v51 = vld [vmem:[#allocation37_spill] sm:$0xff] }
 0x528   : > { %v4227_v21 = vpop.eup %4226  ;;  %4246 = vpow2.f32 %v1976_v3  ;;  %v1996_v2 = vmul.f32 1.442695, %v8429_v17  ;;  %v8430_v59 = vsub.f32 %v8380_v10, %v5875_v37  ;;  %v8432_v0 = vsub.f32 %v8431_v51, %v5875_v37 }
 0x529   : > { %v4229_v54 = vpop.eup %4228  ;;  %v2053_v22 = vadd.f32 %v6128_v9, %v2052_v31  ;;  %4248 = vpow2.f32 %v1980_v42  ;;  %v2074_v25 = vadd.f32 %v4221_v26, %v2073_v43  ;;  %v2117_v15 = vpack.c.bf16 %v4227_v21, %v4225_v63  ;;  %v8436_v43 = vld [vmem:[#allocation39_spill] sm:$0xff] }
 0x52a   : > { %v4231_v32 = vpop.eup %4230  ;;  %4250 = vpow2.f32 %v1984_v27  ;;  %v2000_v3 = vmul.f32 1.442695, %v8430_v59  ;;  %v2004_v62 = vmul.f32 1.442695, %v8432_v0  ;;  %v8433_v46 = vpack.c.bf16 %v6008_v13, %v6000_v53 }
 0x52b   : > { %v4233_v39 = vpop.eup %4232  ;;  %v2054_v40 = vadd.f32 %v6137_v29, %v2053_v22  ;;  %4252 = vpow2.f32 %v1988_v56  ;;  %v2075_v26 = vadd.f32 %v4223_v49, %v2074_v25  ;;  %v2119_v42 = vpack.c.bf16 %v4231_v32, %v4229_v54 }
 0x52c   : > { %2145 = vmatpush1.bf16.msra.mxu0 %v8433_v46  ;;  %v4235_v27 = vpop.eup %4234  ;;  %4254 = vpow2.f32 %v1992_v44  ;;  %v8435_v10 = vsub.f32 %v8434_v34, %v5875_v37  ;;  %v8437_v60 = vsub.f32 %v8436_v43, %v5875_v37  ;;  %v8438_v49 = vsub.f32 %v8384_v57, %v5875_v37  ;;  %v8439_v44 = vld [vmem:[#allocation41_spill] sm:$0xff] }
 0x52d   : > { %2146 = vmatprep.subr.bf16.mxu0 %v2115_v12  ;;  %v4237_v59 = vpop.eup %4236  ;;  %v2055_v53 = vadd.f32 %v6148_v24, %v2054_v40  ;;  %4256 = vpow2.f32 %v1996_v2  ;;  %v2076_v13 = vadd.f32 %v4225_v63, %v2075_v26  ;;  %v2121_v22 = vpack.c.bf16 %v4235_v27, %v4233_v39 }
 0x52e   : > { %v2008_v31 = vmul.f32 1.442695, %v8435_v10  ;;  %v2012_v17 = vmul.f32 1.442695, %v8437_v60  ;;  %v4239_v56 = vpop.eup %4238  ;;  %4258 = vpow2.f32 %v2000_v3  ;;  %v2016_v12 = vmul.f32 1.442695, %v8438_v49 }
 0x52f   : > { %v8440_v25 = vsub.f32 %v8439_v44, %v5875_v37  ;;  %v8441_v0 = vpack.c.bf16 %v6023_v33, %v6016_v18  ;;  %v4241_v46 = vpop.eup %4240  ;;  %v2056_v40 = vadd.f32 %v6157_v38, %v2055_v53  ;;  %4260 = vpow2.f32 %v2004_v62 }
 0x530   : > { %v2077_v63 = vadd.f32 %v4227_v21, %v2076_v13  ;;  %v2123_v2 = vpack.c.bf16 %v4239_v56, %v4237_v59  ;;  %v4243_v3 = vpop.eup %4242  ;;  %4262 = vpow2.f32 %v2008_v31  ;;  %v8442_v57 = vsub.f32 %v8386_v58, %v5875_v37  ;;  %v8444_v21 = vld [vmem:[#allocation45_spill] sm:$0xff] }
 0x531   : > { %v2020_v51 = vmul.f32 1.442695, %v8440_v25  ;;  %2147 = vmatpush1.bf16.msra.mxu0 %v8441_v0  ;;  %v8443_v34 = vsub.f32 %v8387_v61, %v5875_v37  ;;  %v4245_v43 = vpop.eup %4244  ;;  %v2057_v33 = vadd.f32 %v6165_v35, %v2056_v40  ;;  %4264 = vpow2.f32 %v2012_v17 }
 0x532   : > { %2148 = vmatprep.subr.bf16.mxu0 %v2117_v15  ;;  %v2024_v26 = vmul.f32 1.442695, %v8442_v57  ;;  %v2078_v18 = vadd.f32 %v4229_v54, %v2077_v63  ;;  %v2125_v60 = vpack.c.bf16 %v4243_v3, %v4241_v46  ;;  %v4247_v62 = vpop.eup %4246  ;;  %4266 = vpow2.f32 %v2016_v12 }
 0x533   : > { %v2028_v10 = vmul.f32 1.442695, %v8443_v34  ;;  %v8445_v15 = vsub.f32 %v8444_v21, %v5875_v37  ;;  %v8446_v58 = vpack.c.bf16 %v6038_v20, %v6031_v41  ;;  %v4249_v53 = vpop.eup %4248  ;;  %v2058_v61 = vadd.f32 %v6172_v23, %v2057_v33  ;;  %v8448_v34 = vld [vmem:[#allocation12_spill] sm:$0xff] }
 0x534   : > { %4268 = vpow2.f32 %v2020_v51  ;;  %v2079_v13 = vadd.f32 %v4231_v32, %v2078_v18  ;;  %v2127_v49 = vpack.c.bf16 %v4247_v62, %v4245_v43  ;;  %v4251_v17 = vpop.eup %4250  ;;  %v8447_v20 = vpack.c.bf16 %v6053_v1, %v6046_v55 }
 0x535   : > { %v2032_v31 = vmul.f32 1.442695, %v8445_v15  ;;  %2149 = vmatpush1.bf16.msra.mxu0 %v8446_v58  ;;  %4270 = vpow2.f32 %v2024_v26  ;;  %v4253_v54 = vpop.eup %4252  ;;  %v2059_v12 = vadd.f32 %v6180_v16, %v2058_v61  ;;  %v2129_v37 = vpack.c.bf16 %v4251_v17, %v4249_v53  ;;  %v8451_v61 = vld [vmem:[#allocation10_spill] sm:$0xff] }
 0x536   : > { %2150 = vmatprep.subr.bf16.mxu0 %v2119_v42  ;;  %4272 = vpow2.f32 %v2028_v10  ;;  %v2080_v44 = vadd.f32 %v4233_v39, %v2079_v13  ;;  %v4255_v25 = vpop.eup %4254  ;;  %v8449_v10 = vpack.c.bf16 %v6067_v19, %v8448_v34 }
 0x537   : > { %4274 = vpow2.f32 %v2032_v31  ;;  %v4257_v41 = vpop.eup %4256  ;;  %v2060_v51 = vadd.f32 %v6187_v52, %v2059_v12  ;;  %v2131_v42 = vpack.c.bf16 %v4255_v25, %v4253_v54 }
 0x538   : > { %v2081_v32 = vadd.f32 %v4235_v27, %v2080_v44  ;;  %v4259_v0 = vpop.eup %4258 }
 0x539   : > { %2151 = vmatpush1.bf16.msra.mxu0 %v8447_v20  ;;  %v4261_v40 = vpop.eup %4260  ;;  %v2061_v63 = vadd.f32 %v6195_v50, %v2060_v51  ;;  %v2133_v26 = vpack.c.bf16 %v4259_v0, %v4257_v41 }
 0x53a   : > { %2152 = vmatprep.subr.bf16.mxu0 %v2121_v22  ;;  %v2082_v57 = vadd.f32 %v4237_v59, %v2081_v32  ;;  %v4263_v39 = vpop.eup %4262  ;;  %v8450_v59 = vld [vmem:[#allocation11_spill] sm:$0xff]  ;;  %v8453_v32 = vpack.c.bf16 %v6092_v5, %v6086_v45  ;;  %v8456_v45 = vpack.c.bf16 %v6137_v29, %v6128_v9  ;;  %v8459_v9 = vpack.c.bf16 %v6187_v52, %v6180_v16  ;;  %v8465_v52 = vld [vmem:[#allocation48_spill] sm:$0xff] }
 0x53b   : > { %v4265_v33 = vpop.eup %4264  ;;  %v2062_v1 = vadd.f32 %v6202_v11, %v2061_v63  ;;  %v2135_v18 = vpack.c.bf16 %v4263_v39, %v4261_v40  ;;  %v8452_v13 = vpack.c.bf16 %v8450_v59, %v8451_v61  ;;  %v8466_v16 = vpack.c.bf16 %v5908_v14, %v8465_v52 }
 0x53c   : > { %v2083_v55 = vadd.f32 %v4239_v56, %v2082_v57  ;;  %v4267_v27 = vpop.eup %4266  ;;  %v8454_v57 = vpack.c.bf16 %v6103_v6, %v6097_v36  ;;  %v8457_v36 = vpack.c.bf16 %v6157_v38, %v6148_v24  ;;  %v8460_v24 = vpack.c.bf16 %v6202_v11, %v6195_v50  ;;  %v8471_v50 = vld [vmem:[#allocation20_spill] sm:$0xff] }
 0x53d   : > { %2153 = vmatpush1.bf16.msra.mxu0 %v8449_v10  ;;  %v2063_v21 = vadd.f32 %v6210_v8, %v2062_v1  ;;  %v2137_v31 = vpack.c.bf16 %v4267_v27, %v4265_v33  ;;  %v8470_v11 = vpack.c.bf16 %v8417_v47, %v8416_v4  ;;  %v2215_v1 = vpop.trf.xlu0 }
 0x53e   : > { %2154 = vmatprep.subr.bf16.mxu0 %v2123_v2  ;;  %v4269_v22 = vpop.eup %4268  ;;  %v2084_v15 = vadd.f32 %v4241_v46, %v2083_v55 }
 0x53f   : > { %v4271_v58 = vpop.eup %4270  ;;  %v6316_v19 = vadd.f32 %v6218_v48, %v2063_v21  ;;  %v2231_v21 = vpop.trf.xlu1 }
 0x540   : > { %v4273_v12 = vpop.eup %4272  ;;  %v2085_v44 = vadd.f32 %v4243_v3, %v2084_v15  ;;  %v2139_v56 = vpack.c.bf16 %v4271_v58, %v4269_v22  ;;  %v8455_v3 = vpack.c.bf16 %v6117_v30, %v6108_v28  ;;  %v8458_v28 = vpack.c.bf16 %v6172_v23, %v6165_v35  ;;  %v8462_v23 = vld [vmem:[#allocation16_spill] sm:$0xff] }
 0x541   : > { %2155 = vmatpush1.bf16.msra.mxu0 %v8452_v13  ;;  %v4275_v2 = vpop.eup %4274  ;;  %v8461_v35 = vpack.c.bf16 %v6218_v48, %v6210_v8  ;;  %v8474_v8 = vld [vmem:[#allocation19_spill] sm:$0xff]  ;;  %v2216_v4 = vpop.trf.xlu0 }
 0x542   : > { %2156 = vmatprep.subr.bf16.mxu0 %v2125_v60  ;;  %v2086_v20 = vadd.f32 %v4245_v43, %v2085_v44  ;;  %v2141_v51 = vpack.c.bf16 %v4275_v2, %v4273_v12 }
 0x544   : > { %v2087_v46 = vadd.f32 %v4247_v62, %v2086_v20 }
 0x545   : > { %2157 = vmatpush1.bf16.msra.mxu0 %v8453_v32  ;;  %v2217_v47 = vpop.trf.xlu0 }
 0x546   : > { %2158 = vmatprep.subr.bf16.mxu0 %v2127_v49  ;;  %v2088_v63 = vadd.f32 %v4249_v53, %v2087_v46 }
 0x548   : > { %v2089_v34 = vadd.f32 %v4251_v17, %v2088_v63 }
 0x549   : > { %2159 = vmatpush1.bf16.msra.mxu0 %v8454_v57  ;;  %v2218_v55 = vpop.trf.xlu0 }
 0x54a   : > { %2160 = vmatprep.subr.bf16.mxu0 %v2129_v37  ;;  %v2090_v10 = vadd.f32 %v4253_v54, %v2089_v34  ;;  %v8463_v54 = vld [vmem:[#allocation14_spill] sm:$0xff] }
 0x54b   : > { %v8464_v37 = vpack.c.bf16 %v8462_v23, %v8463_v54 }
 0x54c   : > { %v2091_v43 = vadd.f32 %v4255_v25, %v2090_v10  ;;  %v8467_v25 = vld [vmem:[#allocation15_spill] sm:$0xff] }
 0x54d   : > { %2161 = vmatpush1.bf16.msra.mxu0 %v8455_v3 }
 0x54e   : > { %2162 = vmatprep.subr.bf16.mxu0 %v2131_v42  ;;  %v2092_v60 = vadd.f32 %v4257_v41, %v2091_v43  ;;  %v8468_v41 = vld [vmem:[#allocation13_spill] sm:$0xff] }
 0x54f   : > { %v8469_v42 = vpack.c.bf16 %v8467_v25, %v8468_v41 }
 0x550   : > { %v2093_v5 = vadd.f32 %v4259_v0, %v2092_v60  ;;  %v8472_v0 = vld [vmem:[#allocation18_spill] sm:$0xff] }
 0x551   : > { %2163 = vmatpush1.bf16.msra.mxu0 %v8456_v45  ;;  %v8473_v48 = vpack.c.bf16 %v8471_v50, %v8472_v0 }
 0x552   : > { %2164 = vmatprep.subr.bf16.mxu0 %v2133_v26  ;;  %v2094_v62 = vadd.f32 %v4261_v40, %v2093_v5  ;;  %v8475_v40 = vld [vmem:[#allocation17_spill] sm:$0xff] }
 0x553   : > { %v8476_v26 = vpack.c.bf16 %v8474_v8, %v8475_v40 }
 0x554   : > { %v2095_v6 = vadd.f32 %v4263_v39, %v2094_v62  ;;  %v8477_v39 = vld [vmem:[#allocation8_spill] sm:$0xff] }
 0x555   : > { %2165 = vmatpush1.bf16.msra.mxu0 %v8457_v36  ;;  %v8478_v14 = vpack.c.bf16 %v8415_v7, %v8477_v39  ;;  %v2219_v7 = vpop.trf.xlu0 }
 0x556   : > { %2166 = vmatprep.subr.bf16.mxu0 %v2135_v18  ;;  %v2096_v53 = vadd.f32 %v4265_v33, %v2095_v6  ;;  %v8479_v33 = vmov 0  }
 0x558   : > { %v2097_v30 = vadd.f32 %v4267_v27, %v2096_v53 }
 0x559   : > { %2167 = vmatpush1.bf16.msra.mxu0 %v8458_v28  ;;  %v2220_v18 = vpop.trf.xlu0 }
 0x55a   : > { %2168 = vmatprep.subr.bf16.mxu0 %v2137_v31  ;;  %v2098_v49 = vadd.f32 %v4269_v22, %v2097_v30 }
 0x55c   : > { %v2099_v29 = vadd.f32 %v4271_v58, %v2098_v49 }
 0x55d   : > { %2169 = vmatpush1.bf16.msra.mxu0 %v8459_v9  ;;  %v2221_v27 = vpop.trf.xlu0 }
 0x55e   : > { %2170 = vmatprep.subr.bf16.mxu0 %v2139_v56  ;;  %v2100_v17 = vadd.f32 %v4273_v12, %v2099_v29  ;;  %v2232_v12 = vpop.trf.xlu1  ;;  %v2065_v29 = vrot.slane %v6316_v19, 4 }
 0x560   : > { %v6342_v38 = vadd.f32 %v4275_v2, %v2100_v17 }
 0x561   : > { %2171 = vmatpush1.bf16.msra.mxu0 %v8460_v24  ;;  %v2222_v22 = vpop.trf.xlu0  ;;  %v2066_v24 = vadd.f32 %v2065_v29, %v6316_v19 }
 0x562   : > { %2172 = vmatprep.subr.bf16.mxu0 %v2141_v51  ;;  %v2233_v46 = vpop.trf.xlu1  ;;  %v2102_v17 = vrot.slane %v6342_v38, 4 }
 0x563   : > { %v2067_v23 = vrot.slane %v2066_v24, 2 }
 0x565   : > { %2173 = vmatpush1.bf16.msra.mxu0 %v8461_v35  ;;  %v2103_v35 = vadd.f32 %v2102_v17, %v6342_v38 }
 0x566   : > { %2287 = vmatprep.subr.bf16.mxu0 %v8464_v37  ;;  %v2234_v60 = vpop.trf.xlu1  ;;  %v2068_v37 = vadd.f32 %v2067_v23, %v2066_v24 }
 0x567   : > { %v2104_v54 = vrot.slane %v2103_v35, 2 }
 0x568   : > { %2175 = vmatmul.mubr.bf16.vlgmr.msra.gmra.mrb[96].mxu0 %v8466_v16  ;;  %v2069_v16 = vrot.slane %v2068_v37, 1 }
 0x569   : > { %2288 = vmatpush1.bf16.msra.mxu0 %v8469_v42  ;;  %2184 = vmatprep.mubr.bf16.mxu0 %v8470_v11  ;;  %v2105_v52 = vadd.f32 %v2104_v54, %v2103_v35 }
 0x56a   : > { %2289 = vmatprep.subr.bf16.mxu0 %v8473_v48  ;;  %v2235_v28 = vpop.trf.xlu1  ;;  %v2070_v41 = vadd.f32 %v2069_v16, %v2068_v37 }
 0x56b   : > { %v2106_v25 = vrot.slane %v2105_v52, 1 }
 0x56c   : > { %4276 = vrcp.f32 %v2070_v41 }
 0x56d   : > { %2290 = vmatpush1.bf16.msra.mxu0 %v8476_v26  ;;  %v2107_v42 = vadd.f32 %v2106_v25, %v2105_v52 }
 0x56e   : > { %v2236_v30 = vpop.trf.xlu1 }
 0x56f   : > { %4278 = vrcp.f32 %v2107_v42 }
 0x570   : > { %2185 = vmatmul.mubr.bf16.gmra.mrb[100].mxu0 %v8478_v14 }
 0x571   : > { %2319 = vmatprep.mubr.bf16.mxu0 %v8479_v33 }
 0x572   : > { %v2237_v49 = vpop.trf.xlu1 }
 0x576   : > { %v2238_v9 = vpop.trf.xlu1  ;;  %v4277_v11 = vpop.eup %4276 }
 0x578   : > { %3899 = vmatmul.mubr.msk.bf16.vlgmr.msra.gmra.mrb[104].mxu0 %vm389_vm0, %v2215_v1 }
 0x579   : > { %2329 = vmatprep.mubr.bf16.mxu0 %v8479_v33  ;;  %v4279_v0 = vpop.eup %4278 }
 0x580   : > { %3900 = vmatmul.mubr.msk.bf16.gmra.mrb[108].mxu0 %vm389_vm0, %v2216_v4 }
 0x581   : > { %2339 = vmatprep.mubr.bf16.mxu0 %v8479_v33 }
 0x588   : > { %3901 = vmatmul.mubr.msk.bf16.gmra.mrb[112].mxu0 %vm389_vm0, %v2217_v47 }
 0x589   : > { %2349 = vmatprep.mubr.bf16.mxu0 %v8479_v33 }
 0x590   : > { %3902 = vmatmul.mubr.msk.bf16.gmra.mrb[116].mxu0 %vm389_vm0, %v2218_v55 }
 0x591   : > { %2359 = vmatprep.mubr.bf16.mxu0 %v8479_v33 }
 0x598   : > { %3903 = vmatmul.mubr.msk.bf16.gmra.mrb[120].mxu0 %vm389_vm0, %v2219_v7 }
 0x599   : > { %2369 = vmatprep.mubr.bf16.mxu0 %v8479_v33 }
 0x5a0   : > { %3904 = vmatmul.mubr.msk.bf16.gmra.mrb[124].mxu0 %vm389_vm0, %v2220_v18 }
 0x5a1   : > { %2379 = vmatprep.mubr.bf16.mxu0 %v8479_v33 }
 0x5a8   : > { %3905 = vmatmul.mubr.msk.bf16.gmra.mrb[128].mxu0 %vm389_vm0, %v2221_v27 }
 0x5a9   : > { %2389 = vmatprep.mubr.bf16.mxu0 %v8479_v33 }
 0x5ac   : > { %v6385_v15 = vpop.f32.mrb[80].mxu0 }
 0x5ad   : > { %8480 = vst [vmem:[#allocation9_spill] sm:$0xff] %v6385_v15  ;;  %v698_v31 = vpop.f32.mrb[81].mxu0 }
 0x5ae   : > { %v6388_v58 = vpop.f32.mrb[82].mxu0 }
 0x5af   : > { %8481 = vst [vmem:[#allocation58_spill] sm:$0xff] %v6388_v58  ;;  %v702_v61 = vpop.f32.mrb[83].mxu0 }
 0x5b0   : > { %3906 = vmatmul.mubr.msk.bf16.gmra.mrb[132].mxu0 %vm389_vm0, %v2222_v22  ;;  %v776_v13 = vpack.c.bf16 %v702_v61, %v698_v31 }
 0x5b1   : > { %2399 = vmatprep.mubr.bf16.mxu0 %v8479_v33 }
 0x5b2   : > { %2886 = vmatprep.mubr.bf16.mxu1 %v776_v13 }
 0x5b4   : > { %v6393_v44 = vpop.f32.mrb[84].mxu0 }
 0x5b5   : > { %8482 = vst [vmem:[#allocation57_spill] sm:$0xff] %v6393_v44  ;;  %v6395_v56 = vpop.f32.mrb[85].mxu0 }
 0x5b6   : > { %8483 = vst [vmem:[#allocation51_spill] sm:$0xff] %v6395_v56  ;;  %v6398_v2 = vpop.f32.mrb[86].mxu0 }
 0x5b7   : > { %8484 = vst [vmem:[#allocation52_spill] sm:$0xff] %v6398_v2  ;;  %v6403_v51 = vpop.f32.mrb[87].mxu0 }
 0x5b8   : > { %3907 = vmatmul.mubr.msk.bf16.gmra.mrb[136].mxu0 %vm389_vm0, %v2231_v21  ;;  %8485 = vst [vmem:[#allocation53_spill] sm:$0xff] %v6403_v51 }
 0x5b9   : > { %2409 = vmatprep.mubr.bf16.mxu0 %v8479_v33 }
 0x5be   : > { %v6407_v63 = vpop.f32.mrb[88].mxu0 }
 0x5bf   : > { %8486 = vst [vmem:[#allocation55_spill] sm:$0xff] %v6407_v63  ;;  %v718_v57 = vpop.f32.mrb[89].mxu0 }
 0x5c0   : > { %3908 = vmatmul.mubr.msk.bf16.gmra.mrb[140].mxu0 %vm389_vm0, %v2232_v12  ;;  %v6410_v34 = vpop.f32.mrb[90].mxu0 }
 0x5c1   : > { %2419 = vmatprep.mubr.bf16.mxu0 %v8479_v33  ;;  %8487 = vst [vmem:[#allocation54_spill] sm:$0xff] %v6410_v34  ;;  %v722_v3 = vpop.f32.mrb[91].mxu0 }
 0x5c2   : > { %v780_v43 = vpack.c.bf16 %v722_v3, %v718_v57 }
 0x5c8   : > { %3909 = vmatmul.mubr.msk.bf16.gmra.mrb[144].mxu0 %vm389_vm0, %v2233_v46  ;;  %v6415_v45 = vpop.f32.mrb[92].mxu0 }
 0x5c9   : > { %2429 = vmatprep.mubr.bf16.mxu0 %v8479_v33  ;;  %8488 = vst [vmem:[#allocation56_spill] sm:$0xff] %v6415_v45  ;;  %v6417_v5 = vpop.f32.mrb[93].mxu0 }
 0x5ca   : > { %8489 = vst [vmem:[#allocation34_spill] sm:$0xff] %v6417_v5  ;;  %v6420_v62 = vpop.f32.mrb[94].mxu0 }
 0x5cb   : > { %8490 = vst [vmem:[#allocation35_spill] sm:$0xff] %v6420_v62  ;;  %v6425_v6 = vpop.f32.mrb[95].mxu0 }
 0x5cc   : > { %8491 = vst [vmem:[#allocation36_spill] sm:$0xff] %v6425_v6 }
 0x5d0   : > { %3910 = vmatmul.mubr.msk.bf16.gmra.mrb[148].mxu0 %vm389_vm0, %v2234_v60 }
 0x5d1   : > { %2439 = vmatprep.mubr.bf16.mxu0 %v8479_v33 }
 0x5d8   : > { %3911 = vmatmul.mubr.msk.bf16.gmra.mrb[152].mxu0 %vm389_vm0, %v2235_v28 }
 0x5d9   : > { %2449 = vmatprep.mubr.bf16.mxu0 %v8479_v33 }
 0x5e0   : > { %3912 = vmatmul.mubr.msk.bf16.gmra.mrb[156].mxu0 %vm389_vm0, %v2236_v30 }
 0x5e1   : > { %2459 = vmatprep.mubr.bf16.mxu0 %v8479_v33 }
 0x5e8   : > { %3913 = vmatmul.mubr.msk.bf16.gmra.mrb[160].mxu0 %vm389_vm0, %v2237_v49 }
 0x5e9   : > { %2469 = vmatprep.mubr.bf16.mxu0 %v8479_v33 }
 0x5f0   : > { %3914 = vmatmul.mubr.msk.bf16.gmra.mrb[164].mxu0 %vm389_vm0, %v2238_v9 }
 0x5f1   : > { %3598 = vmatprep.mubr.bf16.mxu0 %v780_v43 }
 0x63b   : > { %v2176_v50 = vpop.f32.mrb[96].mxu0 }
 0x63c   : > { %v6440_v48 = vmul.f32 %v4277_v11, %v2176_v50  ;;  %v2178_v8 = vpop.f32.mrb[97].mxu0 }
 0x63d   : > { %v6442_v40 = vmul.f32 %v4279_v0, %v2178_v8  ;;  %v2180_v19 = vpop.f32.mrb[98].mxu0 }
 0x63e   : > { %8492 = vst [vmem:[#allocation40_spill] sm:$0xff] %v6440_v48  ;;  %v6444_v38 = vmul.f32 %v4277_v11, %v2180_v19  ;;  %v2182_v26 = vpop.f32.mrb[99].mxu0 }
 0x63f   : > { %8493 = vst [vmem:[#allocation42_spill] sm:$0xff] %v6442_v40  ;;  %v6446_v39 = vmul.f32 %v4279_v0, %v2182_v26 }
 0x640   : > { %8494 = vst [vmem:[#allocation44_spill] sm:$0xff] %v6444_v38 }
 0x641   : > { %8495 = vst [vmem:[#allocation49_spill] sm:$0xff] %v6446_v39 }
 0x643   : > { %v2186_v4 = vpop.f32.mrb[100].mxu0 }
 0x644   : > { %v6452_v47 = vmul.f32 %v4277_v11, %v2186_v4  ;;  %v2188_v55 = vpop.f32.mrb[101].mxu0 }
 0x645   : > { %v6454_v7 = vmul.f32 %v4279_v0, %v2188_v55  ;;  %v2190_v18 = vpop.f32.mrb[102].mxu0 }
 0x646   : > { %8496 = vst [vmem:[#allocation50_spill] sm:$0xff] %v6452_v47  ;;  %v6456_v27 = vmul.f32 %v4277_v11, %v2190_v18  ;;  %v2192_v22 = vpop.f32.mrb[103].mxu0 }
 0x647   : > { %8497 = vst [vmem:[#allocation7_spill] sm:$0xff] %v6454_v7  ;;  %v6458_v21 = vmul.f32 %v4279_v0, %v2192_v22 }
 0x648   : > { %8498 = vst [vmem:[#allocation6_spill] sm:$0xff] %v6456_v27 }
 0x649   : > { %8499 = vst [vmem:[#allocation5_spill] sm:$0xff] %v6458_v21 }
 0x64b   : > { %v6464_v13 = vpop.f32.mrb[104].mxu0 }
 0x64c   : > { %v6466_v12 = vpop.f32.mrb[105].mxu0 }
 0x64d   : > { %v6468_v46 = vpop.f32.mrb[106].mxu0 }
 0x64e   : > { %v6470_v57 = vpop.f32.mrb[107].mxu0 }
 0x653   : > { %v6472_v3 = vpop.f32.mrb[108].mxu0 }
 0x654   : > { %v2480_v43 = vmax.f32 %v6464_v13, %v6472_v3  ;;  %v6476_v60 = vpop.f32.mrb[109].mxu0 }
 0x655   : > { %v2517_v28 = vmax.f32 %v6466_v12, %v6476_v60  ;;  %v6480_v30 = vpop.f32.mrb[110].mxu0 }
 0x656   : > { %v2481_v49 = vmax.f32 %v6468_v46, %v6480_v30  ;;  %v6484_v9 = vpop.f32.mrb[111].mxu0 }
 0x657   : > { %v2518_v29 = vmax.f32 %v6470_v57, %v6484_v9 }
 0x65b   : > { %v6488_v17 = vpop.f32.mrb[112].mxu0 }
 0x65c   : > { %v2482_v24 = vmax.f32 %v2480_v43, %v6488_v17  ;;  %v6491_v35 = vpop.f32.mrb[113].mxu0 }
 0x65d   : > { %v2519_v23 = vmax.f32 %v2517_v28, %v6491_v35  ;;  %v6494_v54 = vpop.f32.mrb[114].mxu0 }
 0x65e   : > { %v2483_v37 = vmax.f32 %v2481_v49, %v6494_v54  ;;  %v6497_v52 = vpop.f32.mrb[115].mxu0 }
 0x65f   : > { %v2520_v16 = vmax.f32 %v2518_v29, %v6497_v52 }
 0x663   : > { %v6500_v25 = vpop.f32.mrb[116].mxu0 }
 0x664   : > { %v2484_v41 = vmax.f32 %v2482_v24, %v6500_v25  ;;  %v6503_v42 = vpop.f32.mrb[117].mxu0 }
 0x665   : > { %v2521_v11 = vmax.f32 %v2519_v23, %v6503_v42  ;;  %v6506_v50 = vpop.f32.mrb[118].mxu0 }
 0x666   : > { %v2485_v0 = vmax.f32 %v2483_v37, %v6506_v50  ;;  %v6509_v8 = vpop.f32.mrb[119].mxu0 }
 0x667   : > { %v2522_v19 = vmax.f32 %v2520_v16, %v6509_v8 }
 0x66b   : > { %v6512_v26 = vpop.f32.mrb[120].mxu0 }
 0x66c   : > { %v2486_v4 = vmax.f32 %v2484_v41, %v6512_v26  ;;  %v6515_v55 = vpop.f32.mrb[121].mxu0 }
 0x66d   : > { %v2523_v18 = vmax.f32 %v2521_v11, %v6515_v55  ;;  %v6518_v22 = vpop.f32.mrb[122].mxu0 }
 0x66e   : > { %v2487_v43 = vmax.f32 %v2485_v0, %v6518_v22  ;;  %v6521_v28 = vpop.f32.mrb[123].mxu0 }
 0x66f   : > { %v2524_v49 = vmax.f32 %v2522_v19, %v6521_v28 }
 0x673   : > { %v6524_v29 = vpop.f32.mrb[124].mxu0 }
 0x674   : > { %v2488_v24 = vmax.f32 %v2486_v4, %v6524_v29  ;;  %v6527_v23 = vpop.f32.mrb[125].mxu0 }
 0x675   : > { %v2525_v37 = vmax.f32 %v2523_v18, %v6527_v23  ;;  %v6530_v16 = vpop.f32.mrb[126].mxu0 }
 0x676   : > { %v2489_v41 = vmax.f32 %v2487_v43, %v6530_v16  ;;  %v6533_v11 = vpop.f32.mrb[127].mxu0 }
 0x677   : > { %8500 = vst [vmem:[#allocation37_spill] sm:$0xff] %v6533_v11  ;;  %v2526_v0 = vmax.f32 %v2524_v49, %v6533_v11 }
 0x67b   : > { %v6536_v31 = vpop.f32.mrb[128].mxu0 }
 0x67c   : > { %v2490_v19 = vmax.f32 %v2488_v24, %v6536_v31  ;;  %v6539_v61 = vpop.f32.mrb[129].mxu0 }
 0x67d   : > { %8501 = vst [vmem:[#allocation38_spill] sm:$0xff] %v6539_v61  ;;  %v2527_v4 = vmax.f32 %v2525_v37, %v6539_v61  ;;  %v6542_v14 = vpop.f32.mrb[130].mxu0 }
 0x67e   : > { %v2491_v18 = vmax.f32 %v2489_v41, %v6542_v14  ;;  %v6545_v36 = vpop.f32.mrb[131].mxu0 }
 0x67f   : > { %8502 = vst [vmem:[#allocation39_spill] sm:$0xff] %v6545_v36  ;;  %v2528_v43 = vmax.f32 %v2526_v0, %v6545_v36 }
 0x683   : > { %v6548_v1 = vpop.f32.mrb[132].mxu0 }
 0x684   : > { %v2492_v49 = vmax.f32 %v2490_v19, %v6548_v1  ;;  %v6551_v53 = vpop.f32.mrb[133].mxu0 }
 0x685   : > { %8503 = vst [vmem:[#allocation41_spill] sm:$0xff] %v6551_v53  ;;  %v2529_v24 = vmax.f32 %v2527_v4, %v6551_v53  ;;  %v6554_v10 = vpop.f32.mrb[134].mxu0 }
 0x686   : > { %v2493_v37 = vmax.f32 %v2491_v18, %v6554_v10  ;;  %v6557_v20 = vpop.f32.mrb[135].mxu0 }
 0x687   : > { %8504 = vst [vmem:[#allocation45_spill] sm:$0xff] %v6557_v20  ;;  %v2530_v41 = vmax.f32 %v2528_v43, %v6557_v20 }
 0x68b   : > { %v6560_v32 = vpop.f32.mrb[136].mxu0 }
 0x68c   : > { %v2494_v0 = vmax.f32 %v2492_v49, %v6560_v32  ;;  %v6563_v59 = vpop.f32.mrb[137].mxu0 }
 0x68d   : > { %8505 = vst [vmem:[#allocation12_spill] sm:$0xff] %v6563_v59  ;;  %v2531_v19 = vmax.f32 %v2529_v24, %v6563_v59  ;;  %v6566_v47 = vpop.f32.mrb[138].mxu0 }
 0x68e   : > { %v2495_v4 = vmax.f32 %v2493_v37, %v6566_v47  ;;  %v6569_v27 = vpop.f32.mrb[139].mxu0 }
 0x68f   : > { %8506 = vst [vmem:[#allocation11_spill] sm:$0xff] %v6569_v27  ;;  %v2532_v18 = vmax.f32 %v2530_v41, %v6569_v27 }
 0x693   : > { %v6572_v7 = vpop.f32.mrb[140].mxu0 }
 0x694   : > { %v2496_v43 = vmax.f32 %v2494_v0, %v6572_v7  ;;  %v6575_v21 = vpop.f32.mrb[141].mxu0 }
 0x695   : > { %8507 = vst [vmem:[#allocation10_spill] sm:$0xff] %v6575_v21  ;;  %v2533_v49 = vmax.f32 %v2531_v19, %v6575_v21  ;;  %v6578_v48 = vpop.f32.mrb[142].mxu0 }
 0x696   : > { %v2497_v24 = vmax.f32 %v2495_v4, %v6578_v48  ;;  %v6581_v38 = vpop.f32.mrb[143].mxu0 }
 0x697   : > { %8508 = vst [vmem:[#allocation16_spill] sm:$0xff] %v6581_v38  ;;  %v2534_v37 = vmax.f32 %v2532_v18, %v6581_v38 }
 0x69b   : > { %v6584_v45 = vpop.f32.mrb[144].mxu0 }
 0x69c   : > { %v2498_v41 = vmax.f32 %v2496_v43, %v6584_v45  ;;  %v6587_v62 = vpop.f32.mrb[145].mxu0 }
 0x69d   : > { %8509 = vst [vmem:[#allocation14_spill] sm:$0xff] %v6587_v62  ;;  %v2535_v0 = vmax.f32 %v2533_v49, %v6587_v62  ;;  %v6590_v40 = vpop.f32.mrb[146].mxu0 }
 0x69e   : > { %v2499_v19 = vmax.f32 %v2497_v24, %v6590_v40  ;;  %v6593_v39 = vpop.f32.mrb[147].mxu0 }
 0x69f   : > { %8510 = vst [vmem:[#allocation48_spill] sm:$0xff] %v6593_v39  ;;  %v2536_v4 = vmax.f32 %v2534_v37, %v6593_v39 }
 0x6a3   : > { %v6596_v5 = vpop.f32.mrb[148].mxu0 }
 0x6a4   : > { %v2500_v18 = vmax.f32 %v2498_v41, %v6596_v5  ;;  %v6599_v6 = vpop.f32.mrb[149].mxu0 }
 0x6a5   : > { %8511 = vst [vmem:[#allocation15_spill] sm:$0xff] %v6599_v6  ;;  %v2537_v43 = vmax.f32 %v2535_v0, %v6599_v6  ;;  %v6602_v63 = vpop.f32.mrb[150].mxu0 }
 0x6a6   : > { %v2501_v49 = vmax.f32 %v2499_v19, %v6602_v63  ;;  %v6605_v34 = vpop.f32.mrb[151].mxu0 }
 0x6a7   : > { %8512 = vst [vmem:[#allocation13_spill] sm:$0xff] %v6605_v34  ;;  %v2538_v24 = vmax.f32 %v2536_v4, %v6605_v34 }
 0x6ab   : > { %v6608_v33 = vpop.f32.mrb[152].mxu0 }
 0x6ac   : > { %v2502_v37 = vmax.f32 %v2500_v18, %v6608_v33  ;;  %v6611_v44 = vpop.f32.mrb[153].mxu0 }
 0x6ad   : > { %8513 = vst [vmem:[#allocation20_spill] sm:$0xff] %v6611_v44  ;;  %v2539_v41 = vmax.f32 %v2537_v43, %v6611_v44  ;;  %v6614_v2 = vpop.f32.mrb[154].mxu0 }
 0x6ae   : > { %v2503_v0 = vmax.f32 %v2501_v49, %v6614_v2  ;;  %v6617_v56 = vpop.f32.mrb[155].mxu0 }
 0x6af   : > { %8514 = vst [vmem:[#allocation18_spill] sm:$0xff] %v6617_v56  ;;  %v2540_v19 = vmax.f32 %v2538_v24, %v6617_v56 }
 0x6b3   : > { %v6620_v51 = vpop.f32.mrb[156].mxu0 }
 0x6b4   : > { %v2504_v4 = vmax.f32 %v2502_v37, %v6620_v51  ;;  %v6623_v15 = vpop.f32.mrb[157].mxu0 }
 0x6b5   : > { %8515 = vst [vmem:[#allocation19_spill] sm:$0xff] %v6623_v15  ;;  %v2541_v18 = vmax.f32 %v2539_v41, %v6623_v15  ;;  %v6626_v58 = vpop.f32.mrb[158].mxu0 }
 0x6b6   : > { %v2505_v43 = vmax.f32 %v2503_v0, %v6626_v58  ;;  %v6629_v44 = vpop.f32.mrb[159].mxu0 }
 0x6b7   : > { %8516 = vst [vmem:[#allocation17_spill] sm:$0xff] %v6629_v44  ;;  %v2542_v49 = vmax.f32 %v2540_v19, %v6629_v44 }
 0x6bb   : > { %v6632_v34 = vpop.f32.mrb[160].mxu0 }
 0x6bc   : > { %v2506_v24 = vmax.f32 %v2504_v4, %v6632_v34  ;;  %v6635_v56 = vpop.f32.mrb[161].mxu0 }
 0x6bd   : > { %8517 = vst [vmem:[#allocation8_spill] sm:$0xff] %v6635_v56  ;;  %v2543_v37 = vmax.f32 %v2541_v18, %v6635_v56  ;;  %v6638_v6 = vpop.f32.mrb[162].mxu0 }
 0x6be   : > { %v2507_v41 = vmax.f32 %v2505_v43, %v6638_v6  ;;  %v6641_v15 = vpop.f32.mrb[163].mxu0 }
 0x6bf   : > { %8518 = vst [vmem:[#allocation59_spill] sm:$0xff] %v6641_v15  ;;  %v2544_v0 = vmax.f32 %v2542_v49, %v6641_v15 }
 0x6c3   : > { %v6644_v39 = vpop.f32.mrb[164].mxu0 }
 0x6c4   : > { %v2508_v19 = vmax.f32 %v2506_v24, %v6644_v39  ;;  %v6647_v44 = vpop.f32.mrb[165].mxu0 }
 0x6c5   : > { %8519 = vst [vmem:[#allocation60_spill] sm:$0xff] %v6647_v44  ;;  %v2545_v4 = vmax.f32 %v2543_v37, %v6647_v44  ;;  %v6650_v62 = vpop.f32.mrb[166].mxu0 }
 0x6c6   : > { %v2509_v18 = vmax.f32 %v2507_v41, %v6650_v62  ;;  %v6653_v56 = vpop.f32.mrb[167].mxu0 }
 0x6c7   : > { %8520 = vst [vmem:[#allocation61_spill] sm:$0xff] %v6653_v56  ;;  %v2546_v43 = vmax.f32 %v2544_v0, %v6653_v56 }
 0x6c8   : > { %v2510_v38 = vmax.f32 %v2508_v19, %v2509_v18 }
 0x6c9   : > { %v2547_v21 = vmax.f32 %v2545_v4, %v2546_v43 }
 0x6ca   : > { %v2511_v27 = vrot.slane %v2510_v38, 4 }
 0x6cb   : > { %v2548_v49 = vrot.slane %v2547_v21, 4 }
 0x6cc   : > { %v2512_v15 = vmax.f32 %v2510_v38, %v2511_v27 }
 0x6cd   : > { %v2549_v59 = vmax.f32 %v2547_v21, %v2548_v49 }
 0x6ce   : > { %v2513_v20 = vrot.slane %v2512_v15, 2 }
 0x6cf   : > { %v2550_v24 = vrot.slane %v2549_v59, 2 }
 0x6d0   : > { %v2514_v53 = vmax.f32 %v2512_v15, %v2513_v20 }
 0x6d1   : > { %v2551_v36 = vmax.f32 %v2549_v59, %v2550_v24 }
 0x6d2   : > { %v2515_v61 = vrot.slane %v2514_v53, 1 }
 0x6d3   : > { %v2552_v37 = vrot.slane %v2551_v36, 1 }
 0x6d4   : > { %v6656_v44 = vmax.f32 %v2514_v53, %v2515_v61 }
 0x6d5   : > { %v6658_v11 = vmax.f32 %v2551_v36, %v2552_v37 }
 0x6d6   : > { %v2554_v41 = vsub.f32 %v6464_v13, %v6656_v44  ;;  %v2556_v0 = vsub.f32 %v6468_v46, %v6656_v44  ;;  %v2558_v38 = vsub.f32 %v6472_v3, %v6656_v44  ;;  %v2560_v27 = vsub.f32 %v6480_v30, %v6656_v44 }
 0x6d7   : > { %v2562_v15 = vsub.f32 %v6488_v17, %v6656_v44  ;;  %v2564_v59 = vsub.f32 %v6494_v54, %v6656_v44  ;;  %v2566_v20 = vsub.f32 %v6500_v25, %v6656_v44  ;;  %v2568_v36 = vsub.f32 %v6506_v50, %v6656_v44 }
 0x6d8   : > { %v2570_v53 = vsub.f32 %v6512_v26, %v6656_v44  ;;  %v2572_v21 = vsub.f32 %v6518_v22, %v6656_v44  ;;  %v2574_v61 = vsub.f32 %v6524_v29, %v6656_v44  ;;  %v2576_v13 = vsub.f32 %v6530_v16, %v6656_v44 }
 0x6d9   : > { %v2578_v46 = vsub.f32 %v6536_v31, %v6656_v44  ;;  %v2580_v3 = vsub.f32 %v6542_v14, %v6656_v44  ;;  %v2582_v30 = vsub.f32 %v6548_v1, %v6656_v44  ;;  %v2584_v17 = vsub.f32 %v6554_v10, %v6656_v44 }
 0x6da   : > { %v2586_v54 = vsub.f32 %v6560_v32, %v6656_v44  ;;  %v2588_v25 = vsub.f32 %v6566_v47, %v6656_v44  ;;  %v2590_v50 = vsub.f32 %v6572_v7, %v6656_v44  ;;  %v2592_v31 = vsub.f32 %v6578_v48, %v6656_v44  ;;  %v8540_v47 = vld [vmem:[#allocation60_spill] sm:$0xff] }
 0x6db   : > { %v2594_v14 = vsub.f32 %v6584_v45, %v6656_v44  ;;  %v2596_v1 = vsub.f32 %v6590_v40, %v6656_v44  ;;  %v2598_v10 = vsub.f32 %v6596_v5, %v6656_v44  ;;  %v2600_v32 = vsub.f32 %v6602_v63, %v6656_v44 }
 0x6dc   : > { %v2618_v22 = vmul.f32 1.442695, %v2554_v41  ;;  %v2622_v29 = vmul.f32 1.442695, %v2556_v0  ;;  %v2626_v16 = vmul.f32 1.442695, %v2558_v38 }
 0x6dd   : > { %v2630_v4 = vmul.f32 1.442695, %v2560_v27  ;;  %v2634_v43 = vmul.f32 1.442695, %v2562_v15  ;;  %v2638_v49 = vmul.f32 1.442695, %v2564_v59 }
 0x6de   : > { %4280 = vpow2.f32 %v2618_v22  ;;  %v2642_v24 = vmul.f32 1.442695, %v2566_v20  ;;  %v2646_v37 = vmul.f32 1.442695, %v2568_v36  ;;  %v2650_v63 = vmul.f32 1.442695, %v2570_v53 }
 0x6df   : > { %4282 = vpow2.f32 %v2622_v29  ;;  %v2654_v26 = vmul.f32 1.442695, %v2572_v21  ;;  %v2658_v41 = vmul.f32 1.442695, %v2574_v61  ;;  %v2662_v0 = vmul.f32 1.442695, %v2576_v13 }
 0x6e0   : > { %4284 = vpow2.f32 %v2626_v16  ;;  %v2666_v38 = vmul.f32 1.442695, %v2578_v46  ;;  %v2670_v19 = vmul.f32 1.442695, %v2580_v3  ;;  %v2674_v27 = vmul.f32 1.442695, %v2582_v30 }
 0x6e1   : > { %4286 = vpow2.f32 %v2630_v4  ;;  %v2678_v5 = vmul.f32 1.442695, %v2584_v17  ;;  %v2682_v18 = vmul.f32 1.442695, %v2586_v54  ;;  %v2686_v22 = vmul.f32 1.442695, %v2588_v25 }
 0x6e2   : > { %4288 = vpow2.f32 %v2634_v43  ;;  %v2690_v15 = vmul.f32 1.442695, %v2590_v50  ;;  %v2694_v59 = vmul.f32 1.442695, %v2592_v31  ;;  %v2698_v29 = vmul.f32 1.442695, %v2594_v14 }
 0x6e3   : > { %4290 = vpow2.f32 %v2638_v49  ;;  %v6728_v20 = vmul.f32 1.442695, %v2596_v1  ;;  %v6730_v36 = vmul.f32 1.442695, %v2598_v10  ;;  %v6732_v53 = vmul.f32 1.442695, %v2600_v32 }
 0x6e4   : > { %4292 = vpow2.f32 %v2642_v24  ;;  %v8521_v14 = vld [vmem:[#allocation37_spill] sm:$0xff]  ;;  %v8523_v16 = vld [vmem:[#allocation39_spill] sm:$0xff]  ;;  %v8528_v50 = vld [vmem:[#allocation10_spill] sm:$0xff] }
 0x6e5   : > { %4294 = vpow2.f32 %v2646_v37  ;;  %v8524_v49 = vld [vmem:[#allocation41_spill] sm:$0xff]  ;;  %v8527_v31 = vld [vmem:[#allocation11_spill] sm:$0xff]  ;;  %v8529_v24 = vld [vmem:[#allocation16_spill] sm:$0xff] }
 0x6e6   : > { %4296 = vpow2.f32 %v2650_v63  ;;  %v8522_v63 = vld [vmem:[#allocation38_spill] sm:$0xff]  ;;  %v8525_v37 = vld [vmem:[#allocation45_spill] sm:$0xff]  ;;  %v8531_v30 = vld [vmem:[#allocation48_spill] sm:$0xff] }
 0x6e7   : > { %4298 = vpow2.f32 %v2654_v26  ;;  %v8530_v17 = vld [vmem:[#allocation14_spill] sm:$0xff]  ;;  %v8532_v4 = vld [vmem:[#allocation15_spill] sm:$0xff]  ;;  %v8533_v13 = vld [vmem:[#allocation13_spill] sm:$0xff] }
 0x6e8   : > { %v6742_v3 = vpop.eup %4280  ;;  %4300 = vpow2.f32 %v2658_v41  ;;  %v8534_v41 = vld [vmem:[#allocation20_spill] sm:$0xff]  ;;  %v8535_v21 = vld [vmem:[#allocation18_spill] sm:$0xff] }
 0x6e9   : > { %v6750_v25 = vpop.eup %4282  ;;  %4302 = vpow2.f32 %v2662_v0  ;;  %v8526_v0 = vld [vmem:[#allocation12_spill] sm:$0xff] }
 0x6ea   : > { %v6758_v10 = vpop.eup %4284  ;;  %4304 = vpow2.f32 %v2666_v38  ;;  %v2746_v32 = vadd.f32 %v6750_v25, %v6742_v3  ;;  %v8539_v38 = vld [vmem:[#allocation59_spill] sm:$0xff] }
 0x6eb   : > { %v6766_v43 = vpop.eup %4286  ;;  %4306 = vpow2.f32 %v2670_v19  ;;  %v8537_v19 = vld [vmem:[#allocation17_spill] sm:$0xff] }
 0x6ec   : > { %v6774_v1 = vpop.eup %4288  ;;  %4308 = vpow2.f32 %v2674_v27  ;;  %v2747_v26 = vadd.f32 %v6758_v10, %v2746_v32 }
 0x6ed   : > { %v6781_v54 = vpop.eup %4290  ;;  %4310 = vpow2.f32 %v2678_v5 }
 0x6ee   : > { %v6789_v46 = vpop.eup %4292  ;;  %4312 = vpow2.f32 %v2682_v18  ;;  %v2748_v32 = vadd.f32 %v6766_v43, %v2747_v26 }
 0x6ef   : > { %v6796_v61 = vpop.eup %4294  ;;  %4314 = vpow2.f32 %v2686_v22 }
 0x6f0   : > { %v6804_v45 = vpop.eup %4296  ;;  %4316 = vpow2.f32 %v2690_v15  ;;  %v2749_v26 = vadd.f32 %v6774_v1, %v2748_v32  ;;  %v8541_v32 = vsub.f32 %v6608_v33, %v6656_v44 }
 0x6f1   : > { %v6811_v7 = vpop.eup %4298  ;;  %4318 = vpow2.f32 %v2694_v59  ;;  %v8542_v59 = vsub.f32 %v6614_v2, %v6656_v44 }
 0x6f2   : > { %v6819_v40 = vpop.eup %4300  ;;  %4320 = vpow2.f32 %v2698_v29  ;;  %v2714_v5 = vmul.f32 1.442695, %v8541_v32  ;;  %v2750_v22 = vadd.f32 %v6781_v54, %v2749_v26  ;;  %v8543_v29 = vsub.f32 %v6620_v51, %v6656_v44 }
 0x6f3   : > { %v6825_v48 = vpop.eup %4302  ;;  %4322 = vpow2.f32 %v6728_v20  ;;  %v2718_v18 = vmul.f32 1.442695, %v8542_v59  ;;  %v8544_v20 = vsub.f32 %v6626_v58, %v6656_v44  ;;  %v8548_v58 = vsub.f32 %v6644_v39, %v6656_v44 }
 0x6f4   : > { %v6831_v27 = vpop.eup %4304  ;;  %4324 = vpow2.f32 %v6730_v36  ;;  %v2722_v15 = vmul.f32 1.442695, %v8543_v29  ;;  %v2751_v33 = vadd.f32 %v6789_v46, %v2750_v22  ;;  %v8545_v36 = vsub.f32 %v6632_v34, %v6656_v44 }
 0x6f5   : > { %v6838_v32 = vpop.eup %4306  ;;  %4326 = vpow2.f32 %v6732_v53  ;;  %v2726_v26 = vmul.f32 1.442695, %v8544_v20  ;;  %v8546_v22 = vsub.f32 %v6638_v6, %v6656_v44 }
 0x6f6   : > { %v6844_v2 = vpop.eup %4308  ;;  %4328 = vpow2.f32 %v2714_v5  ;;  %v2730_v59 = vmul.f32 1.442695, %v8545_v36  ;;  %v2752_v51 = vadd.f32 %v6796_v61, %v2751_v33  ;;  %v2738_v5 = vmul.f32 1.442695, %v8548_v58 }
 0x6f7   : > { %v6850_v29 = vpop.eup %4310  ;;  %4330 = vpow2.f32 %v2718_v18  ;;  %v2734_v53 = vmul.f32 1.442695, %v8546_v22  ;;  %v8549_v33 = vsub.f32 %v6650_v62, %v6656_v44  ;;  %v8552_v44 = vsub.f32 %v6476_v60, %v6658_v11 }
 0x6f8   : > { %v6855_v56 = vpop.eup %4312  ;;  %4332 = vpow2.f32 %v2722_v15  ;;  %v2753_v20 = vadd.f32 %v6804_v45, %v2752_v51  ;;  %v8550_v15 = vsub.f32 %v6466_v12, %v6658_v11  ;;  %v8551_v51 = vsub.f32 %v6470_v57, %v6658_v11 }
 0x6f9   : > { %8547 = vst [vmem:[#allocation37_spill] sm:$0xff] %v6855_v56  ;;  %v6861_v34 = vpop.eup %4314  ;;  %4334 = vpow2.f32 %v2726_v26  ;;  %v2742_v18 = vmul.f32 1.442695, %v8549_v33  ;;  %v2628_v62 = vmul.f32 1.442695, %v8552_v44  ;;  %v8553_v12 = vsub.f32 %v6484_v9, %v6658_v11 }
 0x6fa   : > { %v6866_v36 = vpop.eup %4316  ;;  %4336 = vpow2.f32 %v2730_v59  ;;  %v2754_v6 = vadd.f32 %v6811_v7, %v2753_v20  ;;  %v2620_v22 = vmul.f32 1.442695, %v8550_v15  ;;  %v2624_v26 = vmul.f32 1.442695, %v8551_v51 }
 0x6fb   : > { %v6872_v39 = vpop.eup %4318  ;;  %4338 = vpow2.f32 %v2734_v53  ;;  %v2632_v20 = vmul.f32 1.442695, %v8553_v12  ;;  %v8554_v53 = vsub.f32 %v6491_v35, %v6658_v11  ;;  %v8555_v57 = vsub.f32 %v6497_v52, %v6658_v11 }
 0x6fc   : > { %v6880_v58 = vpop.eup %4320  ;;  %4340 = vpow2.f32 %v2738_v5  ;;  %v2755_v59 = vadd.f32 %v6819_v40, %v2754_v6  ;;  %v8556_v5 = vsub.f32 %v6503_v42, %v6658_v11  ;;  %v8557_v6 = vsub.f32 %v6509_v8, %v6658_v11 }
 0x6fd   : > { %v2636_v33 = vmul.f32 1.442695, %v8554_v53  ;;  %v6889_v15 = vpop.eup %4322  ;;  %4342 = vpow2.f32 %v2742_v18  ;;  %v2640_v60 = vmul.f32 1.442695, %v8555_v57  ;;  %v8558_v18 = vsub.f32 %v6515_v55, %v6658_v11 }
 0x6fe   : > { %v2644_v51 = vmul.f32 1.442695, %v8556_v5  ;;  %v2648_v9 = vmul.f32 1.442695, %v8557_v6  ;;  %v6900_v44 = vpop.eup %4324  ;;  %v2756_v35 = vadd.f32 %v6825_v48, %v2755_v59  ;;  %4344 = vpow2.f32 %v2620_v22 }
 0x6ff   : > { %v2652_v12 = vmul.f32 1.442695, %v8558_v18  ;;  %v8559_v52 = vsub.f32 %v6521_v28, %v6658_v11  ;;  %v6909_v57 = vpop.eup %4326  ;;  %4346 = vpow2.f32 %v2624_v26 }
 0x700   : > { %v6917_v59 = vpop.eup %4328  ;;  %v2757_v55 = vadd.f32 %v6831_v27, %v2756_v35  ;;  %4348 = vpow2.f32 %v2628_v62 }
 0x701   : > { %v2656_v53 = vmul.f32 1.442695, %v8559_v52  ;;  %v6924_v5 = vpop.eup %4330  ;;  %4350 = vpow2.f32 %v2632_v20  ;;  %v8560_v20 = vsub.f32 %v6527_v23, %v6658_v11  ;;  %v8561_v52 = vsub.f32 %v8521_v14, %v6658_v11 }
 0x702   : > { %v6932_v35 = vpop.eup %4332  ;;  %v2758_v62 = vadd.f32 %v6838_v32, %v2757_v55  ;;  %4352 = vpow2.f32 %v2636_v33 }
 0x703   : > { %v6939_v28 = vpop.eup %4334  ;;  %4354 = vpow2.f32 %v2640_v60  ;;  %v2660_v26 = vmul.f32 1.442695, %v8560_v20  ;;  %v2664_v18 = vmul.f32 1.442695, %v8561_v52 }
 0x704   : > { %v6947_v55 = vpop.eup %4336  ;;  %v2759_v33 = vadd.f32 %v6844_v2, %v2758_v62  ;;  %4356 = vpow2.f32 %v2644_v51  ;;  %v8562_v51 = vsub.f32 %v8522_v63, %v6658_v11  ;;  %v8567_v63 = vsub.f32 %v8527_v31, %v6658_v11 }
 0x705   : > { %v6955_v22 = vpop.eup %4338  ;;  %4358 = vpow2.f32 %v2648_v9  ;;  %v8563_v9 = vsub.f32 %v8523_v16, %v6658_v11  ;;  %v8566_v16 = vsub.f32 %v8526_v0, %v6658_v11  ;;  %v8570_v31 = vsub.f32 %v8530_v17, %v6658_v11 }
 0x706   : > { %v6960_v6 = vpop.eup %4340  ;;  %v2760_v8 = vadd.f32 %v6850_v29, %v2759_v33  ;;  %4360 = vpow2.f32 %v2652_v12  ;;  %v2668_v23 = vmul.f32 1.442695, %v8562_v51  ;;  %v8564_v12 = vsub.f32 %v8524_v49, %v6658_v11 }
 0x707   : > { %v6968_v20 = vpop.eup %4342  ;;  %4362 = vpow2.f32 %v2656_v53  ;;  %v2672_v14 = vmul.f32 1.442695, %v8563_v9  ;;  %v8565_v53 = vsub.f32 %v8525_v37, %v6658_v11  ;;  %v2684_v9 = vmul.f32 1.442695, %v8566_v16 }
 0x708   : > { %v4345_v52 = vpop.eup %4344  ;;  %v2761_v60 = vadd.f32 %v6855_v56, %v2760_v8  ;;  %4364 = vpow2.f32 %v2660_v26  ;;  %v2676_v33 = vmul.f32 1.442695, %v8564_v12  ;;  %v8568_v37 = vsub.f32 %v8528_v50, %v6658_v11 }
 0x709   : > { %v4347_v51 = vpop.eup %4346  ;;  %4366 = vpow2.f32 %v2664_v18  ;;  %v2680_v62 = vmul.f32 1.442695, %v8565_v53  ;;  %v2688_v18 = vmul.f32 1.442695, %v8567_v63  ;;  %v2700_v63 = vmul.f32 1.442695, %v8570_v31 }
 0x70a   : > { %v4349_v42 = vpop.eup %4348  ;;  %v2762_v8 = vadd.f32 %v6861_v34, %v2761_v60  ;;  %4368 = vpow2.f32 %v2668_v23  ;;  %v2783_v26 = vadd.f32 %v4347_v51, %v4345_v52  ;;  %v2823_v49 = vpack.c.bf16 %v4347_v51, %v4345_v52 }
 0x70b   : > { %v4351_v12 = vpop.eup %4350  ;;  %4370 = vpow2.f32 %v2672_v14  ;;  %v2692_v53 = vmul.f32 1.442695, %v8568_v37  ;;  %v8569_v14 = vsub.f32 %v8529_v24, %v6658_v11  ;;  %v8571_v50 = vpack.c.bf16 %v6750_v25, %v6742_v3 }
 0x70c   : > { %v4353_v56 = vpop.eup %4352  ;;  %v2763_v0 = vadd.f32 %v6866_v36, %v2762_v8  ;;  %4372 = vpow2.f32 %v2676_v33  ;;  %v2784_v16 = vadd.f32 %v4349_v42, %v2783_v26  ;;  %2854 = vmatprep.subr.bf16.mxu1 %v2823_v49  ;;  %v2825_v60 = vpack.c.bf16 %v4351_v12, %v4349_v42 }
 0x70d   : > { %v4355_v23 = vpop.eup %4354  ;;  %4374 = vpow2.f32 %v2680_v62  ;;  %v2696_v52 = vmul.f32 1.442695, %v8569_v14  ;;  %2855 = vmatpush1.bf16.msra.mxu1 %v8571_v50  ;;  %v8572_v24 = vsub.f32 %v8531_v30, %v6658_v11  ;;  %v8573_v17 = vsub.f32 %v8532_v4, %v6658_v11  ;;  %v8578_v50 = vld [vmem:[#allocation19_spill] sm:$0xff] }
 0x70e   : > { %v4357_v51 = vpop.eup %4356  ;;  %v2764_v33 = vadd.f32 %v6872_v39, %v2763_v0  ;;  %4376 = vpow2.f32 %v2684_v9  ;;  %v2785_v8 = vadd.f32 %v4351_v12, %v2784_v16  ;;  %2856 = vmatprep.subr.bf16.mxu1 %v2825_v60  ;;  %v2827_v42 = vpack.c.bf16 %v4355_v23, %v4353_v56 }
 0x70f   : > { %v4359_v62 = vpop.eup %4358  ;;  %4378 = vpow2.f32 %v2688_v18  ;;  %v2704_v26 = vmul.f32 1.442695, %v8572_v24  ;;  %v2708_v49 = vmul.f32 1.442695, %v8573_v17  ;;  %v8574_v12 = vsub.f32 %v8533_v13, %v6658_v11 }
 0x710   : > { %v4361_v37 = vpop.eup %4360  ;;  %v2765_v3 = vadd.f32 %v6880_v58, %v2764_v33  ;;  %4380 = vpow2.f32 %v2692_v53  ;;  %v2786_v25 = vadd.f32 %v4353_v56, %v2785_v8  ;;  %v2829_v0 = vpack.c.bf16 %v4359_v62, %v4357_v51 }
 0x711   : > { %v4363_v9 = vpop.eup %4362  ;;  %4382 = vpow2.f32 %v2696_v52  ;;  %v2712_v18 = vmul.f32 1.442695, %v8574_v12  ;;  %v8575_v30 = vsub.f32 %v8534_v41, %v6658_v11  ;;  %v8576_v4 = vpack.c.bf16 %v6766_v43, %v6758_v10 }
 0x712   : > { %v4365_v60 = vpop.eup %4364  ;;  %v2766_v14 = vadd.f32 %v6889_v15, %v2765_v3  ;;  %4384 = vpow2.f32 %v2700_v63  ;;  %v2787_v56 = vadd.f32 %v4355_v23, %v2786_v25  ;;  %v2831_v53 = vpack.c.bf16 %v4363_v9, %v4361_v37 }
 0x713   : > { %v2716_v16 = vmul.f32 1.442695, %v8575_v30  ;;  %2857 = vmatpush1.bf16.msra.mxu1 %v8576_v4  ;;  %v4367_v52 = vpop.eup %4366  ;;  %4386 = vpow2.f32 %v2704_v26  ;;  %v8577_v13 = vsub.f32 %v8535_v21, %v6658_v11  ;;  %v8579_v41 = vsub.f32 %v8578_v50, %v6658_v11  ;;  %v8581_v26 = vld [vmem:[#allocation8_spill] sm:$0xff] }
 0x714   : > { %2858 = vmatprep.subr.bf16.mxu1 %v2827_v42  ;;  %v4369_v8 = vpop.eup %4368  ;;  %v2767_v10 = vadd.f32 %v6900_v44, %v2766_v14  ;;  %4388 = vpow2.f32 %v2708_v49  ;;  %v2788_v43 = vadd.f32 %v4357_v51, %v2787_v56  ;;  %v2833_v24 = vpack.c.bf16 %v4367_v52, %v4365_v60 }
 0x715   : > { %v2720_v31 = vmul.f32 1.442695, %v8577_v13  ;;  %v2724_v33 = vmul.f32 1.442695, %v8579_v41  ;;  %v4371_v63 = vpop.eup %4370  ;;  %4390 = vpow2.f32 %v2712_v18  ;;  %v8580_v23 = vsub.f32 %v8537_v19, %v6658_v11 }
 0x716   : > { %v8582_v21 = vsub.f32 %v8581_v26, %v6658_v11  ;;  %v8583_v3 = vpack.c.bf16 %v6781_v54, %v6774_v1  ;;  %v4373_v25 = vpop.eup %4372  ;;  %v2768_v12 = vadd.f32 %v6909_v57, %v2767_v10  ;;  %4392 = vpow2.f32 %v2716_v16 }
 0x717   : > { %v2728_v42 = vmul.f32 1.442695, %v8580_v23  ;;  %v2789_v51 = vadd.f32 %v4359_v62, %v2788_v43  ;;  %v2835_v49 = vpack.c.bf16 %v4371_v63, %v4369_v8  ;;  %v4375_v18 = vpop.eup %4374  ;;  %4394 = vpow2.f32 %v2720_v31  ;;  %v8586_v62 = vld [vmem:[#allocation61_spill] sm:$0xff] }
 0x718   : > { %v2732_v17 = vmul.f32 1.442695, %v8582_v21  ;;  %2859 = vmatpush1.bf16.msra.mxu1 %v8583_v3  ;;  %v8584_v19 = vsub.f32 %v8539_v38, %v6658_v11  ;;  %v8585_v4 = vsub.f32 %v8540_v47, %v6658_v11  ;;  %v4377_v56 = vpop.eup %4376  ;;  %v2769_v54 = vadd.f32 %v6917_v59, %v2768_v12 }
 0x719   : > { %2860 = vmatprep.subr.bf16.mxu1 %v2829_v0  ;;  %4396 = vpow2.f32 %v2724_v33  ;;  %v2790_v1 = vadd.f32 %v4361_v37, %v2789_v51  ;;  %v2837_v13 = vpack.c.bf16 %v4375_v18, %v4373_v25  ;;  %v4379_v16 = vpop.eup %4378  ;;  %v8587_v0 = vsub.f32 %v8586_v62, %v6658_v11 }
 0x71a   : > { %v2736_v30 = vmul.f32 1.442695, %v8584_v19  ;;  %v2740_v14 = vmul.f32 1.442695, %v8585_v4  ;;  %4398 = vpow2.f32 %v2728_v42  ;;  %v8588_v38 = vpack.c.bf16 %v6796_v61, %v6789_v46  ;;  %v4381_v50 = vpop.eup %4380 }
 0x71b   : > { %v2744_v31 = vmul.f32 1.442695, %v8587_v0  ;;  %v2770_v47 = vadd.f32 %v6924_v5, %v2769_v54  ;;  %4400 = vpow2.f32 %v2732_v17  ;;  %v2791_v41 = vadd.f32 %v4363_v9, %v2790_v1  ;;  %v4383_v33 = vpop.eup %4382 }
 0x71c   : > { %2861 = vmatpush1.bf16.msra.mxu1 %v8588_v38  ;;  %v2839_v10 = vpack.c.bf16 %v4379_v16, %v4377_v56  ;;  %4402 = vpow2.f32 %v2736_v30  ;;  %v4385_v37 = vpop.eup %4384  ;;  %v2841_v11 = vpack.c.bf16 %v4383_v33, %v4381_v50  ;;  %v8589_v61 = vpack.c.bf16 %v6811_v7, %v6804_v45 }
 0x71d   : > { %2862 = vmatprep.subr.bf16.mxu1 %v2831_v53  ;;  %v2771_v43 = vadd.f32 %v6932_v35, %v2770_v47  ;;  %4404 = vpow2.f32 %v2740_v14  ;;  %v2792_v23 = vadd.f32 %v4365_v60, %v2791_v41  ;;  %v4387_v42 = vpop.eup %4386  ;;  %v8590_v19 = vpack.c.bf16 %v6825_v48, %v6819_v40 }
 0x71e   : > { %4406 = vpow2.f32 %v2744_v31  ;;  %v4389_v46 = vpop.eup %4388  ;;  %v2843_v53 = vpack.c.bf16 %v4387_v42, %v4385_v37  ;;  %v8592_v47 = vpack.c.bf16 %v6850_v29, %v6844_v2  ;;  %v8596_v2 = vpack.c.bf16 %v6889_v15, %v6880_v58 }
 0x71f   : > { %v2772_v26 = vadd.f32 %v6939_v28, %v2771_v43  ;;  %v2793_v9 = vadd.f32 %v4367_v52, %v2792_v23  ;;  %v4391_v21 = vpop.eup %4390  ;;  %v8599_v58 = vpack.c.bf16 %v6939_v28, %v6932_v35  ;;  %v8606_v28 = vld [vmem:[#allocation9_spill] sm:$0xff] }
 0x720   : > { %2863 = vmatpush1.bf16.msra.mxu1 %v8589_v61  ;;  %v4393_v17 = vpop.eup %4392  ;;  %v2845_v51 = vpack.c.bf16 %v4391_v21, %v4389_v46  ;;  %v8605_v61 = vld [vmem:[#allocation58_spill] sm:$0xff] }
 0x721   : > { %2864 = vmatprep.subr.bf16.mxu1 %v2833_v24  ;;  %v2773_v3 = vadd.f32 %v6947_v55, %v2772_v26  ;;  %v2794_v12 = vadd.f32 %v4369_v8, %v2793_v9  ;;  %v4395_v60 = vpop.eup %4394  ;;  %v8591_v8 = vpack.c.bf16 %v6838_v32, %v6831_v27  ;;  %v8593_v27 = vld [vmem:[#allocation37_spill] sm:$0xff]  ;;  %v8607_v35 = vpack.c.bf16 %v8605_v61, %v8606_v28  ;;  %v8609_v26 = vld [vmem:[#allocation51_spill] sm:$0xff] }
 0x722   : > { %v2847_v4 = vpack.c.bf16 %v4395_v60, %v4393_v17  ;;  %v8594_v32 = vpack.c.bf16 %v6861_v34, %v8593_v27  ;;  %v8597_v34 = vpack.c.bf16 %v6909_v57, %v6900_v44  ;;  %v8600_v44 = vpack.c.bf16 %v6955_v22, %v6947_v55  ;;  %v8612_v55 = vld [vmem:[#allocation21_spill] sm:$0xff] }
 0x723   : > { %v4397_v30 = vpop.eup %4396  ;;  %v2774_v7 = vadd.f32 %v6955_v22, %v2773_v3  ;;  %v2795_v45 = vadd.f32 %v4371_v63, %v2794_v12  ;;  %v8611_v22 = vld [vmem:[#allocation23_spill] sm:$0xff]  ;;  %v8618_v3 = vld [vmem:[#allocation25_spill] sm:$0xff] }
 0x724   : > { %2865 = vmatpush1.bf16.msra.mxu1 %v8590_v19  ;;  %v4399_v52 = vpop.eup %4398 }
 0x725   : > { %2866 = vmatprep.subr.bf16.mxu1 %v2835_v49  ;;  %v4401_v24 = vpop.eup %4400  ;;  %v2775_v14 = vadd.f32 %v6960_v6, %v2774_v7  ;;  %v2796_v54 = vadd.f32 %v4373_v25, %v2795_v45  ;;  %v2849_v1 = vpack.c.bf16 %v4399_v52, %v4397_v30  ;;  %v2927_v7 = vpop.trf.xlu0 }
 0x726   : > { %v4403_v62 = vpop.eup %4402 }
 0x727   : > { %v4405_v0 = vpop.eup %4404  ;;  %v7066_v48 = vadd.f32 %v6968_v20, %v2775_v14  ;;  %v2797_v40 = vadd.f32 %v4375_v18, %v2796_v54  ;;  %v2851_v63 = vpack.c.bf16 %v4403_v62, %v4401_v24  ;;  %v8595_v18 = vpack.c.bf16 %v6872_v39, %v6866_v36 }
 0x728   : > { %2867 = vmatpush1.bf16.msra.mxu1 %v8591_v8  ;;  %v4407_v49 = vpop.eup %4406  ;;  %v8598_v36 = vpack.c.bf16 %v6924_v5, %v6917_v59  ;;  %v8601_v59 = vpack.c.bf16 %v6968_v20, %v6960_v6  ;;  %v8602_v5 = vld [vmem:[#allocation24_spill] sm:$0xff]  ;;  %v8617_v20 = vld [vmem:[#allocation27_spill] sm:$0xff] }
 0x729   : > { %2868 = vmatprep.subr.bf16.mxu1 %v2837_v13  ;;  %v2798_v31 = vadd.f32 %v4377_v56, %v2797_v40  ;;  %v2853_v38 = vpack.c.bf16 %v4407_v49, %v4405_v0  ;;  %v8619_v12 = vpack.c.bf16 %v8617_v20, %v8618_v3  ;;  %v2928_v45 = vpop.trf.xlu0 }
 0x72b   : > { %v2799_v25 = vadd.f32 %v4379_v16, %v2798_v31 }
 0x72c   : > { %2869 = vmatpush1.bf16.msra.mxu1 %v8592_v47  ;;  %v2777_v47 = vrot.slane %v7066_v48, 4 }
 0x72d   : > { %2870 = vmatprep.subr.bf16.mxu1 %v2839_v10  ;;  %v2800_v41 = vadd.f32 %v4381_v50, %v2799_v25 }
 0x72f   : > { %v2801_v43 = vadd.f32 %v4383_v33, %v2800_v41  ;;  %v2778_v41 = vadd.f32 %v2777_v47, %v7066_v48 }
 0x730   : > { %2871 = vmatpush1.bf16.msra.mxu1 %v8594_v32 }
 0x731   : > { %2872 = vmatprep.subr.bf16.mxu1 %v2841_v11  ;;  %v2802_v23 = vadd.f32 %v4385_v37, %v2801_v43  ;;  %v8603_v11 = vld [vmem:[#allocation22_spill] sm:$0xff]  ;;  %v2779_v32 = vrot.slane %v2778_v41, 2 }
 0x733   : > { %v2803_v56 = vadd.f32 %v4387_v42, %v2802_v23  ;;  %v8604_v42 = vpack.c.bf16 %v8602_v5, %v8603_v11  ;;  %v2780_v23 = vadd.f32 %v2779_v32, %v2778_v41 }
 0x734   : > { %2873 = vmatpush1.bf16.msra.mxu1 %v8595_v18 }
 0x735   : > { %2874 = vmatprep.subr.bf16.mxu1 %v2843_v53  ;;  %v2804_v13 = vadd.f32 %v4389_v46, %v2803_v56  ;;  %v8608_v46 = vld [vmem:[#allocation53_spill] sm:$0xff]  ;;  %v8613_v53 = vpack.c.bf16 %v8611_v22, %v8612_v55  ;;  %v2781_v56 = vrot.slane %v2780_v23, 1 }
 0x736   : > { %v8610_v9 = vpack.c.bf16 %v8608_v46, %v8609_v26 }
 0x737   : > { %v2805_v29 = vadd.f32 %v4391_v21, %v2804_v13  ;;  %v8614_v21 = vld [vmem:[#allocation28_spill] sm:$0xff] }
 0x738   : > { %2875 = vmatpush1.bf16.msra.mxu1 %v8596_v2  ;;  %v2782_v2 = vadd.f32 %v2781_v56, %v2780_v23 }
 0x739   : > { %2876 = vmatprep.subr.bf16.mxu1 %v2845_v51  ;;  %v2806_v16 = vadd.f32 %v4393_v17, %v2805_v29  ;;  %v8615_v17 = vld [vmem:[#allocation26_spill] sm:$0xff]  ;;  %v8620_v51 = vld [vmem:[#allocation52_spill] sm:$0xff] }
 0x73a   : > { %v8616_v6 = vpack.c.bf16 %v8614_v21, %v8615_v17  ;;  %4408 = vrcp.f32 %v2782_v2 }
 0x73b   : > { %v2807_v50 = vadd.f32 %v4395_v60, %v2806_v16  ;;  %v8621_v60 = vld [vmem:[#allocation57_spill] sm:$0xff] }
 0x73c   : > { %2877 = vmatpush1.bf16.msra.mxu1 %v8597_v34  ;;  %v8622_v19 = vpack.c.bf16 %v8620_v51, %v8621_v60 }
 0x73d   : > { %2878 = vmatprep.subr.bf16.mxu1 %v2847_v4  ;;  %v2808_v10 = vadd.f32 %v4397_v30, %v2807_v50  ;;  %v8623_v30 = vmov 0   ;;  %v2929_v4 = vpop.trf.xlu0 }
 0x73f   : > { %v2809_v39 = vadd.f32 %v4399_v52, %v2808_v10 }
 0x740   : > { %2879 = vmatpush1.bf16.msra.mxu1 %v8598_v36 }
 0x741   : > { %2880 = vmatprep.subr.bf16.mxu1 %v2849_v1  ;;  %v2810_v33 = vadd.f32 %v4401_v24, %v2809_v39  ;;  %v2930_v52 = vpop.trf.xlu0 }
 0x743   : > { %v2811_v15 = vadd.f32 %v4403_v62, %v2810_v33  ;;  %v2943_v62 = vpop.trf.xlu1 }
 0x744   : > { %2881 = vmatpush1.bf16.msra.mxu1 %v8599_v58  ;;  %v4409_v16 = vpop.eup %4408 }
 0x745   : > { %2882 = vmatprep.subr.bf16.mxu1 %v2851_v63  ;;  %v2812_v37 = vadd.f32 %v4405_v0, %v2811_v15  ;;  %v2931_v24 = vpop.trf.xlu0 }
 0x747   : > { %v2813_v57 = vadd.f32 %v4407_v49, %v2812_v37  ;;  %v2944_v8 = vpop.trf.xlu1 }
 0x748   : > { %2883 = vmatpush1.bf16.msra.mxu1 %v8600_v44 }
 0x749   : > { %2884 = vmatprep.subr.bf16.mxu1 %v2853_v38  ;;  %v2932_v14 = vpop.trf.xlu0  ;;  %v2814_v25 = vrot.slane %v2813_v57, 4 }
 0x74b   : > { %v2945_v0 = vpop.trf.xlu1  ;;  %v2815_v27 = vadd.f32 %v2814_v25, %v2813_v57 }
 0x74c   : > { %2885 = vmatpush1.bf16.msra.mxu1 %v8601_v59 }
 0x74d   : > { %2999 = vmatprep.subr.bf16.mxu1 %v8604_v42  ;;  %v2933_v54 = vpop.trf.xlu0  ;;  %v2816_v43 = vrot.slane %v2815_v27, 2 }
 0x74f   : > { %2887 = vmatmul.mubr.bf16.vlgmr.msra.gmra.mrb[136].mxu1 %v8607_v35  ;;  %v2946_v40 = vpop.trf.xlu1  ;;  %v2817_v18 = vadd.f32 %v2816_v43, %v2815_v27 }
 0x750   : > { %2896 = vmatprep.mubr.bf16.mxu1 %v8610_v9  ;;  %3000 = vmatpush1.bf16.msra.mxu1 %v8613_v53 }
 0x751   : > { %3001 = vmatprep.subr.bf16.mxu1 %v8616_v6  ;;  %v2934_v1 = vpop.trf.xlu0  ;;  %v2818_v13 = vrot.slane %v2817_v18, 1 }
 0x753   : > { %v2947_v63 = vpop.trf.xlu1  ;;  %v2819_v29 = vadd.f32 %v2818_v13, %v2817_v18 }
 0x754   : > { %3002 = vmatpush1.bf16.msra.mxu1 %v8619_v12 }
 0x755   : > { %4410 = vrcp.f32 %v2819_v29 }
 0x757   : > { %2897 = vmatmul.mubr.bf16.gmra.mrb[140].mxu1 %v8622_v19  ;;  %v2948_v49 = vpop.trf.xlu1 }
 0x758   : > { %3031 = vmatprep.mubr.bf16.mxu1 %v8623_v30 }
 0x75b   : > { %v2949_v31 = vpop.trf.xlu1 }
 0x75f   : > { %3915 = vmatmul.mubr.msk.bf16.vlgmr.msra.gmra.mrb[144].mxu1 %vm389_vm0, %v2927_v7  ;;  %v2950_v38 = vpop.trf.xlu1  ;;  %v4411_v50 = vpop.eup %4410 }
 0x760   : > { %3041 = vmatprep.mubr.bf16.mxu1 %v8623_v30 }
 0x767   : > { %3916 = vmatmul.mubr.msk.bf16.gmra.mrb[148].mxu1 %vm389_vm0, %v2928_v45 }
 0x768   : > { %3051 = vmatprep.mubr.bf16.mxu1 %v8623_v30 }
 0x76f   : > { %3917 = vmatmul.mubr.msk.bf16.gmra.mrb[152].mxu1 %vm389_vm0, %v2929_v4 }
 0x770   : > { %3061 = vmatprep.mubr.bf16.mxu1 %v8623_v30 }
 0x777   : > { %3918 = vmatmul.mubr.msk.bf16.gmra.mrb[156].mxu1 %vm389_vm0, %v2930_v52 }
 0x778   : > { %3071 = vmatprep.mubr.bf16.mxu1 %v8623_v30 }
 0x77f   : > { %3919 = vmatmul.mubr.msk.bf16.gmra.mrb[160].mxu1 %vm389_vm0, %v2931_v24 }
 0x780   : > { %3081 = vmatprep.mubr.bf16.mxu1 %v8623_v30 }
 0x787   : > { %3920 = vmatmul.mubr.msk.bf16.gmra.mrb[164].mxu1 %vm389_vm0, %v2932_v14 }
 0x788   : > { %3091 = vmatprep.mubr.bf16.mxu1 %v8623_v30 }
 0x78f   : > { %3921 = vmatmul.mubr.msk.bf16.gmra.mrb[168].mxu1 %vm389_vm0, %v2933_v54 }
 0x790   : > { %3101 = vmatprep.mubr.bf16.mxu1 %v8623_v30 }
 0x797   : > { %3922 = vmatmul.mubr.msk.bf16.gmra.mrb[172].mxu1 %vm389_vm0, %v2934_v1 }
 0x798   : > { %3111 = vmatprep.mubr.bf16.mxu1 %v8623_v30 }
 0x79f   : > { %3923 = vmatmul.mubr.msk.bf16.gmra.mrb[176].mxu1 %vm389_vm0, %v2943_v62 }
 0x7a0   : > { %3121 = vmatprep.mubr.bf16.mxu1 %v8623_v30 }
 0x7a7   : > { %3924 = vmatmul.mubr.msk.bf16.gmra.mrb[180].mxu1 %vm389_vm0, %v2944_v8 }
 0x7a8   : > { %3131 = vmatprep.mubr.bf16.mxu1 %v8623_v30 }
 0x7af   : > { %3925 = vmatmul.mubr.msk.bf16.gmra.mrb[184].mxu1 %vm389_vm0, %v2945_v0 }
 0x7b0   : > { %3141 = vmatprep.mubr.bf16.mxu1 %v8623_v30 }
 0x7b7   : > { %3926 = vmatmul.mubr.msk.bf16.gmra.mrb[188].mxu1 %vm389_vm0, %v2946_v40 }
 0x7b8   : > { %3151 = vmatprep.mubr.bf16.mxu1 %v8623_v30 }
 0x7bf   : > { %3927 = vmatmul.mubr.msk.bf16.gmra.mrb[192].mxu1 %vm389_vm0, %v2947_v63 }
 0x7c0   : > { %3161 = vmatprep.mubr.bf16.mxu1 %v8623_v30 }
 0x7c7   : > { %3928 = vmatmul.mubr.msk.bf16.gmra.mrb[196].mxu1 %vm389_vm0, %v2948_v49 }
 0x7c8   : > { %3171 = vmatprep.mubr.bf16.mxu1 %v8623_v30 }
 0x7cf   : > { %3929 = vmatmul.mubr.msk.bf16.gmra.mrb[200].mxu1 %vm389_vm0, %v2949_v31 }
 0x7d0   : > { %3181 = vmatprep.mubr.bf16.mxu1 %v8623_v30 }
 0x7d7   : > { %3930 = vmatmul.mubr.msk.bf16.gmra.mrb[204].mxu1 %vm389_vm0, %v2950_v38 }
 0x822   : > { %v2888_v34 = vpop.f32.mrb[136].mxu1 }
 0x823   : > { %v7150_v10 = vmul.f32 %v4409_v16, %v2888_v34  ;;  %v2890_v36 = vpop.f32.mrb[137].mxu1 }
 0x824   : > { %v7152_v39 = vmul.f32 %v4411_v50, %v2890_v36  ;;  %v2892_v48 = vpop.f32.mrb[138].mxu1 }
 0x825   : > { %8624 = vst [vmem:[#allocation38_spill] sm:$0xff] %v7150_v10  ;;  %v7154_v33 = vmul.f32 %v4409_v16, %v2892_v48  ;;  %v2894_v58 = vpop.f32.mrb[139].mxu1 }
 0x826   : > { %8625 = vst [vmem:[#allocation39_spill] sm:$0xff] %v7152_v39  ;;  %v7156_v15 = vmul.f32 %v4411_v50, %v2894_v58 }
 0x827   : > { %8626 = vst [vmem:[#allocation41_spill] sm:$0xff] %v7154_v33 }
 0x828   : > { %8627 = vst [vmem:[#allocation45_spill] sm:$0xff] %v7156_v15 }
 0x82a   : > { %v2898_v57 = vpop.f32.mrb[140].mxu1 }
 0x82b   : > { %v7162_v59 = vmul.f32 %v4409_v16, %v2898_v57  ;;  %v2900_v5 = vpop.f32.mrb[141].mxu1 }
 0x82c   : > { %v7164_v11 = vmul.f32 %v4411_v50, %v2900_v5  ;;  %v2902_v42 = vpop.f32.mrb[142].mxu1 }
 0x82d   : > { %8628 = vst [vmem:[#allocation12_spill] sm:$0xff] %v7162_v59  ;;  %v7166_v61 = vmul.f32 %v4409_v16, %v2902_v42  ;;  %v2904_v28 = vpop.f32.mrb[143].mxu1 }
 0x82e   : > { %8629 = vst [vmem:[#allocation11_spill] sm:$0xff] %v7164_v11  ;;  %v7168_v35 = vmul.f32 %v4411_v50, %v2904_v28 }
 0x82f   : > { %8630 = vst [vmem:[#allocation10_spill] sm:$0xff] %v7166_v61 }
 0x830   : > { %8631 = vst [vmem:[#allocation16_spill] sm:$0xff] %v7168_v35 }
 0x832   : > { %v7174_v9 = vpop.f32.mrb[144].mxu1 }
 0x833   : > { %v7176_v22 = vpop.f32.mrb[145].mxu1 }
 0x834   : > { %v7178_v55 = vpop.f32.mrb[146].mxu1 }
 0x835   : > { %v7180_v53 = vpop.f32.mrb[147].mxu1 }
 0x83a   : > { %v7182_v21 = vpop.f32.mrb[148].mxu1 }
 0x83b   : > { %v3192_v17 = vmax.f32 %v7174_v9, %v7182_v21  ;;  %v7186_v6 = vpop.f32.mrb[149].mxu1 }
 0x83c   : > { %v3229_v20 = vmax.f32 %v7176_v22, %v7186_v6  ;;  %v7190_v3 = vpop.f32.mrb[150].mxu1 }
 0x83d   : > { %v3193_v12 = vmax.f32 %v7178_v55, %v7190_v3  ;;  %v7194_v51 = vpop.f32.mrb[151].mxu1 }
 0x83e   : > { %v3230_v60 = vmax.f32 %v7180_v53, %v7194_v51 }
 0x842   : > { %v7198_v19 = vpop.f32.mrb[152].mxu1 }
 0x843   : > { %v3194_v7 = vmax.f32 %v3192_v17, %v7198_v19  ;;  %v7201_v45 = vpop.f32.mrb[153].mxu1 }
 0x844   : > { %v3231_v4 = vmax.f32 %v3229_v20, %v7201_v45  ;;  %v7204_v52 = vpop.f32.mrb[154].mxu1 }
 0x845   : > { %v3195_v24 = vmax.f32 %v3193_v12, %v7204_v52  ;;  %v7207_v14 = vpop.f32.mrb[155].mxu1 }
 0x846   : > { %v3232_v54 = vmax.f32 %v3230_v60, %v7207_v14 }
 0x84a   : > { %v7210_v1 = vpop.f32.mrb[156].mxu1 }
 0x84b   : > { %v3196_v62 = vmax.f32 %v3194_v7, %v7210_v1  ;;  %v7213_v8 = vpop.f32.mrb[157].mxu1 }
 0x84c   : > { %v3233_v0 = vmax.f32 %v3231_v4, %v7213_v8  ;;  %v7216_v40 = vpop.f32.mrb[158].mxu1 }
 0x84d   : > { %v3197_v63 = vmax.f32 %v3195_v24, %v7216_v40  ;;  %v7219_v49 = vpop.f32.mrb[159].mxu1 }
 0x84e   : > { %v3234_v31 = vmax.f32 %v3232_v54, %v7219_v49 }
 0x852   : > { %v7222_v38 = vpop.f32.mrb[160].mxu1 }
 0x853   : > { %v3198_v47 = vmax.f32 %v3196_v62, %v7222_v38  ;;  %v7225_v25 = vpop.f32.mrb[161].mxu1 }
 0x854   : > { %v3235_v41 = vmax.f32 %v3233_v0, %v7225_v25  ;;  %v7228_v27 = vpop.f32.mrb[162].mxu1 }
 0x855   : > { %v3199_v32 = vmax.f32 %v3197_v63, %v7228_v27  ;;  %v7231_v43 = vpop.f32.mrb[163].mxu1 }
 0x856   : > { %v3236_v23 = vmax.f32 %v3234_v31, %v7231_v43 }
 0x85a   : > { %v7234_v18 = vpop.f32.mrb[164].mxu1 }
 0x85b   : > { %v3200_v56 = vmax.f32 %v3198_v47, %v7234_v18  ;;  %v7237_v13 = vpop.f32.mrb[165].mxu1 }
 0x85c   : > { %v3237_v2 = vmax.f32 %v3235_v41, %v7237_v13  ;;  %v7240_v29 = vpop.f32.mrb[166].mxu1 }
 0x85d   : > { %v3201_v16 = vmax.f32 %v3199_v32, %v7240_v29  ;;  %v7243_v34 = vpop.f32.mrb[167].mxu1 }
 0x85e   : > { %8632 = vst [vmem:[#allocation14_spill] sm:$0xff] %v7243_v34  ;;  %v3238_v50 = vmax.f32 %v3236_v23, %v7243_v34 }
 0x862   : > { %v7246_v36 = vpop.f32.mrb[168].mxu1 }
 0x863   : > { %v3202_v48 = vmax.f32 %v3200_v56, %v7246_v36  ;;  %v7249_v58 = vpop.f32.mrb[169].mxu1 }
 0x864   : > { %8633 = vst [vmem:[#allocation48_spill] sm:$0xff] %v7249_v58  ;;  %v3239_v57 = vmax.f32 %v3237_v2, %v7249_v58  ;;  %v7252_v5 = vpop.f32.mrb[170].mxu1 }
 0x865   : > { %v3203_v42 = vmax.f32 %v3201_v16, %v7252_v5  ;;  %v7255_v28 = vpop.f32.mrb[171].mxu1 }
 0x866   : > { %8634 = vst [vmem:[#allocation15_spill] sm:$0xff] %v7255_v28  ;;  %v3240_v17 = vmax.f32 %v3238_v50, %v7255_v28 }
 0x86a   : > { %v7258_v20 = vpop.f32.mrb[172].mxu1 }
 0x86b   : > { %v3204_v12 = vmax.f32 %v3202_v48, %v7258_v20  ;;  %v7261_v60 = vpop.f32.mrb[173].mxu1 }
 0x86c   : > { %8635 = vst [vmem:[#allocation13_spill] sm:$0xff] %v7261_v60  ;;  %v3241_v7 = vmax.f32 %v3239_v57, %v7261_v60  ;;  %v7264_v4 = vpop.f32.mrb[174].mxu1 }
 0x86d   : > { %v3205_v24 = vmax.f32 %v3203_v42, %v7264_v4  ;;  %v7267_v54 = vpop.f32.mrb[175].mxu1 }
 0x86e   : > { %8636 = vst [vmem:[#allocation20_spill] sm:$0xff] %v7267_v54  ;;  %v3242_v62 = vmax.f32 %v3240_v17, %v7267_v54 }
 0x872   : > { %v7270_v0 = vpop.f32.mrb[176].mxu1 }
 0x873   : > { %v3206_v63 = vmax.f32 %v3204_v12, %v7270_v0  ;;  %v7273_v31 = vpop.f32.mrb[177].mxu1 }
 0x874   : > { %8637 = vst [vmem:[#allocation18_spill] sm:$0xff] %v7273_v31  ;;  %v3243_v47 = vmax.f32 %v3241_v7, %v7273_v31  ;;  %v7276_v41 = vpop.f32.mrb[178].mxu1 }
 0x875   : > { %v3207_v32 = vmax.f32 %v3205_v24, %v7276_v41  ;;  %v7279_v23 = vpop.f32.mrb[179].mxu1 }
 0x876   : > { %8638 = vst [vmem:[#allocation17_spill] sm:$0xff] %v7279_v23  ;;  %v3244_v56 = vmax.f32 %v3242_v62, %v7279_v23 }
 0x87a   : > { %v7282_v2 = vpop.f32.mrb[180].mxu1 }
 0x87b   : > { %v3208_v16 = vmax.f32 %v3206_v63, %v7282_v2  ;;  %v7285_v50 = vpop.f32.mrb[181].mxu1 }
 0x87c   : > { %8639 = vst [vmem:[#allocation59_spill] sm:$0xff] %v7285_v50  ;;  %v3245_v48 = vmax.f32 %v3243_v47, %v7285_v50  ;;  %v7288_v57 = vpop.f32.mrb[182].mxu1 }
 0x87d   : > { %v3209_v42 = vmax.f32 %v3207_v32, %v7288_v57  ;;  %v7291_v17 = vpop.f32.mrb[183].mxu1 }
 0x87e   : > { %8640 = vst [vmem:[#allocation60_spill] sm:$0xff] %v7291_v17  ;;  %v3246_v12 = vmax.f32 %v3244_v56, %v7291_v17 }
 0x882   : > { %v7294_v7 = vpop.f32.mrb[184].mxu1 }
 0x883   : > { %v3210_v24 = vmax.f32 %v3208_v16, %v7294_v7  ;;  %v7297_v62 = vpop.f32.mrb[185].mxu1 }
 0x884   : > { %8641 = vst [vmem:[#allocation19_spill] sm:$0xff] %v7297_v62  ;;  %v3247_v63 = vmax.f32 %v3245_v48, %v7297_v62  ;;  %v7300_v46 = vpop.f32.mrb[186].mxu1 }
 0x885   : > { %v3211_v47 = vmax.f32 %v3209_v42, %v7300_v46  ;;  %v7303_v26 = vpop.f32.mrb[187].mxu1 }
 0x886   : > { %8642 = vst [vmem:[#allocation8_spill] sm:$0xff] %v7303_v26  ;;  %v3248_v32 = vmax.f32 %v3246_v12, %v7303_v26 }
 0x88a   : > { %v7306_v37 = vpop.f32.mrb[188].mxu1 }
 0x88b   : > { %v3212_v56 = vmax.f32 %v3210_v24, %v7306_v37  ;;  %v7309_v44 = vpop.f32.mrb[189].mxu1 }
 0x88c   : > { %8643 = vst [vmem:[#allocation61_spill] sm:$0xff] %v7309_v44  ;;  %v3249_v16 = vmax.f32 %v3247_v63, %v7309_v44  ;;  %v7312_v59 = vpop.f32.mrb[190].mxu1 }
 0x88d   : > { %v3213_v48 = vmax.f32 %v3211_v47, %v7312_v59  ;;  %v7315_v61 = vpop.f32.mrb[191].mxu1 }
 0x88e   : > { %8644 = vst [vmem:[#allocation37_spill] sm:$0xff] %v7315_v61  ;;  %v3250_v42 = vmax.f32 %v3248_v32, %v7315_v61 }
 0x892   : > { %v7318_v11 = vpop.f32.mrb[192].mxu1 }
 0x893   : > { %v3214_v12 = vmax.f32 %v3212_v56, %v7318_v11  ;;  %v7321_v35 = vpop.f32.mrb[193].mxu1 }
 0x894   : > { %8645 = vst [vmem:[#allocation24_spill] sm:$0xff] %v7321_v35  ;;  %v3251_v24 = vmax.f32 %v3249_v16, %v7321_v35  ;;  %v7324_v10 = vpop.f32.mrb[194].mxu1 }
 0x895   : > { %v3215_v63 = vmax.f32 %v3213_v48, %v7324_v10  ;;  %v7327_v33 = vpop.f32.mrb[195].mxu1 }
 0x896   : > { %8646 = vst [vmem:[#allocation22_spill] sm:$0xff] %v7327_v33  ;;  %v3252_v47 = vmax.f32 %v3250_v42, %v7327_v33 }
 0x89a   : > { %v7330_v39 = vpop.f32.mrb[196].mxu1 }
 0x89b   : > { %v3216_v32 = vmax.f32 %v3214_v12, %v7330_v39  ;;  %v7333_v15 = vpop.f32.mrb[197].mxu1 }
 0x89c   : > { %8647 = vst [vmem:[#allocation58_spill] sm:$0xff] %v7333_v15  ;;  %v3253_v56 = vmax.f32 %v3251_v24, %v7333_v15  ;;  %v7336_v30 = vpop.f32.mrb[198].mxu1 }
 0x89d   : > { %v3217_v16 = vmax.f32 %v3215_v63, %v7336_v30  ;;  %v7339_v35 = vpop.f32.mrb[199].mxu1 }
 0x89e   : > { %8648 = vst [vmem:[#allocation9_spill] sm:$0xff] %v7339_v35  ;;  %v3254_v48 = vmax.f32 %v3252_v47, %v7339_v35 }
 0x8a2   : > { %v7342_v61 = vpop.f32.mrb[200].mxu1 }
 0x8a3   : > { %v3218_v42 = vmax.f32 %v3216_v32, %v7342_v61  ;;  %v7345_v33 = vpop.f32.mrb[201].mxu1 }
 0x8a4   : > { %8649 = vst [vmem:[#allocation53_spill] sm:$0xff] %v7345_v33  ;;  %v3255_v12 = vmax.f32 %v3253_v56, %v7345_v33  ;;  %v7348_v44 = vpop.f32.mrb[202].mxu1 }
 0x8a5   : > { %v3219_v24 = vmax.f32 %v3217_v16, %v7348_v44  ;;  %v7351_v15 = vpop.f32.mrb[203].mxu1 }
 0x8a6   : > { %8650 = vst [vmem:[#allocation51_spill] sm:$0xff] %v7351_v15  ;;  %v3256_v63 = vmax.f32 %v3254_v48, %v7351_v15 }
 0x8aa   : > { %v7354_v26 = vpop.f32.mrb[204].mxu1 }
 0x8ab   : > { %v3220_v47 = vmax.f32 %v3218_v42, %v7354_v26  ;;  %v7357_v35 = vpop.f32.mrb[205].mxu1 }
 0x8ac   : > { %8651 = vst [vmem:[#allocation23_spill] sm:$0xff] %v7357_v35  ;;  %v3257_v32 = vmax.f32 %v3255_v12, %v7357_v35  ;;  %v7360_v62 = vpop.f32.mrb[206].mxu1 }
 0x8ad   : > { %v3221_v56 = vmax.f32 %v3219_v24, %v7360_v62  ;;  %v7363_v33 = vpop.f32.mrb[207].mxu1 }
 0x8ae   : > { %8652 = vst [vmem:[#allocation21_spill] sm:$0xff] %v7363_v33  ;;  %v3258_v16 = vmax.f32 %v3256_v63, %v7363_v33 }
 0x8af   : > { %v3222_v17 = vmax.f32 %v3220_v47, %v3221_v56 }
 0x8b0   : > { %v3259_v50 = vmax.f32 %v3257_v32, %v3258_v16 }
 0x8b1   : > { %v3223_v23 = vrot.slane %v3222_v17, 4 }
 0x8b2   : > { %v3260_v48 = vrot.slane %v3259_v50, 4 }
 0x8b3   : > { %v3224_v15 = vmax.f32 %v3222_v17, %v3223_v23 }
 0x8b4   : > { %v3261_v31 = vmax.f32 %v3259_v50, %v3260_v48 }
 0x8b5   : > { %v3225_v54 = vrot.slane %v3224_v15, 2 }
 0x8b6   : > { %v3262_v42 = vrot.slane %v3261_v31, 2 }
 0x8b7   : > { %v3226_v60 = vmax.f32 %v3224_v15, %v3225_v54  ;;  %v8672_v54 = vld [vmem:[#allocation23_spill] sm:$0xff] }
 0x8b8   : > { %v3263_v28 = vmax.f32 %v3261_v31, %v3262_v42 }
 0x8b9   : > { %v3227_v58 = vrot.slane %v3226_v60, 1 }
 0x8ba   : > { %v3264_v12 = vrot.slane %v3263_v28, 1 }
 0x8bb   : > { %v7366_v35 = vmax.f32 %v3226_v60, %v3227_v58 }
 0x8bc   : > { %v7368_v34 = vmax.f32 %v3263_v28, %v3264_v12 }
 0x8bd   : > { %v3266_v24 = vsub.f32 %v7174_v9, %v7366_v35  ;;  %v3268_v63 = vsub.f32 %v7178_v55, %v7366_v35  ;;  %v3270_v23 = vsub.f32 %v7182_v21, %v7366_v35  ;;  %v3272_v50 = vsub.f32 %v7190_v3, %v7366_v35 }
 0x8be   : > { %v3274_v15 = vsub.f32 %v7198_v19, %v7366_v35  ;;  %v3276_v58 = vsub.f32 %v7204_v52, %v7366_v35  ;;  %v3278_v28 = vsub.f32 %v7210_v1, %v7366_v35  ;;  %v3280_v9 = vsub.f32 %v7216_v40, %v7366_v35 }
 0x8bf   : > { %v3282_v55 = vsub.f32 %v7222_v38, %v7366_v35  ;;  %v3284_v21 = vsub.f32 %v7228_v27, %v7366_v35  ;;  %v3286_v3 = vsub.f32 %v7234_v18, %v7366_v35  ;;  %v3288_v19 = vsub.f32 %v7240_v29, %v7366_v35 }
 0x8c0   : > { %v3290_v52 = vsub.f32 %v7246_v36, %v7366_v35  ;;  %v3292_v1 = vsub.f32 %v7252_v5, %v7366_v35  ;;  %v3294_v40 = vsub.f32 %v7258_v20, %v7366_v35  ;;  %v3296_v38 = vsub.f32 %v7264_v4, %v7366_v35 }
 0x8c1   : > { %v3298_v27 = vsub.f32 %v7270_v0, %v7366_v35  ;;  %v3300_v18 = vsub.f32 %v7276_v41, %v7366_v35  ;;  %v3302_v29 = vsub.f32 %v7282_v2, %v7366_v35  ;;  %v3304_v36 = vsub.f32 %v7288_v57, %v7366_v35 }
 0x8c2   : > { %v3306_v5 = vsub.f32 %v7294_v7, %v7366_v35  ;;  %v3308_v20 = vsub.f32 %v7300_v46, %v7366_v35  ;;  %v3310_v60 = vsub.f32 %v7306_v37, %v7366_v35  ;;  %v3312_v4 = vsub.f32 %v7312_v59, %v7366_v35 }
 0x8c3   : > { %v3330_v57 = vmul.f32 1.442695, %v3266_v24  ;;  %v3334_v17 = vmul.f32 1.442695, %v3268_v63  ;;  %v3338_v7 = vmul.f32 1.442695, %v3270_v23 }
 0x8c4   : > { %v3342_v32 = vmul.f32 1.442695, %v3272_v50  ;;  %v3346_v16 = vmul.f32 1.442695, %v3274_v15  ;;  %v3350_v48 = vmul.f32 1.442695, %v3276_v58 }
 0x8c5   : > { %4412 = vpow2.f32 %v3330_v57  ;;  %v3354_v42 = vmul.f32 1.442695, %v3278_v28  ;;  %v3358_v12 = vmul.f32 1.442695, %v3280_v9  ;;  %v3362_v59 = vmul.f32 1.442695, %v3282_v55 }
 0x8c6   : > { %4414 = vpow2.f32 %v3334_v17  ;;  %v3366_v2 = vmul.f32 1.442695, %v3284_v21  ;;  %v3370_v24 = vmul.f32 1.442695, %v3286_v3  ;;  %v3374_v63 = vmul.f32 1.442695, %v3288_v19 }
 0x8c7   : > { %4416 = vpow2.f32 %v3338_v7  ;;  %v3378_v23 = vmul.f32 1.442695, %v3290_v52  ;;  %v3382_v47 = vmul.f32 1.442695, %v3292_v1  ;;  %v3386_v50 = vmul.f32 1.442695, %v3294_v40 }
 0x8c8   : > { %4418 = vpow2.f32 %v3342_v32  ;;  %v3390_v37 = vmul.f32 1.442695, %v3296_v38  ;;  %v3394_v56 = vmul.f32 1.442695, %v3298_v27  ;;  %v3398_v57 = vmul.f32 1.442695, %v3300_v18 }
 0x8c9   : > { %4420 = vpow2.f32 %v3346_v16  ;;  %v3402_v15 = vmul.f32 1.442695, %v3302_v29  ;;  %v3406_v58 = vmul.f32 1.442695, %v3304_v36  ;;  %v3410_v17 = vmul.f32 1.442695, %v3306_v5 }
 0x8ca   : > { %4422 = vpow2.f32 %v3350_v48  ;;  %v7438_v28 = vmul.f32 1.442695, %v3308_v20  ;;  %v7440_v9 = vmul.f32 1.442695, %v3310_v60  ;;  %v7442_v55 = vmul.f32 1.442695, %v3312_v4 }
 0x8cb   : > { %4424 = vpow2.f32 %v3354_v42  ;;  %v8653_v5 = vld [vmem:[#allocation14_spill] sm:$0xff]  ;;  %v8655_v7 = vld [vmem:[#allocation15_spill] sm:$0xff]  ;;  %v8656_v48 = vld [vmem:[#allocation13_spill] sm:$0xff] }
 0x8cc   : > { %4426 = vpow2.f32 %v3358_v12  ;;  %v8657_v12 = vld [vmem:[#allocation20_spill] sm:$0xff]  ;;  %v8659_v36 = vld [vmem:[#allocation17_spill] sm:$0xff]  ;;  %v8660_v29 = vld [vmem:[#allocation59_spill] sm:$0xff] }
 0x8cd   : > { %4428 = vpow2.f32 %v3362_v59  ;;  %v8654_v59 = vld [vmem:[#allocation48_spill] sm:$0xff]  ;;  %v8662_v38 = vld [vmem:[#allocation19_spill] sm:$0xff]  ;;  %v8664_v32 = vld [vmem:[#allocation61_spill] sm:$0xff] }
 0x8ce   : > { %4430 = vpow2.f32 %v3366_v2  ;;  %v8661_v42 = vld [vmem:[#allocation60_spill] sm:$0xff]  ;;  %v8665_v19 = vld [vmem:[#allocation37_spill] sm:$0xff]  ;;  %v8667_v21 = vld [vmem:[#allocation22_spill] sm:$0xff] }
 0x8cf   : > { %v7452_v1 = vpop.eup %4412  ;;  %4432 = vpow2.f32 %v3370_v24  ;;  %v8663_v40 = vld [vmem:[#allocation8_spill] sm:$0xff] }
 0x8d0   : > { %v7460_v18 = vpop.eup %4414  ;;  %4434 = vpow2.f32 %v3374_v63  ;;  %v8658_v63 = vld [vmem:[#allocation18_spill] sm:$0xff]  ;;  %v8666_v24 = vld [vmem:[#allocation24_spill] sm:$0xff] }
 0x8d1   : > { %v7468_v60 = vpop.eup %4416  ;;  %4436 = vpow2.f32 %v3378_v23  ;;  %v3458_v4 = vadd.f32 %v7460_v18, %v7452_v1  ;;  %v8671_v23 = vld [vmem:[#allocation51_spill] sm:$0xff] }
 0x8d2   : > { %v7476_v16 = vpop.eup %4418  ;;  %4438 = vpow2.f32 %v3382_v47  ;;  %v8669_v47 = vld [vmem:[#allocation9_spill] sm:$0xff] }
 0x8d3   : > { %v7484_v20 = vpop.eup %4420  ;;  %4440 = vpow2.f32 %v3386_v50  ;;  %v3459_v2 = vadd.f32 %v7468_v60, %v3458_v4 }
 0x8d4   : > { %v7491_v27 = vpop.eup %4422  ;;  %4442 = vpow2.f32 %v3390_v37 }
 0x8d5   : > { %v7499_v52 = vpop.eup %4424  ;;  %4444 = vpow2.f32 %v3394_v56  ;;  %v3460_v4 = vadd.f32 %v7476_v16, %v3459_v2 }
 0x8d6   : > { %v7506_v3 = vpop.eup %4426  ;;  %4446 = vpow2.f32 %v3398_v57 }
 0x8d7   : > { %v7514_v41 = vpop.eup %4428  ;;  %4448 = vpow2.f32 %v3402_v15  ;;  %v3461_v2 = vadd.f32 %v7484_v20, %v3460_v4  ;;  %v8673_v4 = vsub.f32 %v7318_v11, %v7366_v35 }
 0x8d8   : > { %v7521_v0 = vpop.eup %4430  ;;  %4450 = vpow2.f32 %v3406_v58  ;;  %v8674_v58 = vsub.f32 %v7324_v10, %v7366_v35 }
 0x8d9   : > { %v7529_v46 = vpop.eup %4432  ;;  %4452 = vpow2.f32 %v3410_v17  ;;  %v3426_v37 = vmul.f32 1.442695, %v8673_v4  ;;  %v3462_v57 = vadd.f32 %v7491_v27, %v3461_v2  ;;  %v8675_v17 = vsub.f32 %v7330_v39, %v7366_v35 }
 0x8da   : > { %v7535_v31 = vpop.eup %4434  ;;  %4454 = vpow2.f32 %v7438_v28  ;;  %v3430_v56 = vmul.f32 1.442695, %v8674_v58  ;;  %v8676_v28 = vsub.f32 %v7336_v30, %v7366_v35  ;;  %v8680_v30 = vsub.f32 %v7354_v26, %v7366_v35 }
 0x8db   : > { %v7541_v50 = vpop.eup %4436  ;;  %4456 = vpow2.f32 %v7440_v9  ;;  %v3434_v15 = vmul.f32 1.442695, %v8675_v17  ;;  %v3463_v11 = vadd.f32 %v7499_v52, %v3462_v57  ;;  %v8677_v9 = vsub.f32 %v7342_v61, %v7366_v35 }
 0x8dc   : > { %v7548_v4 = vpop.eup %4438  ;;  %4458 = vpow2.f32 %v7442_v55  ;;  %v3438_v2 = vmul.f32 1.442695, %v8676_v28  ;;  %v8678_v57 = vsub.f32 %v7348_v44, %v7366_v35 }
 0x8dd   : > { %v7554_v10 = vpop.eup %4440  ;;  %4460 = vpow2.f32 %v3426_v37  ;;  %v3442_v58 = vmul.f32 1.442695, %v8677_v9  ;;  %v3464_v39 = vadd.f32 %v7506_v3, %v3463_v11  ;;  %v3450_v37 = vmul.f32 1.442695, %v8680_v30 }
 0x8de   : > { %v7560_v17 = vpop.eup %4442  ;;  %4462 = vpow2.f32 %v3430_v56  ;;  %v3446_v55 = vmul.f32 1.442695, %v8678_v57  ;;  %v8681_v11 = vsub.f32 %v7360_v62, %v7366_v35  ;;  %v8684_v35 = vsub.f32 %v7186_v6, %v7368_v34 }
 0x8df   : > { %v7565_v33 = vpop.eup %4444  ;;  %4464 = vpow2.f32 %v3434_v15  ;;  %v3465_v28 = vadd.f32 %v7514_v41, %v3464_v39  ;;  %v8682_v15 = vsub.f32 %v7176_v22, %v7368_v34  ;;  %v8683_v39 = vsub.f32 %v7180_v53, %v7368_v34 }
 0x8e0   : > { %8679 = vst [vmem:[#allocation28_spill] sm:$0xff] %v7565_v33  ;;  %v7571_v61 = vpop.eup %4446  ;;  %4466 = vpow2.f32 %v3438_v2  ;;  %v3454_v56 = vmul.f32 1.442695, %v8681_v11  ;;  %v3340_v62 = vmul.f32 1.442695, %v8684_v35  ;;  %v8685_v22 = vsub.f32 %v7194_v51, %v7368_v34 }
 0x8e1   : > { %v7576_v9 = vpop.eup %4448  ;;  %4468 = vpow2.f32 %v3442_v58  ;;  %v3466_v44 = vadd.f32 %v7521_v0, %v3465_v28  ;;  %v3332_v57 = vmul.f32 1.442695, %v8682_v15  ;;  %v3336_v2 = vmul.f32 1.442695, %v8683_v39 }
 0x8e2   : > { %v7582_v26 = vpop.eup %4450  ;;  %4470 = vpow2.f32 %v3446_v55  ;;  %v3344_v28 = vmul.f32 1.442695, %v8685_v22  ;;  %v8686_v55 = vsub.f32 %v7201_v45, %v7368_v34  ;;  %v8687_v53 = vsub.f32 %v7207_v14, %v7368_v34 }
 0x8e3   : > { %v7590_v30 = vpop.eup %4452  ;;  %4472 = vpow2.f32 %v3450_v37  ;;  %v3467_v58 = vadd.f32 %v7529_v46, %v3466_v44  ;;  %v8688_v37 = vsub.f32 %v7213_v8, %v7368_v34  ;;  %v8689_v44 = vsub.f32 %v7219_v49, %v7368_v34 }
 0x8e4   : > { %v3348_v11 = vmul.f32 1.442695, %v8686_v55  ;;  %v7599_v15 = vpop.eup %4454  ;;  %4474 = vpow2.f32 %v3454_v56  ;;  %v3352_v6 = vmul.f32 1.442695, %v8687_v53  ;;  %v8690_v56 = vsub.f32 %v7225_v25, %v7368_v34 }
 0x8e5   : > { %v3356_v39 = vmul.f32 1.442695, %v8688_v37  ;;  %v3360_v51 = vmul.f32 1.442695, %v8689_v44  ;;  %v7610_v35 = vpop.eup %4456  ;;  %v3468_v45 = vadd.f32 %v7535_v31, %v3467_v58  ;;  %4476 = vpow2.f32 %v3332_v57 }
 0x8e6   : > { %v3364_v22 = vmul.f32 1.442695, %v8690_v56  ;;  %v8691_v14 = vsub.f32 %v7231_v43, %v7368_v34  ;;  %v7619_v53 = vpop.eup %4458  ;;  %4478 = vpow2.f32 %v3336_v2 }
 0x8e7   : > { %v7627_v58 = vpop.eup %4460  ;;  %v3469_v25 = vadd.f32 %v7541_v50, %v3468_v45  ;;  %4480 = vpow2.f32 %v3340_v62 }
 0x8e8   : > { %v3368_v55 = vmul.f32 1.442695, %v8691_v14  ;;  %v7634_v37 = vpop.eup %4462  ;;  %4482 = vpow2.f32 %v3344_v28  ;;  %v8692_v28 = vsub.f32 %v7237_v13, %v7368_v34  ;;  %v8693_v14 = vsub.f32 %v8653_v5, %v7368_v34 }
 0x8e9   : > { %v7642_v45 = vpop.eup %4464  ;;  %v3470_v62 = vadd.f32 %v7548_v4, %v3469_v25  ;;  %4484 = vpow2.f32 %v3348_v11 }
 0x8ea   : > { %v7649_v43 = vpop.eup %4466  ;;  %4486 = vpow2.f32 %v3352_v6  ;;  %v3372_v2 = vmul.f32 1.442695, %v8692_v28  ;;  %v3376_v56 = vmul.f32 1.442695, %v8693_v14 }
 0x8eb   : > { %v7657_v25 = vpop.eup %4468  ;;  %v3471_v11 = vadd.f32 %v7554_v10, %v3470_v62  ;;  %4488 = vpow2.f32 %v3356_v39  ;;  %v8694_v39 = vsub.f32 %v8654_v59, %v7368_v34  ;;  %v8699_v59 = vsub.f32 %v8659_v36, %v7368_v34 }
 0x8ec   : > { %v7665_v57 = vpop.eup %4470  ;;  %4490 = vpow2.f32 %v3360_v51  ;;  %v8695_v51 = vsub.f32 %v8655_v7, %v7368_v34  ;;  %v8698_v7 = vsub.f32 %v8658_v63, %v7368_v34  ;;  %v8702_v36 = vsub.f32 %v8662_v38, %v7368_v34 }
 0x8ed   : > { %v7670_v44 = vpop.eup %4472  ;;  %v3472_v49 = vadd.f32 %v7560_v17, %v3471_v11  ;;  %4492 = vpow2.f32 %v3364_v22  ;;  %v3380_v13 = vmul.f32 1.442695, %v8694_v39  ;;  %v8696_v22 = vsub.f32 %v8656_v48, %v7368_v34 }
 0x8ee   : > { %v7678_v28 = vpop.eup %4474  ;;  %4494 = vpow2.f32 %v3368_v55  ;;  %v3384_v5 = vmul.f32 1.442695, %v8695_v51  ;;  %v8697_v55 = vsub.f32 %v8657_v12, %v7368_v34  ;;  %v3396_v51 = vmul.f32 1.442695, %v8698_v7 }
 0x8ef   : > { %v4477_v14 = vpop.eup %4476  ;;  %v3473_v6 = vadd.f32 %v7565_v33, %v3472_v49  ;;  %4496 = vpow2.f32 %v3372_v2  ;;  %v3388_v11 = vmul.f32 1.442695, %v8696_v22  ;;  %v8700_v12 = vsub.f32 %v8660_v29, %v7368_v34 }
 0x8f0   : > { %v4479_v39 = vpop.eup %4478  ;;  %4498 = vpow2.f32 %v3376_v56  ;;  %v3392_v62 = vmul.f32 1.442695, %v8697_v55  ;;  %v3400_v56 = vmul.f32 1.442695, %v8699_v59  ;;  %v3412_v59 = vmul.f32 1.442695, %v8702_v36 }
 0x8f1   : > { %v4481_v8 = vpop.eup %4480  ;;  %v3474_v49 = vadd.f32 %v7571_v61, %v3473_v6  ;;  %4500 = vpow2.f32 %v3380_v13  ;;  %v3495_v2 = vadd.f32 %v4479_v39, %v4477_v14  ;;  %v3535_v48 = vpack.c.bf16 %v4479_v39, %v4477_v14 }
 0x8f2   : > { %v4483_v22 = vpop.eup %4482  ;;  %4502 = vpow2.f32 %v3384_v5  ;;  %v3404_v55 = vmul.f32 1.442695, %v8700_v12  ;;  %v8701_v5 = vsub.f32 %v8661_v42, %v7368_v34  ;;  %v8703_v29 = vpack.c.bf16 %v7460_v18, %v7452_v1 }
 0x8f3   : > { %v4485_v33 = vpop.eup %4484  ;;  %v3475_v63 = vadd.f32 %v7576_v9, %v3474_v49  ;;  %4504 = vpow2.f32 %v3388_v11  ;;  %v3496_v7 = vadd.f32 %v4481_v8, %v3495_v2  ;;  %3566 = vmatprep.subr.bf16.mxu0 %v3535_v48  ;;  %v3537_v6 = vpack.c.bf16 %v4483_v22, %v4481_v8 }
 0x8f4   : > { %v4487_v13 = vpop.eup %4486  ;;  %4506 = vpow2.f32 %v3392_v62  ;;  %v3408_v14 = vmul.f32 1.442695, %v8701_v5  ;;  %3567 = vmatpush1.bf16.msra.mxu0 %v8703_v29  ;;  %v8704_v42 = vsub.f32 %v8663_v40, %v7368_v34  ;;  %v8705_v38 = vsub.f32 %v8664_v32, %v7368_v34  ;;  %v8710_v29 = vld [vmem:[#allocation58_spill] sm:$0xff] }
 0x8f5   : > { %v4489_v39 = vpop.eup %4488  ;;  %v3476_v11 = vadd.f32 %v7582_v26, %v3475_v63  ;;  %4508 = vpow2.f32 %v3396_v51  ;;  %v3497_v49 = vadd.f32 %v4483_v22, %v3496_v7  ;;  %3568 = vmatprep.subr.bf16.mxu0 %v3537_v6  ;;  %v3539_v8 = vpack.c.bf16 %v4487_v13, %v4485_v33 }
 0x8f6   : > { %v4491_v62 = vpop.eup %4490  ;;  %4510 = vpow2.f32 %v3400_v56  ;;  %v3416_v2 = vmul.f32 1.442695, %v8704_v42  ;;  %v3420_v48 = vmul.f32 1.442695, %v8705_v38  ;;  %v8706_v22 = vsub.f32 %v8665_v19, %v7368_v34 }
 0x8f7   : > { %v4493_v12 = vpop.eup %4492  ;;  %v3477_v1 = vadd.f32 %v7590_v30, %v3476_v11  ;;  %4512 = vpow2.f32 %v3404_v55  ;;  %v3498_v18 = vadd.f32 %v4485_v33, %v3497_v49  ;;  %v3541_v63 = vpack.c.bf16 %v4491_v62, %v4489_v39 }
 0x8f8   : > { %v4495_v51 = vpop.eup %4494  ;;  %4514 = vpow2.f32 %v3408_v14  ;;  %v3424_v56 = vmul.f32 1.442695, %v8706_v22  ;;  %v8707_v40 = vsub.f32 %v8666_v24, %v7368_v34  ;;  %v8708_v32 = vpack.c.bf16 %v7476_v16, %v7468_v60 }
 0x8f9   : > { %v4497_v6 = vpop.eup %4496  ;;  %v3478_v5 = vadd.f32 %v7599_v15, %v3477_v1  ;;  %4516 = vpow2.f32 %v3412_v59  ;;  %v3499_v33 = vadd.f32 %v4487_v13, %v3498_v18  ;;  %v3543_v55 = vpack.c.bf16 %v4495_v51, %v4493_v12 }
 0x8fa   : > { %v3428_v7 = vmul.f32 1.442695, %v8707_v40  ;;  %3569 = vmatpush1.bf16.msra.mxu0 %v8708_v32  ;;  %v4499_v14 = vpop.eup %4498  ;;  %4518 = vpow2.f32 %v3416_v2  ;;  %v8709_v19 = vsub.f32 %v8667_v21, %v7368_v34  ;;  %v8711_v24 = vsub.f32 %v8710_v29, %v7368_v34  ;;  %v8713_v2 = vld [vmem:[#allocation53_spill] sm:$0xff] }
 0x8fb   : > { %3570 = vmatprep.subr.bf16.mxu0 %v3539_v8  ;;  %v4501_v49 = vpop.eup %4500  ;;  %v3479_v60 = vadd.f32 %v7610_v35, %v3478_v5  ;;  %4520 = vpow2.f32 %v3420_v48  ;;  %v3500_v16 = vadd.f32 %v4489_v39, %v3499_v33  ;;  %v3545_v42 = vpack.c.bf16 %v4499_v14, %v4497_v6 }
 0x8fc   : > { %v3432_v36 = vmul.f32 1.442695, %v8709_v19  ;;  %v3436_v11 = vmul.f32 1.442695, %v8711_v24  ;;  %v4503_v59 = vpop.eup %4502  ;;  %4522 = vpow2.f32 %v3424_v56  ;;  %v8712_v13 = vsub.f32 %v8669_v47, %v7368_v34 }
 0x8fd   : > { %v8714_v21 = vsub.f32 %v8713_v2, %v7368_v34  ;;  %v8715_v1 = vpack.c.bf16 %v7491_v27, %v7484_v20  ;;  %v4505_v18 = vpop.eup %4504  ;;  %v3480_v22 = vadd.f32 %v7619_v53, %v3479_v60  ;;  %4524 = vpow2.f32 %v3428_v7 }
 0x8fe   : > { %v3440_v8 = vmul.f32 1.442695, %v8712_v13  ;;  %v3501_v39 = vadd.f32 %v4491_v62, %v3500_v16  ;;  %v3547_v48 = vpack.c.bf16 %v4503_v59, %v4501_v49  ;;  %v4507_v56 = vpop.eup %4506  ;;  %4526 = vpow2.f32 %v3432_v36  ;;  %v8718_v62 = vld [vmem:[#allocation21_spill] sm:$0xff] }
 0x8ff   : > { %v3444_v38 = vmul.f32 1.442695, %v8714_v21  ;;  %3571 = vmatpush1.bf16.msra.mxu0 %v8715_v1  ;;  %v8716_v47 = vsub.f32 %v8671_v23, %v7368_v34  ;;  %v8717_v32 = vsub.f32 %v8672_v54, %v7368_v34  ;;  %v4509_v33 = vpop.eup %4508  ;;  %v3481_v27 = vadd.f32 %v7627_v58, %v3480_v22 }
 0x900   : > { %3572 = vmatprep.subr.bf16.mxu0 %v3541_v63  ;;  %4528 = vpow2.f32 %v3436_v11  ;;  %v3502_v20 = vadd.f32 %v4493_v12, %v3501_v39  ;;  %v3549_v19 = vpack.c.bf16 %v4507_v56, %v4505_v18  ;;  %v4511_v7 = vpop.eup %4510  ;;  %v8719_v63 = vsub.f32 %v8718_v62, %v7368_v34 }
 0x901   : > { %v3448_v40 = vmul.f32 1.442695, %v8716_v47  ;;  %v3452_v5 = vmul.f32 1.442695, %v8717_v32  ;;  %4530 = vpow2.f32 %v3440_v8  ;;  %v8720_v23 = vpack.c.bf16 %v7506_v3, %v7499_v52  ;;  %v4513_v29 = vpop.eup %4512 }
 0x902   : > { %v3456_v36 = vmul.f32 1.442695, %v8719_v63  ;;  %v3482_v54 = vadd.f32 %v7634_v37, %v3481_v27  ;;  %4532 = vpow2.f32 %v3444_v38  ;;  %v3503_v24 = vadd.f32 %v4495_v51, %v3502_v20  ;;  %v4515_v11 = vpop.eup %4514 }
 0x903   : > { %3573 = vmatpush1.bf16.msra.mxu0 %v8720_v23  ;;  %v3551_v60 = vpack.c.bf16 %v4511_v7, %v4509_v33  ;;  %4534 = vpow2.f32 %v3448_v40  ;;  %v4517_v12 = vpop.eup %4516  ;;  %v3553_v34 = vpack.c.bf16 %v4515_v11, %v4513_v29  ;;  %v8721_v3 = vpack.c.bf16 %v7521_v0, %v7514_v41 }
 0x904   : > { %3574 = vmatprep.subr.bf16.mxu0 %v3543_v55  ;;  %v3483_v16 = vadd.f32 %v7642_v45, %v3482_v54  ;;  %4536 = vpow2.f32 %v3452_v5  ;;  %v3504_v13 = vadd.f32 %v4497_v6, %v3503_v24  ;;  %v4519_v8 = vpop.eup %4518  ;;  %v8722_v47 = vpack.c.bf16 %v7535_v31, %v7529_v46 }
 0x905   : > { %4538 = vpow2.f32 %v3456_v36  ;;  %v4521_v52 = vpop.eup %4520  ;;  %v3555_v55 = vpack.c.bf16 %v4519_v8, %v4517_v12  ;;  %v8724_v54 = vpack.c.bf16 %v7560_v17, %v7554_v10  ;;  %v8728_v10 = vpack.c.bf16 %v7599_v15, %v7590_v30 }
 0x906   : > { %v3484_v2 = vadd.f32 %v7649_v43, %v3483_v16  ;;  %v3505_v51 = vadd.f32 %v4499_v14, %v3504_v13  ;;  %v4523_v21 = vpop.eup %4522  ;;  %v8731_v30 = vpack.c.bf16 %v7649_v43, %v7642_v45  ;;  %v8738_v43 = vld [vmem:[#allocation55_spill] sm:$0xff] }
 0x907   : > { %3575 = vmatpush1.bf16.msra.mxu0 %v8721_v3  ;;  %v4525_v38 = vpop.eup %4524  ;;  %v3557_v39 = vpack.c.bf16 %v4523_v21, %v4521_v52  ;;  %v8737_v3 = vld [vmem:[#allocation54_spill] sm:$0xff] }
 0x908   : > { %3576 = vmatprep.subr.bf16.mxu0 %v3545_v42  ;;  %v3485_v1 = vadd.f32 %v7657_v25, %v3484_v2  ;;  %v3506_v22 = vadd.f32 %v4501_v49, %v3505_v51  ;;  %v4527_v6 = vpop.eup %4526  ;;  %v8723_v49 = vpack.c.bf16 %v7548_v4, %v7541_v50  ;;  %v8725_v50 = vld [vmem:[#allocation28_spill] sm:$0xff]  ;;  %v8739_v45 = vpack.c.bf16 %v8737_v3, %v8738_v43  ;;  %v8741_v2 = vld [vmem:[#allocation34_spill] sm:$0xff] }
 0x909   : > { %v3559_v32 = vpack.c.bf16 %v4527_v6, %v4525_v38  ;;  %v8726_v4 = vpack.c.bf16 %v7571_v61, %v8725_v50  ;;  %v8729_v61 = vpack.c.bf16 %v7619_v53, %v7610_v35  ;;  %v8732_v35 = vpack.c.bf16 %v7665_v57, %v7657_v25  ;;  %v8744_v25 = vld [vmem:[#allocation29_spill] sm:$0xff]  ;;  %v8775_v50 = vld [vmem:[#allocation11_spill] sm:$0xff] }
 0x90a   : > { %v4529_v40 = vpop.eup %4528  ;;  %v3486_v0 = vadd.f32 %v7665_v57, %v3485_v1  ;;  %v3507_v41 = vadd.f32 %v4503_v59, %v3506_v22  ;;  %v8743_v57 = vld [vmem:[#allocation31_spill] sm:$0xff]  ;;  %v8750_v1 = vld [vmem:[#allocation33_spill] sm:$0xff] }
 0x90b   : > { %3577 = vmatpush1.bf16.msra.mxu0 %v8722_v47  ;;  %v4531_v14 = vpop.eup %4530 }
 0x90c   : > { %3578 = vmatprep.subr.bf16.mxu0 %v3547_v48  ;;  %v4533_v42 = vpop.eup %4532  ;;  %v3487_v5 = vadd.f32 %v7670_v44, %v3486_v0  ;;  %v3508_v27 = vadd.f32 %v4505_v18, %v3507_v41  ;;  %v3561_v20 = vpack.c.bf16 %v4531_v14, %v4529_v40  ;;  %v8756_v0 = vld [vmem:[#allocation56_spill] sm:$0xff] }
 0x90d   : > { %v4535_v62 = vpop.eup %4534 }
 0x90e   : > { %v4537_v63 = vpop.eup %4536  ;;  %v7776_v31 = vadd.f32 %v7678_v28, %v3487_v5  ;;  %v3509_v46 = vadd.f32 %v4507_v56, %v3508_v27  ;;  %v3563_v59 = vpack.c.bf16 %v4535_v62, %v4533_v42  ;;  %v8727_v56 = vpack.c.bf16 %v7582_v26, %v7576_v9  ;;  %v8762_v27 = vld [vmem:[#allocation5_spill] sm:$0xff] }
 0x90f   : > { %3579 = vmatpush1.bf16.msra.mxu0 %v8723_v49  ;;  %v4539_v48 = vpop.eup %4538  ;;  %v8730_v9 = vpack.c.bf16 %v7634_v37, %v7627_v58  ;;  %v8733_v58 = vpack.c.bf16 %v7678_v28, %v7670_v44  ;;  %v8734_v37 = vld [vmem:[#allocation32_spill] sm:$0xff]  ;;  %v8749_v28 = vld [vmem:[#allocation46_spill] sm:$0xff]  ;;  %v8761_v5 = vmov 0  }
 0x910   : > { %3580 = vmatprep.subr.bf16.mxu0 %v3549_v19  ;;  %v3510_v36 = vadd.f32 %v4509_v33, %v3509_v46  ;;  %v3565_v23 = vpack.c.bf16 %v4539_v48, %v4537_v63  ;;  %v8751_v22 = vpack.c.bf16 %v8749_v28, %v8750_v1  ;;  %v8765_v49 = vld [vmem:[#allocation6_spill] sm:$0xff] }
 0x912   : > { %v3511_v18 = vadd.f32 %v4511_v7, %v3510_v36 }
 0x913   : > { %3581 = vmatpush1.bf16.msra.mxu0 %v8724_v54  ;;  %v8772_v54 = vld [vmem:[#allocation38_spill] sm:$0xff] }
 0x914   : > { %3582 = vmatprep.subr.bf16.mxu0 %v3551_v60  ;;  %v3512_v24 = vadd.f32 %v4513_v29, %v3511_v18 }
 0x916   : > { %v3513_v16 = vadd.f32 %v4515_v11, %v3512_v24  ;;  %v8774_v24 = vld [vmem:[#allocation16_spill] sm:$0xff] }
 0x917   : > { %3583 = vmatpush1.bf16.msra.mxu0 %v8726_v4  ;;  %v8776_v4 = vpack.c.bf16 %v8774_v24, %v8775_v50 }
 0x918   : > { %3584 = vmatprep.subr.bf16.mxu0 %v3553_v34  ;;  %v3514_v13 = vadd.f32 %v4517_v12, %v3513_v16  ;;  %v8735_v34 = vld [vmem:[#allocation30_spill] sm:$0xff] }
 0x919   : > { %v8777_v16 = vld [vmem:[#allocation10_spill] sm:$0xff] }
 0x91a   : > { %v3515_v33 = vadd.f32 %v4519_v8, %v3514_v13  ;;  %v8736_v8 = vpack.c.bf16 %v8734_v37, %v8735_v34  ;;  %v8778_v13 = vld [vmem:[#allocation12_spill] sm:$0xff] }
 0x91b   : > { %3585 = vmatpush1.bf16.msra.mxu0 %v8727_v56  ;;  %v8779_v56 = vpack.c.bf16 %v8777_v16, %v8778_v13 }
 0x91c   : > { %3586 = vmatprep.subr.bf16.mxu0 %v3555_v55  ;;  %v3516_v19 = vadd.f32 %v4521_v52, %v3515_v33  ;;  %v8740_v52 = vld [vmem:[#allocation36_spill] sm:$0xff]  ;;  %v8745_v55 = vpack.c.bf16 %v8743_v57, %v8744_v25  ;;  %v3636_v33 = vld [vmem:[%s7929_s3 + $0x8] sm:$0xff] }
 0x91d   : > { %v8742_v51 = vpack.c.bf16 %v8740_v52, %v8741_v2  ;;  %3646 = vperm.xlu1 %3983, %v3636_v33  }
 0x91e   : > { %v3517_v17 = vadd.f32 %v4523_v21, %v3516_v19  ;;  %v8746_v21 = vld [vmem:[#allocation47_spill] sm:$0xff]  ;;  %v3635_v19 = vld [vmem:[%s7929_s3] sm:$0xff] }
 0x91f   : > { %3587 = vmatpush1.bf16.msra.mxu0 %v8728_v10  ;;  %3641 = vperm.xlu0 %3982, %v3635_v19   ;;  %v3637_v10 = vld [vmem:[%s7929_s3 + $0x10] sm:$0xff] }
 0x920   : > { %3588 = vmatprep.subr.bf16.mxu0 %v3557_v39  ;;  %v3518_v7 = vadd.f32 %v4525_v38, %v3517_v17  ;;  %v8747_v38 = vld [vmem:[#allocation43_spill] sm:$0xff]  ;;  %v8752_v39 = vld [vmem:[#allocation49_spill] sm:$0xff]  ;;  %v3638_v17 = vld [vmem:[%s7929_s3 + $0x18] sm:$0xff] }
 0x921   : > { %v8748_v44 = vpack.c.bf16 %v8746_v21, %v8747_v38  ;;  %3651 = vperm.xlu1 %3983, %v3637_v10  }
 0x922   : > { %v3519_v29 = vadd.f32 %v4527_v6, %v3518_v7  ;;  %v8753_v6 = vld [vmem:[#allocation42_spill] sm:$0xff]  ;;  %v3489_v7 = vrot.slane %v7776_v31, 4 }
 0x923   : > { %3589 = vmatpush1.bf16.msra.mxu0 %v8729_v61  ;;  %v8754_v47 = vpack.c.bf16 %v8752_v39, %v8753_v6 }
 0x924   : > { %3590 = vmatprep.subr.bf16.mxu0 %v3559_v32  ;;  %v3520_v60 = vadd.f32 %v4529_v40, %v3519_v29  ;;  %v8755_v40 = vld [vmem:[#allocation35_spill] sm:$0xff]  ;;  %v8758_v32 = vld [vmem:[#allocation44_spill] sm:$0xff]  ;;  %v3490_v29 = vadd.f32 %v3489_v7, %v7776_v31 }
 0x925   : > { %v8757_v41 = vpack.c.bf16 %v8755_v40, %v8756_v0  ;;  %3656 = vperm.xlu1 %3983, %v3638_v17   ;;  %v4015_v40 = vld [vmem:[%s7928_s2 + $0x8] sm:$0xff]  }
 0x926   : > { %v3521_v26 = vadd.f32 %v4531_v14, %v3520_v60  ;;  %v8759_v14 = vld [vmem:[#allocation40_spill] sm:$0xff] }
 0x927   : > { %3591 = vmatpush1.bf16.msra.mxu0 %v8730_v9  ;;  %v3491_v9 = vrot.slane %v3490_v29, 2 }
 0x928   : > { %3592 = vmatprep.subr.bf16.mxu0 %v3561_v20  ;;  %v3522_v11 = vadd.f32 %v4533_v42, %v3521_v26  ;;  %v8760_v42 = vpack.c.bf16 %v8758_v32, %v8759_v14  ;;  %v8763_v20 = vld [vmem:[#allocation7_spill] sm:$0xff] }
 0x92a   : > { %v3523_v15 = vadd.f32 %v4535_v62, %v3522_v11  ;;  %v8764_v62 = vpack.c.bf16 %v8762_v27, %v8763_v20  ;;  %v3492_v11 = vadd.f32 %v3491_v9, %v3490_v29 }
 0x92b   : > { %3593 = vmatpush1.bf16.msra.mxu0 %v8731_v30 }
 0x92c   : > { %3594 = vmatprep.subr.bf16.mxu0 %v3563_v59  ;;  %v3524_v12 = vadd.f32 %v4537_v63, %v3523_v15  ;;  %v8766_v63 = vld [vmem:[#allocation50_spill] sm:$0xff]  ;;  %v8768_v59 = vld [vmem:[#allocation45_spill] sm:$0xff]  ;;  %v3493_v15 = vrot.slane %v3492_v11, 1 }
 0x92d   : > { %v8767_v46 = vpack.c.bf16 %v8765_v49, %v8766_v63 }
 0x92e   : > { %v3525_v53 = vadd.f32 %v4539_v48, %v3524_v12  ;;  %v8769_v48 = vld [vmem:[#allocation39_spill] sm:$0xff] }
 0x92f   : > { %3595 = vmatpush1.bf16.msra.mxu0 %v8732_v35  ;;  %v8770_v36 = vpack.c.bf16 %v8768_v59, %v8769_v48  ;;  %v3494_v35 = vadd.f32 %v3493_v15, %v3492_v11 }
 0x930   : > { %3596 = vmatprep.subr.bf16.mxu0 %v3565_v23  ;;  %v8771_v23 = vld [vmem:[#allocation41_spill] sm:$0xff]  ;;  %v3526_v61 = vrot.slane %v3525_v53, 4 }
 0x931   : > { %v8773_v18 = vpack.c.bf16 %v8771_v23, %v8772_v54  ;;  %4540 = vrcp.f32 %v3494_v35 }
 0x932   : > { %v3527_v60 = vadd.f32 %v3526_v61, %v3525_v53 }
 0x933   : > { %3597 = vmatpush1.bf16.msra.mxu0 %v8733_v58 }
 0x934   : > { %3671 = vmatprep.subr.bf16.mxu0 %v8736_v8  ;;  %v3528_v26 = vrot.slane %v3527_v60, 2 }
 0x936   : > { %3599 = vmatmul.mubr.bf16.vlgmr.msra.gmra.mrb[168].mxu0 %v8739_v45  ;;  %v3529_v30 = vadd.f32 %v3528_v26, %v3527_v60 }
 0x937   : > { %3608 = vmatprep.mubr.bf16.mxu0 %v8742_v51  ;;  %3672 = vmatpush1.bf16.msra.mxu0 %v8745_v55 }
 0x938   : > { %3673 = vmatprep.subr.bf16.mxu0 %v8748_v44  ;;  %v3530_v12 = vrot.slane %v3529_v30, 1 }
 0x93a   : > { %v3531_v58 = vadd.f32 %v3530_v12, %v3529_v30 }
 0x93b   : > { %3674 = vmatpush1.bf16.msra.mxu0 %v8751_v22  ;;  %v4541_v37 = vpop.eup %4540 }
 0x93c   : > { %3675 = vmatprep.subr.bf16.mxu0 %v8754_v47  ;;  %4542 = vrcp.f32 %v3531_v58  ;;  %v4014_v47 = vld [vmem:[%s7928_s2] sm:$0xff]  }
 0x93e   : > { %3609 = vmatmul.mubr.bf16.gmra.mrb[172].mxu0 %v8757_v41 }
 0x93f   : > { %3676 = vmatpush1.bf16.msra.mxu0 %v8760_v42  ;;  %3703 = vmatprep.mubr.bf16.mxu0 %v8761_v5 }
 0x940   : > { %3677 = vmatprep.subr.bf16.mxu0 %v8764_v62 }
 0x943   : > { %3678 = vmatpush1.bf16.msra.mxu0 %v8767_v46 }
 0x944   : > { %3679 = vmatprep.subr.bf16.mxu0 %v8770_v36 }
 0x946   : > { %v4543_v8 = vpop.eup %4542 }
 0x947   : > { %3680 = vmatpush1.bf16.msra.mxu0 %v8773_v18 }
 0x948   : > { %3681 = vmatprep.subr.bf16.mxu0 %v8776_v4 }
 0x94b   : > { %3682 = vmatpush1.bf16.msra.mxu0 %v8779_v56 }
 0x99c   : > { %v3647_v0 = vpop.permute.xlu1 %3646 }
 0x99e   : > { %v3642_v41 = vpop.permute.xlu0 %3641 }
 0xa09   : > { %v3600_v34 = vpop.f32.mrb[168].mxu0 }
 0xa0a   : > { %v3619_v3 = vmul.f32 %v4541_v37, %v3600_v34  ;;  %v3602_v43 = vpop.f32.mrb[169].mxu0 }
 0xa0b   : > { %v3620_v45 = vmul.f32 %v4543_v8, %v3602_v43  ;;  %v3604_v52 = vpop.f32.mrb[170].mxu0 }
 0xa0c   : > { %v3621_v2 = vmul.f32 %v4541_v37, %v3604_v52  ;;  %v3606_v31 = vpop.f32.mrb[171].mxu0 }
 0xa0d   : > { %v3622_v53 = vmul.f32 %v4543_v8, %v3606_v31 }
 0xa0e   : > { %v3627_v51 = vpack.c.bf16 %v3621_v2, %v3619_v3 }
 0xa0f   : > { %v3628_v57 = vpack.c.bf16 %v3622_v53, %v3620_v45 }
 0xa11   : > { %v3610_v25 = vpop.f32.mrb[172].mxu0  ;;  %3683 = vmatprep.subr.bf16.mxu0 %v3628_v57 }
 0xa12   : > { %v3623_v55 = vmul.f32 %v4541_v37, %v3610_v25  ;;  %v3612_v21 = vpop.f32.mrb[173].mxu0  ;;  %3684 = vmatpush1.bf16.msra.mxu0 %v3627_v51 }
 0xa13   : > { %v3624_v38 = vmul.f32 %v4543_v8, %v3612_v21  ;;  %v3614_v44 = vpop.f32.mrb[174].mxu0 }
 0xa14   : > { %v3625_v28 = vmul.f32 %v4541_v37, %v3614_v44  ;;  %v3616_v1 = vpop.f32.mrb[175].mxu0 }
 0xa15   : > { %v3626_v22 = vmul.f32 %v4543_v8, %v3616_v1 }
 0xa16   : > { %v3629_v39 = vpack.c.bf16 %v3625_v28, %v3623_v55 }
 0xa17   : > { %v3630_v6 = vpack.c.bf16 %v3626_v22, %v3624_v38 }
 0xa19   : > { %3685 = vmatprep.subr.bf16.mxu0 %v3630_v6 }
 0xa1a   : > { %3686 = vmatpush1.bf16.msra.mxu0 %v3629_v39 }
 0xa1d   : > { %3704 = vmatmul.mubr.bf16.vlgmr.msra.gmra.mrb[176].mxu0 %v4014_v47 }
 0xa1e   : > { %3713 = vmatprep.mubr.bf16.mxu0 %v8761_v5  ;;  %v3652_v5 = vpop.permute.xlu1 %3651 }
 0xa22   : > { %v3657_v54 = vpop.permute.xlu1 %3656 }
 0xa25   : > { %3714 = vmatmul.mubr.bf16.gmra.mrb[180].mxu0 %v4015_v40 }
 0xaf0   : > { %v3705_v32 = vpop.f32.mrb[176].mxu0 }
 0xaf1   : > { %v3707_v14 = vpop.f32.mrb[177].mxu0  ;;  %v3706_v42 = vadd.f32 %v3705_v32, %v3642_v41 }
 0xaf2   : > { %v3709_v27 = vpop.f32.mrb[178].mxu0  ;;  %v3708_v20 = vadd.f32 %v3707_v14, %v3642_v41 }
 0xaf3   : > { %v3710_v62 = vadd.f32 %v3709_v27, %v3647_v0  ;;  %v3711_v49 = vpop.f32.mrb[179].mxu0  ;;  %3724 = vst [vmem:[%s190_s23] sm:$0xff] %v3706_v42 }
 0xaf4   : > { %v3712_v63 = vadd.f32 %v3711_v49, %v3647_v0  ;;  %3725 = vst [vmem:[%s190_s23 + $0x8] sm:$0xff] %v3708_v20 }
 0xaf5   : > { %3726 = vst [vmem:[%s190_s23 + $0x10] sm:$0xff] %v3710_v62 }
 0xaf6   : > { %3727 = vst [vmem:[%s190_s23 + $0x18] sm:$0xff] %v3712_v63 }
 0xaf8   : > { %v3715_v46 = vpop.f32.mrb[180].mxu0 }
 0xaf9   : > { %v3716_v59 = vadd.f32 %v3715_v46, %v3652_v5  ;;  %v3717_v48 = vpop.f32.mrb[181].mxu0 }
 0xafa   : > { %v3718_v36 = vadd.f32 %v3717_v48, %v3652_v5  ;;  %v3719_v23 = vpop.f32.mrb[182].mxu0 }
 0xafb   : > { %3728 = vst [vmem:[%s190_s23 + $0x20] sm:$0xff] %v3716_v59  ;;  %v3720_v18 = vadd.f32 %v3719_v23, %v3657_v54  ;;  %v3721_v24 = vpop.f32.mrb[183].mxu0 }
 0xafc   : > { %3729 = vst [vmem:[%s190_s23 + $0x28] sm:$0xff] %v3718_v36  ;;  %v3722_v50 = vadd.f32 %v3721_v24, %v3657_v54 }
 0xafd   : > { %3730 = vst [vmem:[%s190_s23 + $0x30] sm:$0xff] %v3720_v18 }
 0xafe   : > { %3731 = vst [vmem:[%s190_s23 + $0x38] sm:$0xff] %v3722_v50 }
 0xaff   : > { %4557 = shalt.err (!%p4554_p3)
}
 0xb00   : > { %s4558_s10 = scalar_lea.hbm %s7879_s5, 1024  ;;  %s4562_s13 = scalar_lea.hbm %s7930_s4, 2048 }
 0xb01   : > { %p4559_p4 = scmp.ne.s32.totalorder %s7879_s5, %s4558_s10  ;;  %p4563_p9 = scmp.lt.u32.totalorder %s7879_s5, %s7930_s4 }
 0xb02   : > { %p4564_p10 = scmp.lt.u32.totalorder %s4562_s13, %s4558_s10  ;;  %p4566_p12 = scmp.lt.u32.totalorder %s4558_s10, %s7879_s5 }
 0xb03   : > { %p4560_p7 = pnand %p4559_p4, %p4675_p5 }
 0xb04   : > { %p4565_p11 = por %p4564_p10, %p4563_p9 }
 0xb05   : > { %p4561_p8 = pneg %p4560_p7 }
 0xb06   : > { %p4567_p13 = por %p4566_p12, %p4565_p11 }
 0xb08   : > { %p4568_p0 = pnand %p4567_p13, %p4561_p8 }
 0xb0a   : > { %4571 = shalt.err (!%p4568_p0)
}
 0xb0b   : > { %s4610_s22 = smov 256   ;;  %s4611_s23 = smov 16  }
 0xb0c   : > { %3940 = dma.vmem_to_hbm [thread:$0]  (%p4675_p5), %s7881_s28, 1024, %s7879_s5, %s7885_s19, %s4610_s22, %s4610_s22, %s4611_s23  }
 0xb0d PF: > { %p3946_p1 = scmp.ge.s32.totalorder %s4606_s18, 2  ;;  %s3761_s27 = sand.u32 1, %s4594_s15  }
 0xb0e   : > { %s3762_s29 = scalar_lea.sflag [#allocation3], %s3761_s27 }
 0xb0f   : > { %p3943_p2 = pnand %p3946_p1, %p4679_p6 }
 0xb11   : > { %4589 = dma.done.wait (!%p3943_p2), %s3762_s29, 1024  }
 0xb12   : > { %4591 = vsyncadd (!%p3943_p2), %s3762_s29, 4294966272  ;;  %p14_p3 = scmp.ge.s32.totalorder %s4662_s21, 4   ;;  %s8780_s15 = smov %s4598_s16 }
 0xb13   : > { %s8781_s16 = smov %s4602_s17  ;;  %s8782_s17 = smov %s4673_s24 }
 0xb14   : > { %s8783_s18 = smov %s4662_s21  ;;  %16 = sbr.rel (!%p14_p3) target bundleno = 3 (0x3), region = 71 }
 0xb1b   :  { %3767 = vsyncpa [#allocation3], 1 }
 0xb1c   :  { %3769 = vsyncpa [#allocation3 + $0x1], 1 }

</bundles_post_ra>
